<compile_context>
chip_gen: v7x
topology: tpu7x:2x2x1
jax: 0.10.0
libtpu: 0.0.40
codegen_flags: <defaults>
</compile_context>

<pallas_src>
import jax
import jax.numpy as jnp
from jax.experimental import pallas as pl
from jax.experimental.pallas import tpu as pltpu


def _round_up(n, m):
    return ((n + m - 1) // m) * m


def _mlp_kernel(x_ref, w1_ref, b1_ref, w2_ref, b2_ref,
                w3_ref, b3_ref, w4_ref, b4_ref, o_ref):
    x = x_ref[...]                                   # (T, d_in_p)  bf16
    cdt = x.dtype                                    # MXU operand dtype

    # Layer 1: Linear + ReLU   (Dropout1 -> identity in eval mode)
    h = jnp.dot(x, w1_ref[...], preferred_element_type=jnp.float32)
    h = jnp.maximum(h + b1_ref[...], 0.0)            # f32 epilogue

    # Layer 2: Linear + ReLU   (Dropout2 -> identity in eval mode)
    h = jnp.dot(h.astype(cdt), w2_ref[...], preferred_element_type=jnp.float32)
    h = jnp.maximum(h + b2_ref[...], 0.0)

    # Layer 3: Linear + ReLU
    h = jnp.dot(h.astype(cdt), w3_ref[...], preferred_element_type=jnp.float32)
    h = jnp.maximum(h + b3_ref[...], 0.0)

    # Layer 4: Linear(h3, 1) + Sigmoid, computed as w4_rows @ h^T so the batch
    # lands on the lane axis -> lane-dense, unmasked output stores.
    # w4_ref is (8, h3p): row 0 holds the real weights, rows 1-7 are zero pad.
    # (rhs-side contraction -> XLU transpose of h; XLU has slack here.)
    logits = jax.lax.dot_general(
        w4_ref[...], h.astype(cdt),
        dimension_numbers=(((1,), (1,)), ((), ())),   # (8,h3p) x (T,h3p)^T
        preferred_element_type=jnp.float32)           # -> (8, T)
    o_ref[...] = jax.nn.sigmoid(logits + b4_ref[0, 0]).astype(o_ref.dtype)


def prepare_params(params, compute_dtype=jnp.bfloat16):
    """One-time (init-time) weight prep: zero-pad d_in and hidden dims to
    multiples of 128, cast matmul weights to the MXU operand dtype, keep
    biases f32. Do NOT call this per forward pass."""
    w1, b1 = params["w1"], params["b1"]
    w2, b2 = params["w2"], params["b2"]
    w3, b3 = params["w3"], params["b3"]
    w4, b4 = params["w4"], params["b4"]
    d_in, h1 = w1.shape
    h2, h3 = w2.shape[1], w3.shape[1]
    d_in_p = _round_up(d_in, 128)
    h1p, h2p, h3p = (_round_up(h, 128) for h in (h1, h2, h3))

    w1p = jnp.pad(w1, ((0, d_in_p - d_in), (0, h1p - h1))).astype(compute_dtype)
    b1p = jnp.pad(b1, ((0, 0), (0, h1p - h1))).astype(jnp.float32)
    w2p = jnp.pad(w2, ((0, h1p - h1), (0, h2p - h2))).astype(compute_dtype)
    b2p = jnp.pad(b2, ((0, 0), (0, h2p - h2))).astype(jnp.float32)
    w3p = jnp.pad(w3, ((0, h2p - h2), (0, h3p - h3))).astype(compute_dtype)
    b3p = jnp.pad(b3, ((0, 0), (0, h3p - h3))).astype(jnp.float32)
    # Final layer as an (8, h3p) row-block: row 0 = w4^T (padded), rows 1-7 zero.
    w4r = jnp.pad(w4, ((0, h3p - h3), (0, 7))).T.astype(compute_dtype)  # (8, h3p)
    b4f = b4.astype(jnp.float32)                                        # (1, 1) -> SMEM

    return {
        "w1": w1p, "b1": b1p, "w2": w2p, "b2": b2p,
        "w3": w3p, "b3": b3p, "w4": w4r, "b4": b4f,
        "d_in": d_in, "d_in_p": d_in_p,
        "compute_dtype": compute_dtype,
    }


def _pick_tile(b_pad, batch_tile):
    """Pick a batch tile (multiple of 128) that divides b_pad, is <= batch_tile,
    and (when possible) leaves >= 2 grid steps so the parallel axis can spread
    across the 2 TensorCores on v7x."""
    m = b_pad // 128
    cap = max(1, batch_tile // 128)
    divisors = [d for d in range(1, cap + 1) if m % d == 0]
    multi = [d for d in divisors if m // d >= 2]
    t = max(multi) if multi else max(divisors)
    return 128 * t


def network_forward(x, prepped, *, batch_tile=512):
    """x: [B, input_size] f32; prepped: output of prepare_params()."""
    assert batch_tile % 128 == 0, "batch_tile must be a multiple of 128"
    B, d_in = x.shape
    assert d_in == prepped["d_in"], "input width mismatch with prepared params"

    cdt = prepped["compute_dtype"]
    d_in_p = prepped["d_in_p"]
    w1p, b1p = prepped["w1"], prepped["b1"]
    w2p, b2p = prepped["w2"], prepped["b2"]
    w3p, b3p = prepped["w3"], prepped["b3"]
    w4r, b4f = prepped["w4"], prepped["b4"]
    h1p, h2p, h3p = w1p.shape[1], w2p.shape[1], w3p.shape[1]

    # Batch padding at 128-row granularity (not the full tile), then pick a
    # tile that divides it.  B=300 -> 384 rows in 3 steps of 128.
    b_pad = _round_up(B, 128)
    tile = _pick_tile(b_pad, batch_tile)
    num_tiles = b_pad // tile

    xc = x.astype(cdt)
    if b_pad != B or d_in_p != d_in:
        xc = jnp.pad(xc, ((0, b_pad - B), (0, d_in_p - d_in)))

    itemsize = jnp.dtype(cdt).itemsize
    weight_elems = d_in_p * h1p + h1p * h2p + h2p * h3p + 8 * h3p
    cost = pl.CostEstimate(
        flops=2 * b_pad * weight_elems,
        transcendentals=8 * b_pad,                          # sigmoid exps
        bytes_accessed=(b_pad * d_in_p * itemsize           # x
                        + weight_elems * itemsize           # weights
                        + (h1p + h2p + h3p + 1) * 4         # biases (f32)
                        + 8 * b_pad * 4))                   # output (f32)

    # Right-sized VMEM budget (everything counted double-buffered) + headroom;
    # stays well inside v7x's 64 MiB even at batch_tile=1024.
    vmem_limit = int(
        2 * tile * d_in_p * itemsize                        # x tiles
        + 2 * weight_elems * itemsize                       # weights
        + 2 * (h1p + h2p + h3p) * 4                         # biases
        + 2 * 8 * tile * 4                                  # output tiles
        + (8 << 20))                                        # compiler scratch headroom

    full = lambda a: pl.BlockSpec(a.shape, lambda i: (0, 0))

    out = pl.pallas_call(
        _mlp_kernel,
        out_shape=jax.ShapeDtypeStruct((8, b_pad), jnp.float32),
        grid_spec=pltpu.PrefetchScalarGridSpec(
            num_scalar_prefetch=0,
            grid=(num_tiles,),
            in_specs=[
                pl.BlockSpec((tile, d_in_p), lambda i: (i, 0)),   # x batch tile
                full(w1p), full(b1p),
                full(w2p), full(b2p),
                full(w3p), full(b3p),
                full(w4r),
                pl.BlockSpec(memory_space=pltpu.MemorySpace.SMEM),  # b4 scalar
            ],
            out_specs=pl.BlockSpec((8, tile), lambda i: (0, i)),
        ),
        compiler_params=pltpu.CompilerParams(
            dimension_semantics=("parallel",),
            vmem_limit_bytes=vmem_limit),
        cost_estimate=cost,
    )(xc, w1p, b1p, w2p, b2p, w3p, b3p, w4r, b4f)

    # Row 0 holds the real logits (rows 1-7 are zero-weight pad); batch is on
    # the lane axis -> slice + reshape back to the PyTorch (B, 1) layout.
    return out[0, :B][:, None]


def network_forward_ref(x, params, compute_dtype=jnp.float32):
    """Pure-JAX reference. compute_dtype=bf16 mirrors the kernel's operand
    precision (with f32 accumulation) for a tight comparison."""
    def lin(h, w, b):
        return jnp.dot(h.astype(compute_dtype), w.astype(compute_dtype),
                       preferred_element_type=jnp.float32) + b.astype(jnp.float32)
    h = jnp.maximum(lin(x, params["w1"], params["b1"]), 0.0)
    h = jnp.maximum(lin(h, params["w2"], params["b2"]), 0.0)
    h = jnp.maximum(lin(h, params["w3"], params["b3"]), 0.0)
    return jax.nn.sigmoid(lin(h, params["w4"], params["b4"]))


def init_params(key, input_size, h1, h2, h3):
    """Deterministic PyTorch-style uniform init (bound = 1/sqrt(fan_in))."""
    dims = [(input_size, h1), (h1, h2), (h2, h3), (h3, 1)]
    params = {}
    for idx, (fan_in, fan_out) in enumerate(dims, start=1):
        key, kw, kb = jax.random.split(key, 3)
        bound = 1.0 / jnp.sqrt(fan_in)
        params[f"w{idx}"] = jax.random.uniform(
            kw, (fan_in, fan_out), jnp.float32, -bound, bound)
        params[f"b{idx}"] = jax.random.uniform(
            kb, (1, fan_out), jnp.float32, -bound, bound)
    return params


if __name__ == "__main__":
    # Shapes consistent with the module: input_size default 4292, small hiddens.
    INPUT_SIZE, H1, H2, H3 = 4292, 256, 128, 64
    BATCH = 300          # not 128-aligned -> exercises 128-granular batch padding

    key = jax.random.PRNGKey(0)
    key, kx = jax.random.split(key)
    x = jax.random.normal(kx, (BATCH, INPUT_SIZE), jnp.float32)
    params = init_params(key, INPUT_SIZE, H1, H2, H3)

    # One-time weight prep (pad + bf16 cast), hoisted out of the per-call path.
    prepped = prepare_params(params)

    out = network_forward(x, prepped, batch_tile=512)
    out = jax.block_until_ready(out)
    assert out.shape == (BATCH, 1)

    # Tight check vs a reference using the same bf16 operand precision.
    ref_bf16 = network_forward_ref(x, params, compute_dtype=jnp.bfloat16)
    err_bf16 = float(jnp.max(jnp.abs(out - ref_bf16)))
    assert err_bf16 < 2e-3, f"mismatch vs bf16-operand reference: {err_bf16}"

    # Sanity check vs the full-f32 reference (only bf16 operand rounding differs).
    ref_f32 = network_forward_ref(x, params)
    err_f32 = float(jnp.max(jnp.abs(out - ref_f32)))
    assert err_f32 < 5e-2, f"mismatch vs f32 reference: {err_f32}"

    print("KERNEL_OK")
</pallas_src>

<mosaic_0001>
module attributes {stable_mosaic.version = 11 : i64} {
  func.func @_mlp_kernel(%arg0: i32, %arg1: memref<128x4352xbf16, #tpu.memory_space<vmem>>, %arg2: memref<4352x256xbf16, #tpu.memory_space<vmem>>, %arg3: memref<1x256xf32, #tpu.memory_space<vmem>>, %arg4: memref<256x128xbf16, #tpu.memory_space<vmem>>, %arg5: memref<1x128xf32, #tpu.memory_space<vmem>>, %arg6: memref<128x128xbf16, #tpu.memory_space<vmem>>, %arg7: memref<1x128xf32, #tpu.memory_space<vmem>>, %arg8: memref<8x128xbf16, #tpu.memory_space<vmem>>, %arg9: memref<1x1xf32, #tpu.memory_space<smem>>, %arg10: memref<8x128xf32, #tpu.memory_space<vmem>>) attributes {dimension_semantics = [#tpu.dimension_semantics<parallel>], iteration_bounds = array<i64: 3>, scalar_prefetch = 0 : i64, scratch_operands = 0 : i64, tpu.core_type = #tpu.core_type<tc>, window_params = [{transform_indices = @transform_0, window_bounds = array<i64: 128, 4352>}, {pipeline_mode = #tpu.pipeline_mode<synchronous>, transform_indices = @transform_1, window_bounds = array<i64: 4352, 256>}, {pipeline_mode = #tpu.pipeline_mode<synchronous>, transform_indices = @transform_2, window_bounds = array<i64: 1, 256>}, {pipeline_mode = #tpu.pipeline_mode<synchronous>, transform_indices = @transform_3, window_bounds = array<i64: 256, 128>}, {pipeline_mode = #tpu.pipeline_mode<synchronous>, transform_indices = @transform_4, window_bounds = array<i64: 1, 128>}, {pipeline_mode = #tpu.pipeline_mode<synchronous>, transform_indices = @transform_5, window_bounds = array<i64: 128, 128>}, {pipeline_mode = #tpu.pipeline_mode<synchronous>, transform_indices = @transform_6, window_bounds = array<i64: 1, 128>}, {pipeline_mode = #tpu.pipeline_mode<synchronous>, transform_indices = @transform_7, window_bounds = array<i64: 8, 128>}, {transform_indices = @transform_8, window_bounds = array<i64: 1, 1>}, {transform_indices = @transform_9, window_bounds = array<i64: 8, 128>}]} {
    %c0 = arith.constant 0 : index
    %c0_0 = arith.constant 0 : index
    %0 = vector.load %arg1[%c0, %c0_0] : memref<128x4352xbf16, #tpu.memory_space<vmem>>, vector<128x4352xbf16>
    %c0_1 = arith.constant 0 : index
    %c0_2 = arith.constant 0 : index
    %1 = vector.load %arg2[%c0_1, %c0_2] : memref<4352x256xbf16, #tpu.memory_space<vmem>>, vector<4352x256xbf16>
    %cst = arith.constant dense<0.000000e+00> : vector<128x256xf32>
    %2 = tpu.matmul %0, %1, %cst {dimension_numbers = #tpu.dot_dimension_numbers<[1], [0], [0], [1], [0, 0, 1, 1], [], []>} : vector<128x4352xbf16>, vector<4352x256xbf16>, vector<128x256xf32> -> vector<128x256xf32>
    %c0_3 = arith.constant 0 : index
    %c0_4 = arith.constant 0 : index
    %3 = vector.load %arg3[%c0_3, %c0_4] : memref<1x256xf32, #tpu.memory_space<vmem>>, vector<1x256xf32>
    %4 = vector.broadcast %3 : vector<1x256xf32> to vector<128x256xf32>
    %5 = arith.addf %2, %4 : vector<128x256xf32>
    %cst_5 = arith.constant 0.000000e+00 : f32
    %6 = vector.broadcast %cst_5 : f32 to vector<128x256xf32>
    %7 = arith.maximumf %5, %6 : vector<128x256xf32>
    %8 = arith.truncf %7 : vector<128x256xf32> to vector<128x256xbf16>
    %c0_6 = arith.constant 0 : index
    %c0_7 = arith.constant 0 : index
    %9 = vector.load %arg4[%c0_6, %c0_7] : memref<256x128xbf16, #tpu.memory_space<vmem>>, vector<256x128xbf16>
    %cst_8 = arith.constant dense<0.000000e+00> : vector<128x128xf32>
    %10 = tpu.matmul %8, %9, %cst_8 {dimension_numbers = #tpu.dot_dimension_numbers<[1], [0], [0], [1], [0, 0, 1, 1], [], []>} : vector<128x256xbf16>, vector<256x128xbf16>, vector<128x128xf32> -> vector<128x128xf32>
    %c0_9 = arith.constant 0 : index
    %c0_10 = arith.constant 0 : index
    %11 = vector.load %arg5[%c0_9, %c0_10] : memref<1x128xf32, #tpu.memory_space<vmem>>, vector<1x128xf32>
    %12 = vector.broadcast %11 : vector<1x128xf32> to vector<128x128xf32>
    %13 = arith.addf %10, %12 : vector<128x128xf32>
    %cst_11 = arith.constant 0.000000e+00 : f32
    %14 = vector.broadcast %cst_11 : f32 to vector<128x128xf32>
    %15 = arith.maximumf %13, %14 : vector<128x128xf32>
    %16 = arith.truncf %15 : vector<128x128xf32> to vector<128x128xbf16>
    %c0_12 = arith.constant 0 : index
    %c0_13 = arith.constant 0 : index
    %17 = vector.load %arg6[%c0_12, %c0_13] : memref<128x128xbf16, #tpu.memory_space<vmem>>, vector<128x128xbf16>
    %cst_14 = arith.constant dense<0.000000e+00> : vector<128x128xf32>
    %18 = tpu.matmul %16, %17, %cst_14 {dimension_numbers = #tpu.dot_dimension_numbers<[1], [0], [0], [1], [0, 0, 1, 1], [], []>} : vector<128x128xbf16>, vector<128x128xbf16>, vector<128x128xf32> -> vector<128x128xf32>
    %c0_15 = arith.constant 0 : index
    %c0_16 = arith.constant 0 : index
    %19 = vector.load %arg7[%c0_15, %c0_16] : memref<1x128xf32, #tpu.memory_space<vmem>>, vector<1x128xf32>
    %20 = vector.broadcast %19 : vector<1x128xf32> to vector<128x128xf32>
    %21 = arith.addf %18, %20 : vector<128x128xf32>
    %cst_17 = arith.constant 0.000000e+00 : f32
    %22 = vector.broadcast %cst_17 : f32 to vector<128x128xf32>
    %23 = arith.maximumf %21, %22 : vector<128x128xf32>
    %c0_18 = arith.constant 0 : index
    %c0_19 = arith.constant 0 : index
    %24 = vector.load %arg8[%c0_18, %c0_19] : memref<8x128xbf16, #tpu.memory_space<vmem>>, vector<8x128xbf16>
    %25 = arith.truncf %23 : vector<128x128xf32> to vector<128x128xbf16>
    %cst_20 = arith.constant dense<0.000000e+00> : vector<8x128xf32>
    %26 = tpu.matmul %24, %25, %cst_20 {dimension_numbers = #tpu.dot_dimension_numbers<[1], [1], [0], [0], [0, 0, 1, 0], [], []>} : vector<8x128xbf16>, vector<128x128xbf16>, vector<8x128xf32> -> vector<8x128xf32>
    %c0_21 = arith.constant 0 : index
    %c0_22 = arith.constant 0 : index
    %27 = memref.load %arg9[%c0_21, %c0_22] : memref<1x1xf32, #tpu.memory_space<smem>>
    %28 = vector.broadcast %27 : f32 to vector<8x128xf32>
    %29 = arith.addf %26, %28 : vector<8x128xf32>
    %30 = arith.negf %29 : vector<8x128xf32>
    %31 = math.exp %30 : vector<8x128xf32>
    %cst_23 = arith.constant 1.000000e+00 : f32
    %32 = vector.broadcast %cst_23 : f32 to vector<8x128xf32>
    %33 = arith.addf %32, %31 : vector<8x128xf32>
    %34 = arith.divf %32, %33 : vector<8x128xf32>
    %c0_24 = arith.constant 0 : index
    %c0_25 = arith.constant 0 : index
    %35 = vector.load %arg10[%c0_24, %c0_25] : memref<8x128xf32, #tpu.memory_space<vmem>>, vector<8x128xf32>
    tpu.vector_store %arg10[%c0_24, %c0_25], %34 {strides = array<i32>} : memref<8x128xf32, #tpu.memory_space<vmem>>, vector<8x128xf32>,
    return
  }
  func.func @transform_0(%arg0: i32) -> (i32, i32) {
    %c0_i32 = arith.constant 0 : i32
    %c0_i32_0 = arith.constant 0 : i32
    return %arg0, %c0_i32 : i32, i32
  }
  func.func @transform_1(%arg0: i32) -> (i32, i32) {
    %c0_i32 = arith.constant 0 : i32
    %c0_i32_0 = arith.constant 0 : i32
    %c0_i32_1 = arith.constant 0 : i32
    return %c0_i32, %c0_i32_0 : i32, i32
  }
  func.func @transform_2(%arg0: i32) -> (i32, i32) {
    %c0_i32 = arith.constant 0 : i32
    %c0_i32_0 = arith.constant 0 : i32
    %c0_i32_1 = arith.constant 0 : i32
    return %c0_i32, %c0_i32_0 : i32, i32
  }
  func.func @transform_3(%arg0: i32) -> (i32, i32) {
    %c0_i32 = arith.constant 0 : i32
    %c0_i32_0 = arith.constant 0 : i32
    %c0_i32_1 = arith.constant 0 : i32
    return %c0_i32, %c0_i32_0 : i32, i32
  }
  func.func @transform_4(%arg0: i32) -> (i32, i32) {
    %c0_i32 = arith.constant 0 : i32
    %c0_i32_0 = arith.constant 0 : i32
    %c0_i32_1 = arith.constant 0 : i32
    return %c0_i32, %c0_i32_0 : i32, i32
  }
  func.func @transform_5(%arg0: i32) -> (i32, i32) {
    %c0_i32 = arith.constant 0 : i32
    %c0_i32_0 = arith.constant 0 : i32
    %c0_i32_1 = arith.constant 0 : i32
    return %c0_i32, %c0_i32_0 : i32, i32
  }
  func.func @transform_6(%arg0: i32) -> (i32, i32) {
    %c0_i32 = arith.constant 0 : i32
    %c0_i32_0 = arith.constant 0 : i32
    %c0_i32_1 = arith.constant 0 : i32
    return %c0_i32, %c0_i32_0 : i32, i32
  }
  func.func @transform_7(%arg0: i32) -> (i32, i32) {
    %c0_i32 = arith.constant 0 : i32
    %c0_i32_0 = arith.constant 0 : i32
    %c0_i32_1 = arith.constant 0 : i32
    return %c0_i32, %c0_i32_0 : i32, i32
  }
  func.func @transform_8(%arg0: i32) -> (i32, i32) {
    %c0_i32 = arith.constant 0 : i32
    %c0_i32_0 = arith.constant 0 : i32
    %c0_i32_1 = arith.constant 0 : i32
    return %c0_i32, %c0_i32_0 : i32, i32
  }
  func.func @transform_9(%arg0: i32) -> (i32, i32) {
    %c0_i32 = arith.constant 0 : i32
    %c0_i32_0 = arith.constant 0 : i32
    return %c0_i32, %arg0 : i32, i32
  }
}

</mosaic_0001>

<bundles_post_ra>
// kernel: tpu_custom_call.1
= control target key start
LH: loop header
LB: loop body
LE: loop exit
PB: predicated region body
PF: predicated region fallthrough
CT: control target
= control target key end

     0   :  { %s12056_s0 = inlined_call_operand.hbm [shape: bf16[384,4352], index: 0, kind: input, shape index: {}]   ;;  %s12057_s1 = inlined_call_operand.hbm [shape: bf16[4352,256], index: 1, kind: input, shape index: {}]   ;;  %s12058_s2 = inlined_call_operand.hbm [shape: f32[1,256], index: 2, kind: input, shape index: {}]   ;;  %s12059_s3 = inlined_call_operand.hbm [shape: bf16[256,128], index: 3, kind: input, shape index: {}]   ;;  %s12060_s4 = inlined_call_operand.hbm [shape: f32[1,128], index: 4, kind: input, shape index: {}]   ;;  %s12061_s5 = inlined_call_operand.hbm [shape: bf16[128,128], index: 5, kind: input, shape index: {}]   ;;  %s12062_s6 = inlined_call_operand.hbm [shape: f32[1,128], index: 6, kind: input, shape index: {}]   ;;  %s12063_s7 = inlined_call_operand.hbm [shape: bf16[8,128], index: 7, kind: input, shape index: {}]   ;;  %s12064_s8 = inlined_call_operand.<no memory space> [shape: f32[1,1], index: 8, kind: input, shape index: {}]   ;;  %s12065_s9 = inlined_call_operand.hbm [shape: f32[8,384], index: 9, kind: output, shape index: {}]  }
   0x1   :  { %12069 = sst [smem:[#allocation24_spill]] %s12057_s1 }
   0x2   :  { %12070 = sst [smem:[#allocation25_spill]] %s12058_s2 }
   0x3   :  { %14 = sst [smem:[#allocation2]] %s12064_s8 }
   0x4   :  { %15 = vsyncpa [#allocation4], 0 }
   0x5   :  { %17 = vsyncpa [#allocation4 + $0x1], 0 }
   0x6   :  { %18 = vsyncpa [#allocation7], 0 }
   0x7   :  { %19 = vsyncpa [#allocation10], 0 }
   0x8   :  { %20 = vsyncpa [#allocation13], 0 }
   0x9   :  { %21 = vsyncpa [#allocation16], 0 }
   0xa   :  { %22 = vsyncpa [#allocation5], 0 }
   0xb   :  { %24 = vsyncpa [#allocation5 + $0x1], 0  ;;  %s11289_s11 = smov 0   ;;  %s11291_s12 = smov 0  }
   0xc   :  { %s11293_s13 = smov 0   ;;  %s11295_s14 = smov 0  }
   0xd LB: > { %s11219_s8 = smov [#allocation6]   ;;  %s11310_s16 = sadd.s32 4294967295, %s11217_s14   ;;  %s11217_s14 = sphi %s11295_s14, %s12095_s14   ;;  %s11213_s13 = sphi %s11293_s13, %s12094_s13   ;;  %s11209_s12 = sphi %s11291_s12, %s12093_s12   ;;  %s11205_s11 = sphi %s11289_s11, %s12092_s11  }
   0xe   : > { %s267_s15 = sshll.u32 %s11219_s8, 4  ;;  %p7976_p0 = scmp.ge.s32.totalorder %s11217_s14, 1  ;;  %s11315_s15 = int_to_ptr.vmem [resolvable:$true] %s267_s15 }
   0xf   : > { %p12066_p1 = scmp.eq.s32.totalorder %s11310_s16, 0  ;;  %p255_p2 = scmp.lt.s32.totalorder %s11217_s14, 4 }
  0x10   : > { %s11220_s18 = smov [#allocation9]   ;;  %s11221_s21 = smov [#allocation12]  }
  0x11   : > { %p11317_p3 = pnand %p7976_p0, %p255_p2  ;;  %s291_s19 = sshll.u32 %s11220_s18, 4  ;;  %s11329_s19 = int_to_ptr.vmem [resolvable:$true] %s291_s19 }
  0x12   : > { %s11331_s22 = sshll.u32 %s11221_s21, 4  ;;  %s12073_s1 = sld [smem:[#allocation24_spill]]  ;;  %s316_s22 = int_to_ptr.vmem [resolvable:$true] %s11331_s22 }
  0x13   : > { %s12071_s17 = scalar_select %p11317_p3, 1, 0 }
  0x14   : > { %p9564_p4 = pneg %p11317_p3 }
  0x16   : > { %p11325_p5 = pnand %p9564_p4, %p12066_p1 }
  0x18   : > { %s10909_s25 = scalar_lea.hbm %s12073_s1, 69632  ;;  %p11341_p7 = pneg %p11325_p5 }
  0x19   : > { %p10910_p6 = scmp.ne.s32.totalorder %s12073_s1, %s10909_s25  ;;  %p10916_p10 = scmp.lt.u32.totalorder %s10909_s25, %s12073_s1 }
  0x1b   : > { %p10912_p8 = pnand %p11341_p7, %p10910_p6 }
  0x1d   : > { %p10913_p9 = pneg %p10912_p8 }
  0x1f   : > { %p10918_p11 = pnand %p10916_p10, %p10913_p9 }
  0x21   : > { %10921 = shalt.err (!%p10918_p11)
}
  0x22   : > { %s10922_s10 = scalar_lea.vmem %s11315_s15, 69632  ;;  %p10930_p2 = scmp.lt.s32.totalorder %s11315_s15, %s11315_s15 }
  0x23   : > { %p10923_p12 = scmp.ne.s32.totalorder %s11315_s15, %s10922_s10  ;;  %p10931_p4 = scmp.lt.s32.totalorder %s10922_s10, %s10922_s10 }
  0x25   : > { %p10925_p13 = pnand %p10923_p12, %p11341_p7  ;;  %p10932_p6 = por %p10931_p4, %p10930_p2 }
  0x27   : > { %p10926_p0 = pneg %p10925_p13 }
  0x29   : > { %p10933_p8 = pnand %p10932_p6, %p10926_p0 }
  0x2b   : > { %10936 = shalt.err (!%p10933_p8)
}
  0x2c   : > { %s11222_s8 = smov 128   ;;  %s11223_s18 = smov 8  }
  0x2d   : > { %9567 = dma.hbm_to_vmem [thread:$0]  (!%p11325_p5), %s12073_s1, 69632, %s11315_s15, [#allocation7], %s11222_s8, %s11222_s8, %s11223_s18  }
  0x2e   : > { %s10937_s26 = scalar_lea.hbm %s12059_s3, 2048 }
  0x2f   : > { %p10938_p9 = scmp.ne.s32.totalorder %s12059_s3, %s10937_s26  ;;  %p10944_p12 = scmp.lt.u32.totalorder %s10937_s26, %s12059_s3 }
  0x31   : > { %p10940_p10 = pnand %p10938_p9, %p11341_p7 }
  0x33   : > { %p10941_p11 = pneg %p10940_p10 }
  0x35   : > { %p10946_p13 = pnand %p10944_p12, %p10941_p11 }
  0x37   : > { %10949 = shalt.err (!%p10946_p13)
}
  0x38   : > { %s10950_s15 = scalar_lea.vmem %s11329_s19, 2048  ;;  %p10958_p6 = scmp.lt.s32.totalorder %s11329_s19, %s11329_s19 }
  0x39   : > { %p10951_p0 = scmp.ne.s32.totalorder %s11329_s19, %s10950_s15  ;;  %p10959_p8 = scmp.lt.s32.totalorder %s10950_s15, %s10950_s15 }
  0x3b   : > { %p10953_p2 = pnand %p10951_p0, %p11341_p7  ;;  %p10960_p9 = por %p10959_p8, %p10958_p6 }
  0x3d   : > { %p10954_p4 = pneg %p10953_p2 }
  0x3f   : > { %p10961_p10 = pnand %p10960_p9, %p10954_p4 }
  0x41   : > { %10964 = shalt.err (!%p10961_p10)
}
  0x42   : > { %s11224_s8 = smov 64   ;;  %s11225_s18 = smov 4  }
  0x43   : > { %9573 = dma.hbm_to_vmem [thread:$0]  (!%p11325_p5), %s12059_s3, 2048, %s11329_s19, [#allocation10], %s11224_s8, %s11224_s8, %s11225_s18  }
  0x44   : > { %s10965_s26 = scalar_lea.hbm %s12061_s5, 1024 }
  0x45   : > { %p10966_p11 = scmp.ne.s32.totalorder %s12061_s5, %s10965_s26  ;;  %p10972_p0 = scmp.lt.u32.totalorder %s10965_s26, %s12061_s5 }
  0x47   : > { %p10968_p12 = pnand %p10966_p11, %p11341_p7 }
  0x49   : > { %p10969_p13 = pneg %p10968_p12 }
  0x4b   : > { %p10974_p2 = pnand %p10972_p0, %p10969_p13 }
  0x4d   : > { %10977 = shalt.err (!%p10974_p2)
}
  0x4e   : > { %s10978_s15 = scalar_lea.vmem %s316_s22, 1024  ;;  %p10986_p9 = scmp.lt.s32.totalorder %s316_s22, %s316_s22 }
  0x4f   : > { %p10979_p4 = scmp.ne.s32.totalorder %s316_s22, %s10978_s15  ;;  %p10987_p10 = scmp.lt.s32.totalorder %s10978_s15, %s10978_s15 }
  0x51   : > { %p10981_p6 = pnand %p10979_p4, %p11341_p7  ;;  %p10988_p1 = por %p10987_p10, %p10986_p9 }
  0x53   : > { %p10982_p8 = pneg %p10981_p6 }
  0x55   : > { %p10989_p3 = pnand %p10988_p1, %p10982_p8 }
  0x57   : > { %10992 = shalt.err (!%p10989_p3)
}
  0x58   : > { %9579 = dma.hbm_to_vmem [thread:$0]  (!%p11325_p5), %s12061_s5, 1024, %s316_s22, [#allocation13], %s11224_s8, %s11224_s8, %s11225_s18  }
  0x59   : > { %s11226_s23 = smov [#allocation8]   ;;  %s11227_s25 = smov [#allocation11]  }
  0x5a   : > { %s281_s24 = sshll.u32 %s11226_s23, 4  ;;  %s305_s26 = sshll.u32 %s11227_s25, 4  ;;  %s282_s24 = int_to_ptr.vmem [resolvable:$true] %s281_s24  ;;  %s306_s26 = int_to_ptr.vmem [resolvable:$true] %s305_s26 }
  0x5b   : > { %s12075_s2 = sld [smem:[#allocation25_spill]] }
  0x61   : > { %s10993_s30 = scalar_lea.hbm %s12075_s2, 32 }
  0x62   : > { %p10994_p1 = scmp.ne.s32.totalorder %s12075_s2, %s10993_s30  ;;  %p11000_p12 = scmp.lt.u32.totalorder %s10993_s30, %s12075_s2 }
  0x64   : > { %p10996_p3 = pnand %p10994_p1, %p11341_p7 }
  0x66   : > { %p10997_p11 = pneg %p10996_p3 }
  0x68   : > { %p11002_p13 = pnand %p11000_p12, %p10997_p11 }
  0x6a   : > { %11005 = shalt.err (!%p11002_p13)
}
  0x6b   : > { %s11006_s22 = scalar_lea.vmem %s282_s24, 32  ;;  %p11014_p6 = scmp.lt.s32.totalorder %s282_s24, %s282_s24 }
  0x6c   : > { %p11007_p0 = scmp.ne.s32.totalorder %s282_s24, %s11006_s22  ;;  %p11015_p8 = scmp.lt.s32.totalorder %s11006_s22, %s11006_s22 }
  0x6e   : > { %p11009_p2 = pnand %p11007_p0, %p11341_p7  ;;  %p11016_p9 = por %p11015_p8, %p11014_p6 }
  0x70   : > { %p11010_p4 = pneg %p11009_p2 }
  0x72   : > { %p11017_p10 = pnand %p11016_p9, %p11010_p4 }
  0x74   : > { %11020 = shalt.err (!%p11017_p10)
}
  0x75   : > { %9570 = dma.hbm_to_vmem [thread:$0]  (!%p11325_p5), %s12075_s2, 32, %s282_s24, [#allocation7]  }
  0x76   : > { %s11021_s23 = scalar_lea.hbm %s12060_s4, 16 }
  0x77   : > { %p11022_p1 = scmp.ne.s32.totalorder %s12060_s4, %s11021_s23  ;;  %p11028_p12 = scmp.lt.u32.totalorder %s11021_s23, %s12060_s4 }
  0x79   : > { %p11024_p3 = pnand %p11022_p1, %p11341_p7 }
  0x7b   : > { %p11025_p11 = pneg %p11024_p3 }
  0x7d   : > { %p11030_p13 = pnand %p11028_p12, %p11025_p11 }
  0x7f   : > { %11033 = shalt.err (!%p11030_p13)
}
  0x80   : > { %s11034_s10 = scalar_lea.vmem %s306_s26, 16  ;;  %s11041_s24 = scalar_lea.vmem %s306_s26, 32 }
  0x81   : > { %p11035_p0 = scmp.ne.s32.totalorder %s306_s26, %s11034_s10  ;;  %p11042_p6 = scmp.lt.s32.totalorder %s306_s26, %s306_s26 }
  0x82   : > { %p11043_p8 = scmp.lt.s32.totalorder %s11041_s24, %s11034_s10 }
  0x83   : > { %p11037_p2 = pnand %p11035_p0, %p11341_p7 }
  0x84   : > { %p11044_p9 = por %p11043_p8, %p11042_p6 }
  0x85   : > { %p11038_p4 = pneg %p11037_p2 }
  0x87   : > { %p11045_p10 = pnand %p11044_p9, %p11038_p4 }
  0x89   : > { %11048 = shalt.err (!%p11045_p10)
}
  0x8a   : > { %9576 = dma.hbm_to_vmem [thread:$0]  (!%p11325_p5), %s12060_s4, 16, %s306_s26, [#allocation10]  }
  0x8b   : > { %s11228_s22 = smov [#allocation14]   ;;  %s11229_s18 = smov [#allocation15]  }
  0x8c   : > { %s329_s8 = sshll.u32 %s11228_s22, 4  ;;  %s340_s1 = sshll.u32 %s11229_s18, 4  ;;  %s330_s8 = int_to_ptr.vmem [resolvable:$true] %s329_s8  ;;  %s341_s1 = int_to_ptr.vmem [resolvable:$true] %s340_s1 }
  0x8d   : > { %s11049_s25 = scalar_lea.hbm %s12062_s6, 16 }
  0x8e   : > { %p11050_p1 = scmp.ne.s32.totalorder %s12062_s6, %s11049_s25  ;;  %p11056_p12 = scmp.lt.u32.totalorder %s11049_s25, %s12062_s6 }
  0x90   : > { %p11052_p3 = pnand %p11050_p1, %p11341_p7 }
  0x92   : > { %p11053_p11 = pneg %p11052_p3 }
  0x94   : > { %p11058_p13 = pnand %p11056_p12, %p11053_p11 }
  0x96   : > { %11061 = shalt.err (!%p11058_p13)
}
  0x97   : > { %s11062_s26 = scalar_lea.vmem %s330_s8, 16  ;;  %s11069_s24 = scalar_lea.vmem %s330_s8, 32 }
  0x98   : > { %p11063_p0 = scmp.ne.s32.totalorder %s330_s8, %s11062_s26  ;;  %p11070_p6 = scmp.lt.s32.totalorder %s330_s8, %s330_s8 }
  0x99   : > { %p11071_p8 = scmp.lt.s32.totalorder %s11069_s24, %s11062_s26 }
  0x9a   : > { %p11065_p2 = pnand %p11063_p0, %p11341_p7 }
  0x9b   : > { %p11072_p9 = por %p11071_p8, %p11070_p6 }
  0x9c   : > { %p11066_p4 = pneg %p11065_p2 }
  0x9e   : > { %p11073_p10 = pnand %p11072_p9, %p11066_p4 }
  0xa0   : > { %11076 = shalt.err (!%p11073_p10)
}
  0xa1   : > { %9582 = dma.hbm_to_vmem [thread:$0]  (!%p11325_p5), %s12062_s6, 16, %s330_s8, [#allocation13]  }
  0xa2   : > { %s11077_s21 = scalar_lea.hbm %s12063_s7, 64 }
  0xa3   : > { %p11078_p1 = scmp.ne.s32.totalorder %s12063_s7, %s11077_s21  ;;  %p11084_p12 = scmp.lt.u32.totalorder %s11077_s21, %s12063_s7 }
  0xa5   : > { %p11080_p3 = pnand %p11078_p1, %p11341_p7 }
  0xa7   : > { %p11081_p11 = pneg %p11080_p3 }
  0xa9   : > { %p11086_p13 = pnand %p11084_p12, %p11081_p11 }
  0xab   : > { %11089 = shalt.err (!%p11086_p13)
}
  0xac   : > { %s11090_s30 = scalar_lea.vmem %s341_s1, 64  ;;  %p11098_p6 = scmp.lt.s32.totalorder %s341_s1, %s341_s1 }
  0xad   : > { %p11091_p0 = scmp.ne.s32.totalorder %s341_s1, %s11090_s30  ;;  %p11099_p8 = scmp.lt.s32.totalorder %s11090_s30, %s11090_s30 }
  0xaf   : > { %p11093_p2 = pnand %p11091_p0, %p11341_p7  ;;  %p11100_p9 = por %p11099_p8, %p11098_p6 }
  0xb1   : > { %p11094_p4 = pneg %p11093_p2 }
  0xb3   : > { %p11101_p10 = pnand %p11100_p9, %p11094_p4 }
  0xb5   : > { %11104 = shalt.err (!%p11101_p10)
}
  0xb6   : > { %9585 = dma.hbm_to_vmem [thread:$0]  (!%p11325_p5), %s12063_s7, 64, %s341_s1, [#allocation16]  }
  0xb7   : > { %s7975_s28 = sadd.s32 4294967294, %s11217_s14   ;;  %s11478_s20 = sadd.s32 1, %s11217_s14  }
  0xb8   : > { %s37_s26 = sadd.s32 1, %s11213_s13  ;;  %s34_s24 = ssub.s32 %s11217_s14, %s11478_s20 }
  0xb9   : > { %p44_p7 = scmp.ne.s32.totalorder %s11213_s13, %s11209_s12  ;;  %p35_p1 = scmp.eq.s32.totalorder %s34_s24, 0 }
  0xba   : > { %p45_p3 = scmp.eq.s32.totalorder %s11217_s14, 0  ;;  %p50_p11 = scmp.ne.s32.totalorder %s11209_s12, %s11205_s11 }
  0xbb   : > { %p242_p12 = scmp.eq.s32.totalorder %s11310_s16, 2  ;;  %p12076_p0 = scmp.eq.s32.totalorder %s11310_s16, 0 }
  0xbc   : > { %s11490_s15 = scalar_select %p35_p1, %s11213_s13, %s37_s26  }
  0xbd   : > { %p46_p13 = por %p45_p3, %p44_p7  ;;  %p11494_p2 = por %p12076_p0, %p50_p11 }
  0xbe   : > { %p11498_p5 = por %p242_p12, %p44_p7  ;;  %p248_p4 = scmp.eq.s32.totalorder %s7975_s28, 2 }
  0xbf   : > { %p9601_p6 = scmp.lt.s32.totalorder %s11217_s14, 3  ;;  %s354_s22 = sand.u32 1, %s11213_s13  }
  0xc0   : > { %s12078_s1 = scalar_select %p11498_p5, 1, 0 }
  0xc1   : > { %p11504_p8 = por %p248_p4, %p50_p11  ;;  %s9529_s21 = smul.u32 2176, %s354_s22 }
  0xc2   : > { %p11508_p9 = pnand %p9601_p6, %p46_p13  ;;  %s9530_s25 = smul.u32 34816, %s11217_s14 }
  0xc3   : > { %s12079_s18 = scalar_select %p11504_p8, 1, 0 }
  0xc4   : > { %s11516_s30 = scalar_lea.hbm %s12056_s0, %s9530_s25  ;;  %s358_s8 = scalar_lea.vmem [#allocation3], %s9529_s21 }
  0xc5   : > { %s366_s10 = sshll.u32 %s358_s8, 4  ;;  %s11520_s28 = scalar_lea.sflag [#allocation4], %s354_s22  ;;  %s11518_s10 = int_to_ptr.vmem [resolvable:$true] %s366_s10 }
  0xc6   : > { %s11105_s26 = scalar_lea.hbm %s11516_s30, 34816  ;;  %p11107_p7 = pneg %p11508_p9 }
  0xc7   : > { %p11106_p10 = scmp.ne.s32.totalorder %s11516_s30, %s11105_s26  ;;  %s11110_s27 = scalar_lea.hbm %s12056_s0, 104448 }
  0xc8   : > { %p11111_p11 = scmp.lt.u32.totalorder %s11516_s30, %s12056_s0  ;;  %p11112_p12 = scmp.lt.u32.totalorder %s11110_s27, %s11105_s26 }
  0xc9   : > { %p11108_p1 = pnand %p11107_p7, %p11106_p10  ;;  %p11114_p0 = scmp.lt.u32.totalorder %s11105_s26, %s11516_s30 }
  0xca   : > { %p11113_p13 = por %p11112_p12, %p11111_p11 }
  0xcb   : > { %p11109_p3 = pneg %p11108_p1 }
  0xcc   : > { %p11115_p4 = por %p11114_p0, %p11113_p13 }
  0xce   : > { %p11116_p6 = pnand %p11115_p4, %p11109_p3 }
  0xd0   : > { %11119 = shalt.err (!%p11116_p6)
}
  0xd1   : > { %s11120_s22 = scalar_lea.vmem %s11518_s10, 34816  ;;  %s11230_s21 = smov [#allocation3]  }
  0xd2   : > { %p11121_p10 = scmp.ne.s32.totalorder %s11518_s10, %s11120_s22  ;;  %s11125_s8 = sshll.u32 %s11230_s21, 4  ;;  %s11126_s8 = int_to_ptr.vmem [resolvable:$false] %s11125_s8 }
  0xd3   : > { %s11127_s2 = scalar_lea.vmem %s11126_s8, 69632  ;;  %p11128_p5 = scmp.lt.s32.totalorder %s11518_s10, %s11126_s8 }
  0xd4   : > { %p11123_p1 = pnand %p11121_p10, %p11107_p7  ;;  %p11129_p11 = scmp.lt.s32.totalorder %s11127_s2, %s11120_s22 }
  0xd6   : > { %p11124_p8 = pneg %p11123_p1  ;;  %p11130_p12 = por %p11129_p11, %p11128_p5 }
  0xd8   : > { %p11131_p13 = pnand %p11130_p12, %p11124_p8 }
  0xda   : > { %11134 = shalt.err (!%p11131_p13)
}
  0xdb   : > { %s11231_s26 = smov 2176   ;;  %s11232_s24 = smov 136  }
  0xdc   : > { %9589 = dma.hbm_to_vmem [thread:$0]  (!%p11508_p9), %s11516_s30, 34816, %s11518_s10, %s11520_s28, %s11231_s26, %s11231_s26, %s11232_s24  }
  0xdd   : > { %p12081_p7 = scmp.ne.s32.totalorder %s12071_s17, 0 }
  0xde   : > { %s11551_s25 = sand.u32 (!%p12081_p7), 1, %s11209_s12  }
  0xdf   : > { %378 = sbr.rel (%p12081_p7) target bundleno = 1877 (0x755), region = 56  ;;  %s381_s29 = scalar_lea.sflag (!%p12081_p7), [#allocation4], %s11551_s25 }
  0xe0   : > { %s9531_s27 = smul.u32 (!%p12081_p7), 2176, %s11551_s25 }
  0xe2   : > { %s11555_s22 = scalar_lea.vmem (!%p12081_p7), [#allocation3], %s9531_s27 }
  0xe6   : > { %11180 = dma.done.wait (%p11494_p2), %s381_s29, 34816  }
  0xe7   : > { %11182 = vsyncadd (%p11494_p2), %s381_s29, 4294932480  ;;  %p12082_p5 = scmp.eq.s32.totalorder %s11310_s16, 0 }
  0xe9   : > { %11184 = dma.done.wait (%p12082_p5), [#allocation7], 69664   ;;  %p12083_p8 = pmov %p12082_p5 }
  0xea   : > { %p12084_p9 = pmov %p12082_p5 }
  0xeb   : > { %11186 = vsyncadd (%p12083_p8), [#allocation7], 4294897632 }
  0xec   : > { %11188 = dma.done.wait (%p12084_p9), [#allocation10], 2064   ;;  %p12085_p3 = pmov %p12082_p5 }
  0xee   : > { %11190 = vsyncadd (%p12085_p3), [#allocation10], 4294965232  ;;  %p12086_p0 = pmov %p12085_p3 }
  0xf0   : > { %11192 = dma.done.wait (%p12086_p0), [#allocation13], 1040   ;;  %p12087_p4 = pmov %p12086_p0 }
  0xf1   : > { %p12088_p2 = pmov %p12086_p0 }
  0xf2   : > { %11194 = vsyncadd (%p12087_p4), [#allocation13], 4294966256 }
  0xf3   : > { %11196 = dma.done.wait (%p12088_p2), [#allocation16], 64   ;;  %p12089_p6 = pmov %p12086_p0 }
  0xf4   : > { %v9657_v0 = vld [vmem:[#allocation6 + $0x4] ss:$8 sps:$4 sm:$0xff]   ;;  %v9661_v2 = vld [vmem:[#allocation6] ss:$8 sps:$4 sm:$0xff]   ;;  %v9663_v4 = vld [vmem:[#allocation6 + $0x14] ss:$8 sps:$4 sm:$0xff]  }
  0xf5   : > { %11198 = vsyncadd (%p12089_p6), [#allocation16], 4294967232  ;;  %v9659_v1 = vld [vmem:[#allocation6 + $0x704] ss:$8 sps:$4 sm:$0xff]   ;;  %5357 = vmatprep.subr.bf16.mxu1 %v9657_v0  ;;  %v9662_v3 = vld [vmem:[#allocation6 + $0x700] ss:$8 sps:$4 sm:$0xff]  }
  0xf6   : > { %6148 = vmatprep.subr.bf16.mxu0 %v9659_v1  ;;  %5358 = vmatpush1.bf16.msra.mxu1 %v9661_v2  ;;  %v9665_v5 = vld [vmem:[#allocation6 + $0x714] ss:$8 sps:$4 sm:$0xff]   ;;  %v9667_v6 = vld [vmem:[#allocation6 + $0x10] ss:$8 sps:$4 sm:$0xff]   ;;  %v9669_v8 = vld [vmem:[#allocation6 + $0x24] ss:$8 sps:$4 sm:$0xff]  }
  0xf7   : > { %6149 = vmatpush1.bf16.msra.mxu0 %v9662_v3  ;;  %5359 = vmatprep.subr.bf16.mxu1 %v9663_v4  ;;  %v9668_v7 = vld [vmem:[#allocation6 + $0x710] ss:$8 sps:$4 sm:$0xff]   ;;  %v9671_v9 = vld [vmem:[#allocation6 + $0x724] ss:$8 sps:$4 sm:$0xff]   ;;  %v9673_v10 = vld [vmem:[#allocation6 + $0x20] ss:$8 sps:$4 sm:$0xff]  }
  0xf8   : > { %6150 = vmatprep.subr.bf16.mxu0 %v9665_v5  ;;  %v9674_v11 = vld [vmem:[#allocation6 + $0x720] ss:$8 sps:$4 sm:$0xff]   ;;  %v9675_v12 = vld [vmem:[#allocation6 + $0x34] ss:$8 sps:$4 sm:$0xff]   ;;  %v9679_v14 = vld [vmem:[#allocation6 + $0x30] ss:$8 sps:$4 sm:$0xff]  }
  0xf9   : > { %v9677_v13 = vld [vmem:[#allocation6 + $0x734] ss:$8 sps:$4 sm:$0xff]   ;;  %v9680_v15 = vld [vmem:[#allocation6 + $0x730] ss:$8 sps:$4 sm:$0xff]   ;;  %v9681_v16 = vld [vmem:[#allocation6 + $0x44] ss:$8 sps:$4 sm:$0xff]  }
  0xfa   : > { %5360 = vmatpush1.bf16.msra.mxu1 %v9667_v6  ;;  %v9683_v17 = vld [vmem:[#allocation6 + $0x744] ss:$8 sps:$4 sm:$0xff]   ;;  %v9685_v18 = vld [vmem:[#allocation6 + $0x40] ss:$8 sps:$4 sm:$0xff]   ;;  %v9687_v20 = vld [vmem:[#allocation6 + $0x54] ss:$8 sps:$4 sm:$0xff]  }
  0xfb   : > { %6151 = vmatpush1.bf16.msra.mxu0 %v9668_v7  ;;  %5361 = vmatprep.subr.bf16.mxu1 %v9669_v8  ;;  %v9686_v19 = vld [vmem:[#allocation6 + $0x740] ss:$8 sps:$4 sm:$0xff]   ;;  %v9689_v21 = vld [vmem:[#allocation6 + $0x754] ss:$8 sps:$4 sm:$0xff]   ;;  %v9691_v22 = vld [vmem:[#allocation6 + $0x50] ss:$8 sps:$4 sm:$0xff]  }
  0xfc   : > { %6152 = vmatprep.subr.bf16.mxu0 %v9671_v9  ;;  %v9692_v23 = vld [vmem:[#allocation6 + $0x750] ss:$8 sps:$4 sm:$0xff]   ;;  %v9693_v24 = vld [vmem:[#allocation6 + $0x64] ss:$8 sps:$4 sm:$0xff]   ;;  %v9697_v26 = vld [vmem:[#allocation6 + $0x60] ss:$8 sps:$4 sm:$0xff]  }
  0xfd   : > { %v9695_v25 = vld [vmem:[#allocation6 + $0x764] ss:$8 sps:$4 sm:$0xff]   ;;  %v9698_v27 = vld [vmem:[#allocation6 + $0x760] ss:$8 sps:$4 sm:$0xff]   ;;  %v9699_v28 = vld [vmem:[#allocation6 + $0x74] ss:$8 sps:$4 sm:$0xff]  }
  0xfe   : > { %5362 = vmatpush1.bf16.msra.mxu1 %v9673_v10  ;;  %v9701_v29 = vld [vmem:[#allocation6 + $0x774] ss:$8 sps:$4 sm:$0xff]   ;;  %v9703_v30 = vld [vmem:[#allocation6 + $0x70] ss:$8 sps:$4 sm:$0xff]   ;;  %v9705_v32 = vld [vmem:[#allocation6 + $0x84] ss:$8 sps:$4 sm:$0xff]  }
  0xff   : > { %6153 = vmatpush1.bf16.msra.mxu0 %v9674_v11  ;;  %5363 = vmatprep.subr.bf16.mxu1 %v9675_v12  ;;  %v9704_v31 = vld [vmem:[#allocation6 + $0x770] ss:$8 sps:$4 sm:$0xff]   ;;  %v9707_v33 = vld [vmem:[#allocation6 + $0x784] ss:$8 sps:$4 sm:$0xff]   ;;  %v9709_v34 = vld [vmem:[#allocation6 + $0x80] ss:$8 sps:$4 sm:$0xff]  }
 0x100   : > { %6154 = vmatprep.subr.bf16.mxu0 %v9677_v13  ;;  %v9710_v35 = vld [vmem:[#allocation6 + $0x780] ss:$8 sps:$4 sm:$0xff]   ;;  %v9711_v36 = vld [vmem:[#allocation6 + $0x94] ss:$8 sps:$4 sm:$0xff]   ;;  %v9715_v38 = vld [vmem:[#allocation6 + $0x90] ss:$8 sps:$4 sm:$0xff]  }
 0x101   : > { %v9713_v37 = vld [vmem:[#allocation6 + $0x794] ss:$8 sps:$4 sm:$0xff]   ;;  %v9716_v39 = vld [vmem:[#allocation6 + $0x790] ss:$8 sps:$4 sm:$0xff]   ;;  %v9717_v40 = vld [vmem:[#allocation6 + $0xa4] ss:$8 sps:$4 sm:$0xff]  }
 0x102   : > { %5364 = vmatpush1.bf16.msra.mxu1 %v9679_v14  ;;  %v9719_v41 = vld [vmem:[#allocation6 + $0x7a4] ss:$8 sps:$4 sm:$0xff]   ;;  %v9721_v42 = vld [vmem:[#allocation6 + $0xa0] ss:$8 sps:$4 sm:$0xff]   ;;  %v9723_v44 = vld [vmem:[#allocation6 + $0xb4] ss:$8 sps:$4 sm:$0xff]  }
 0x103   : > { %6155 = vmatpush1.bf16.msra.mxu0 %v9680_v15  ;;  %5365 = vmatprep.subr.bf16.mxu1 %v9681_v16  ;;  %v9722_v43 = vld [vmem:[#allocation6 + $0x7a0] ss:$8 sps:$4 sm:$0xff]   ;;  %v9725_v45 = vld [vmem:[#allocation6 + $0x7b4] ss:$8 sps:$4 sm:$0xff]   ;;  %v9727_v46 = vld [vmem:[#allocation6 + $0xb0] ss:$8 sps:$4 sm:$0xff]  }
 0x104   : > { %6156 = vmatprep.subr.bf16.mxu0 %v9683_v17  ;;  %v9728_v47 = vld [vmem:[#allocation6 + $0x7b0] ss:$8 sps:$4 sm:$0xff]   ;;  %v9729_v48 = vld [vmem:[#allocation6 + $0xc4] ss:$8 sps:$4 sm:$0xff]   ;;  %v9733_v52 = vld [vmem:[#allocation6 + $0xc0] ss:$8 sps:$4 sm:$0xff]  }
 0x105   : > { %v9755_v49 = vld [vmem:[%s11555_s22 + $0x4] ss:$136 sps:$4 sm:$0xff]   ;;  %v9734_v53 = vld [vmem:[#allocation6 + $0x7c0] ss:$8 sps:$4 sm:$0xff]   ;;  %v9735_v54 = vld [vmem:[#allocation6 + $0xd4] ss:$8 sps:$4 sm:$0xff]  }
 0x106   : > { %5366 = vmatpush1.bf16.msra.mxu1 %v9685_v18  ;;  %v9731_v50 = vld [vmem:[#allocation6 + $0x7c4] ss:$8 sps:$4 sm:$0xff]   ;;  %5389 = vmatprep.mubr.bf16.mxu1 %v9755_v49  ;;  %v9737_v55 = vld [vmem:[#allocation6 + $0x7d4] ss:$8 sps:$4 sm:$0xff]   ;;  %v9739_v56 = vld [vmem:[#allocation6 + $0xd0] ss:$8 sps:$4 sm:$0xff]  }
 0x107   : > { %6157 = vmatpush1.bf16.msra.mxu0 %v9686_v19  ;;  %5367 = vmatprep.subr.bf16.mxu1 %v9687_v20  ;;  %v9758_v51 = vld [vmem:[%s11555_s22 + $0x3c] ss:$136 sps:$4 sm:$0xff]   ;;  %v9740_v57 = vld [vmem:[#allocation6 + $0x7d0] ss:$8 sps:$4 sm:$0xff]   ;;  %v9745_v60 = vld [vmem:[#allocation6 + $0xe0] ss:$8 sps:$4 sm:$0xff]  }
 0x108   : > { %6158 = vmatprep.subr.bf16.mxu0 %v9689_v21  ;;  %6180 = vmatprep.mubr.bf16.mxu0 %v9758_v51  ;;  %v9741_v58 = vld [vmem:[#allocation6 + $0xe4] ss:$8 sps:$4 sm:$0xff]   ;;  %v9746_v61 = vld [vmem:[#allocation6 + $0x7e0] ss:$8 sps:$4 sm:$0xff]   ;;  %v9747_v62 = vld [vmem:[#allocation6 + $0xf4] ss:$8 sps:$4 sm:$0xff]  }
 0x109   : > { %v9743_v59 = vld [vmem:[#allocation6 + $0x7e4] ss:$8 sps:$4 sm:$0xff]   ;;  %v9749_v63 = vld [vmem:[#allocation6 + $0x7f4] ss:$8 sps:$4 sm:$0xff]   ;;  %v9751_v0 = vld [vmem:[#allocation6 + $0xf0] ss:$8 sps:$4 sm:$0xff]  }
 0x10a   : > { %5368 = vmatpush1.bf16.msra.mxu1 %v9691_v22  ;;  %v9752_v1 = vld [vmem:[#allocation6 + $0x7f0] ss:$8 sps:$4 sm:$0xff]   ;;  %v9761_v2 = vld [vmem:[#allocation6 + $0x104] ss:$8 sps:$4 sm:$0xff]   ;;  %v9753_v4 = vld [vmem:[%s11555_s22] ss:$136 sps:$4 sm:$0xff]  }
 0x10b   : > { %6159 = vmatpush1.bf16.msra.mxu0 %v9692_v23  ;;  %5369 = vmatprep.subr.bf16.mxu1 %v9693_v24  ;;  %v9764_v3 = vld [vmem:[#allocation6 + $0x804] ss:$8 sps:$4 sm:$0xff]   ;;  %v9756_v5 = vld [vmem:[%s11555_s22 + $0x38] ss:$136 sps:$4 sm:$0xff]   ;;  %v9767_v8 = vld [vmem:[#allocation6 + $0x114] ss:$8 sps:$4 sm:$0xff]  }
 0x10c   : > { %6160 = vmatprep.subr.bf16.mxu0 %v9695_v25  ;;  %v9759_v6 = vld [vmem:[#allocation6 + $0x100] ss:$8 sps:$4 sm:$0xff]   ;;  %v9770_v9 = vld [vmem:[#allocation6 + $0x814] ss:$8 sps:$4 sm:$0xff]   ;;  %v9765_v12 = vld [vmem:[#allocation6 + $0x110] ss:$8 sps:$4 sm:$0xff]  }
 0x10d   : > { %v9762_v7 = vld [vmem:[#allocation6 + $0x800] ss:$8 sps:$4 sm:$0xff]   ;;  %v9771_v10 = vld [vmem:[%s11555_s22 + $0x114] ss:$136 sps:$4 sm:$0xff]   ;;  %v9768_v13 = vld [vmem:[#allocation6 + $0x810] ss:$8 sps:$4 sm:$0xff]  }
 0x10e   : > { %5370 = vmatpush1.bf16.msra.mxu1 %v9697_v26  ;;  %v9773_v11 = vld [vmem:[%s11555_s22 + $0x14c] ss:$136 sps:$4 sm:$0xff]   ;;  %v9775_v16 = vld [vmem:[%s11555_s22 + $0x110] ss:$136 sps:$4 sm:$0xff]   ;;  %v9776_v17 = vld [vmem:[#allocation6 + $0x120] ss:$8 sps:$4 sm:$0xff]  }
 0x10f   : > { %6161 = vmatpush1.bf16.msra.mxu0 %v9698_v27  ;;  %5371 = vmatprep.subr.bf16.mxu1 %v9699_v28  ;;  %v9778_v14 = vld [vmem:[#allocation6 + $0x124] ss:$8 sps:$4 sm:$0xff]   ;;  %v9779_v18 = vld [vmem:[%s11555_s22 + $0x148] ss:$136 sps:$4 sm:$0xff]   ;;  %v9785_v20 = vld [vmem:[#allocation6 + $0x134] ss:$8 sps:$4 sm:$0xff]  }
 0x110   : > { %6162 = vmatprep.subr.bf16.mxu0 %v9701_v29  ;;  %v9782_v15 = vld [vmem:[#allocation6 + $0x824] ss:$8 sps:$4 sm:$0xff]   ;;  %v9780_v19 = vld [vmem:[#allocation6 + $0x820] ss:$8 sps:$4 sm:$0xff]   ;;  %v9788_v21 = vld [vmem:[#allocation6 + $0x834] ss:$8 sps:$4 sm:$0xff]  }
 0x111   : > { %v9789_v22 = vld [vmem:[%s11555_s22 + $0x224] ss:$136 sps:$4 sm:$0xff]   ;;  %v9783_v24 = vld [vmem:[#allocation6 + $0x130] ss:$8 sps:$4 sm:$0xff]   ;;  %v9793_v28 = vld [vmem:[%s11555_s22 + $0x220] ss:$136 sps:$4 sm:$0xff]  }
 0x112   : > { %5372 = vmatpush1.bf16.msra.mxu1 %v9703_v30  ;;  %v9791_v23 = vld [vmem:[%s11555_s22 + $0x25c] ss:$136 sps:$4 sm:$0xff]   ;;  %v9786_v25 = vld [vmem:[#allocation6 + $0x830] ss:$8 sps:$4 sm:$0xff]   ;;  %v9794_v29 = vld [vmem:[#allocation6 + $0x140] ss:$8 sps:$4 sm:$0xff]  }
 0x113   : > { %6163 = vmatpush1.bf16.msra.mxu0 %v9704_v31  ;;  %5373 = vmatprep.subr.bf16.mxu1 %v9705_v32  ;;  %v9796_v26 = vld [vmem:[#allocation6 + $0x144] ss:$8 sps:$4 sm:$0xff]   ;;  %v9797_v30 = vld [vmem:[%s11555_s22 + $0x258] ss:$136 sps:$4 sm:$0xff]   ;;  %v9803_v32 = vld [vmem:[#allocation6 + $0x154] ss:$8 sps:$4 sm:$0xff]  }
 0x114   : > { %6164 = vmatprep.subr.bf16.mxu0 %v9707_v33  ;;  %v9800_v27 = vld [vmem:[#allocation6 + $0x844] ss:$8 sps:$4 sm:$0xff]   ;;  %v9798_v31 = vld [vmem:[#allocation6 + $0x840] ss:$8 sps:$4 sm:$0xff]   ;;  %v9806_v33 = vld [vmem:[#allocation6 + $0x854] ss:$8 sps:$4 sm:$0xff]  }
 0x115   : > { %v9822_v49 = vld [vmem:[#allocation6 + $0x870] ss:$8 sps:$4 sm:$0xff]   ;;  %v9836_v51 = vld [vmem:[#allocation6 + $0x884] ss:$8 sps:$4 sm:$0xff]   ;;  %vm11234_vm0 = vmmov 0   ;;  %s7775_s17 = sld [smem:[#allocation2]] }
 0x116   : > { %5374 = vmatpush1.bf16.msra.mxu1 %v9709_v34  ;;  %v9807_v34 = vld [vmem:[%s11555_s22 + $0x334] ss:$136 sps:$4 sm:$0xff]   ;;  %s7996_s19 = sshll.u32 %s11551_s25, 3  ;;  %s8841_s23 = sshll.u32 %s11310_s16, 7 }
 0x117   : > { %6165 = vmatpush1.bf16.msra.mxu0 %v9710_v35  ;;  %5375 = vmatprep.subr.bf16.mxu1 %v9711_v36  ;;  %v9809_v35 = vld [vmem:[%s11555_s22 + $0x36c] ss:$136 sps:$4 sm:$0xff]   ;;  %v9801_v36 = vld [vmem:[#allocation6 + $0x150] ss:$8 sps:$4 sm:$0xff]   ;;  %s446_s30 = scalar_lea.vmem [#allocation17], %s7996_s19  ;;  %s12013_s8 = scalar_lea.hbm %s12065_s9, %s8841_s23 }
 0x118   : > { %6166 = vmatprep.subr.bf16.mxu0 %v9713_v37  ;;  %v9804_v37 = vld [vmem:[#allocation6 + $0x850] ss:$8 sps:$4 sm:$0xff]   ;;  %s7838_s10 = sshll.u32 %s446_s30, 4  ;;  %s7825_s2 = scalar_lea.sflag [#allocation5], %s11551_s25  ;;  %s12015_s10 = int_to_ptr.vmem [resolvable:$true] %s7838_s10 }
 0x119   : > { %s11135_s26 = scalar_lea.vmem %s12015_s10, 128  ;;  %p12090_p1 = scmp.ne.s32.totalorder %s12078_s1, 0 }
 0x11a   : > { %5376 = vmatpush1.bf16.msra.mxu1 %v9715_v38  ;;  %v9814_v38 = vld [vmem:[#allocation6 + $0x164] ss:$8 sps:$4 sm:$0xff]   ;;  %p11136_p10 = scmp.ne.s32.totalorder %s12015_s10, %s11135_s26  ;;  %s11235_s16 = smov [#allocation17]  }
 0x11b   : > { %6167 = vmatpush1.bf16.msra.mxu0 %v9716_v39  ;;  %5377 = vmatprep.subr.bf16.mxu1 %v9717_v40  ;;  %v9818_v39 = vld [vmem:[#allocation6 + $0x864] ss:$8 sps:$4 sm:$0xff]   ;;  %v9811_v40 = vld [vmem:[%s11555_s22 + $0x330] ss:$136 sps:$4 sm:$0xff]   ;;  %s11139_s24 = sshll.u32 %s11235_s16, 4  ;;  %s11140_s24 = int_to_ptr.vmem [resolvable:$false] %s11139_s24 }
 0x11c   : > { %6168 = vmatprep.subr.bf16.mxu0 %v9719_v41  ;;  %v9812_v41 = vld [vmem:[#allocation6 + $0x160] ss:$8 sps:$4 sm:$0xff]   ;;  %p11137_p11 = pnand %p11136_p10, %p12090_p1  ;;  %s11141_s27 = scalar_lea.vmem %s11140_s24, 256 }
 0x11d   : > { %p11142_p13 = scmp.lt.s32.totalorder %s12015_s10, %s11140_s24  ;;  %p11143_p7 = scmp.lt.s32.totalorder %s11141_s27, %s11135_s26 }
 0x11e   : > { %5378 = vmatpush1.bf16.msra.mxu1 %v9721_v42  ;;  %v9815_v42 = vld [vmem:[%s11555_s22 + $0x368] ss:$136 sps:$4 sm:$0xff]   ;;  %p11138_p12 = pneg %p11137_p11 }
 0x11f   : > { %6169 = vmatpush1.bf16.msra.mxu0 %v9722_v43  ;;  %5379 = vmatprep.subr.bf16.mxu1 %v9723_v44  ;;  %v9816_v43 = vld [vmem:[#allocation6 + $0x860] ss:$8 sps:$4 sm:$0xff]   ;;  %v9821_v44 = vld [vmem:[#allocation6 + $0x174] ss:$8 sps:$4 sm:$0xff]   ;;  %p11144_p5 = por %p11143_p7, %p11142_p13 }
 0x120   : > { %6170 = vmatprep.subr.bf16.mxu0 %v9725_v45  ;;  %v9824_v45 = vld [vmem:[#allocation6 + $0x874] ss:$8 sps:$4 sm:$0xff]  }
 0x121   : > { %p11145_p8 = pnand %p11144_p5, %p11138_p12 }
 0x122   : > { %5380 = vmatpush1.bf16.msra.mxu1 %v9727_v46  ;;  %v9825_v46 = vld [vmem:[%s11555_s22 + $0x444] ss:$136 sps:$4 sm:$0xff]  }
 0x123   : > { %6171 = vmatpush1.bf16.msra.mxu0 %v9728_v47  ;;  %5381 = vmatprep.subr.bf16.mxu1 %v9729_v48  ;;  %v9827_v47 = vld [vmem:[%s11555_s22 + $0x47c] ss:$136 sps:$4 sm:$0xff]   ;;  %v9819_v48 = vld [vmem:[#allocation6 + $0x170] ss:$8 sps:$4 sm:$0xff]  }
 0x124   : > { %6172 = vmatprep.subr.bf16.mxu0 %v9731_v50  ;;  %v9832_v50 = vld [vmem:[#allocation6 + $0x184] ss:$8 sps:$4 sm:$0xff]  }
 0x126   : > { %5382 = vmatpush1.bf16.msra.mxu1 %v9733_v52  ;;  %v9829_v52 = vld [vmem:[%s11555_s22 + $0x440] ss:$136 sps:$4 sm:$0xff]  }
 0x127   : > { %6173 = vmatpush1.bf16.msra.mxu0 %v9734_v53  ;;  %5383 = vmatprep.subr.bf16.mxu1 %v9735_v54  ;;  %v9830_v53 = vld [vmem:[#allocation6 + $0x180] ss:$8 sps:$4 sm:$0xff]  }
 0x128   : > { %6174 = vmatprep.subr.bf16.mxu0 %v9737_v55  ;;  %v9833_v54 = vld [vmem:[%s11555_s22 + $0x478] ss:$136 sps:$4 sm:$0xff]  }
 0x129   : > { %v9834_v55 = vld [vmem:[#allocation6 + $0x880] ss:$8 sps:$4 sm:$0xff]  }
 0x12a   : > { %5384 = vmatpush1.bf16.msra.mxu1 %v9739_v56  ;;  %v9839_v56 = vld [vmem:[#allocation6 + $0x194] ss:$8 sps:$4 sm:$0xff]  }
 0x12b   : > { %6175 = vmatpush1.bf16.msra.mxu0 %v9740_v57  ;;  %5385 = vmatprep.subr.bf16.mxu1 %v9741_v58  ;;  %v9842_v57 = vld [vmem:[#allocation6 + $0x894] ss:$8 sps:$4 sm:$0xff]  }
 0x12c   : > { %6176 = vmatprep.subr.bf16.mxu0 %v9743_v59  ;;  %v9843_v58 = vld [vmem:[%s11555_s22 + $0x554] ss:$136 sps:$4 sm:$0xff]  }
 0x12d   : > { %v9845_v59 = vld [vmem:[%s11555_s22 + $0x58c] ss:$136 sps:$4 sm:$0xff]  }
 0x12e   : > { %5386 = vmatpush1.bf16.msra.mxu1 %v9745_v60  ;;  %v9837_v60 = vld [vmem:[#allocation6 + $0x190] ss:$8 sps:$4 sm:$0xff]  }
 0x12f   : > { %6177 = vmatpush1.bf16.msra.mxu0 %v9746_v61  ;;  %5387 = vmatprep.subr.bf16.mxu1 %v9747_v62  ;;  %v9840_v61 = vld [vmem:[#allocation6 + $0x890] ss:$8 sps:$4 sm:$0xff]   ;;  %v9850_v62 = vld [vmem:[#allocation6 + $0x1a4] ss:$8 sps:$4 sm:$0xff]  }
 0x130   : > { %6178 = vmatprep.subr.bf16.mxu0 %v9749_v63  ;;  %v9854_v63 = vld [vmem:[#allocation6 + $0x8a4] ss:$8 sps:$4 sm:$0xff]  }
 0x132   : > { %5388 = vmatpush1.bf16.msra.mxu1 %v9751_v0  ;;  %v9847_v0 = vld [vmem:[%s11555_s22 + $0x550] ss:$136 sps:$4 sm:$0xff]  }
 0x133   : > { %6179 = vmatpush1.bf16.msra.mxu0 %v9752_v1  ;;  %5470 = vmatprep.subr.bf16.mxu1 %v9761_v2  ;;  %v9848_v1 = vld [vmem:[#allocation6 + $0x1a0] ss:$8 sps:$4 sm:$0xff]  }
 0x134   : > { %6261 = vmatprep.subr.bf16.mxu0 %v9764_v3  ;;  %v9851_v2 = vld [vmem:[%s11555_s22 + $0x588] ss:$136 sps:$4 sm:$0xff]  }
 0x135   : > { %5390 = vmatmul.mubr.bf16.vlgmr.msra.gmra.mrb[0].mxu1 %v9753_v4  ;;  %v9852_v3 = vld [vmem:[#allocation6 + $0x8a0] ss:$8 sps:$4 sm:$0xff]   ;;  %v9857_v4 = vld [vmem:[#allocation6 + $0x1b4] ss:$8 sps:$4 sm:$0xff]  }
 0x136   : > { %6181 = vmatmul.mubr.bf16.vlgmr.msra.gmra.mrb[0].mxu0 %v9756_v5  ;;  %5471 = vmatpush1.bf16.msra.mxu1 %v9759_v6  ;;  %v9860_v5 = vld [vmem:[#allocation6 + $0x8b4] ss:$8 sps:$4 sm:$0xff]   ;;  %v9861_v6 = vld [vmem:[%s11555_s22 + $0x664] ss:$136 sps:$4 sm:$0xff]  }
 0x137   : > { %6262 = vmatpush1.bf16.msra.mxu0 %v9762_v7  ;;  %5472 = vmatprep.subr.bf16.mxu1 %v9767_v8  ;;  %v9863_v7 = vld [vmem:[%s11555_s22 + $0x69c] ss:$136 sps:$4 sm:$0xff]   ;;  %v9855_v8 = vld [vmem:[#allocation6 + $0x1b0] ss:$8 sps:$4 sm:$0xff]  }
 0x138   : > { %6263 = vmatprep.subr.bf16.mxu0 %v9770_v9  ;;  %5399 = vmatprep.mubr.bf16.mxu1 %v9771_v10  ;;  %v9858_v9 = vld [vmem:[#allocation6 + $0x8b0] ss:$8 sps:$4 sm:$0xff]   ;;  %v9868_v10 = vld [vmem:[#allocation6 + $0x1c4] ss:$8 sps:$4 sm:$0xff]  }
 0x139   : > { %6190 = vmatprep.mubr.bf16.mxu0 %v9773_v11  ;;  %v9872_v11 = vld [vmem:[#allocation6 + $0x8c4] ss:$8 sps:$4 sm:$0xff]  }
 0x13a   : > { %5473 = vmatpush1.bf16.msra.mxu1 %v9765_v12  ;;  %v9865_v12 = vld [vmem:[%s11555_s22 + $0x660] ss:$136 sps:$4 sm:$0xff]  }
 0x13b   : > { %6264 = vmatpush1.bf16.msra.mxu0 %v9768_v13  ;;  %5474 = vmatprep.subr.bf16.mxu1 %v9778_v14  ;;  %v9866_v13 = vld [vmem:[#allocation6 + $0x1c0] ss:$8 sps:$4 sm:$0xff]  }
 0x13c   : > { %6265 = vmatprep.subr.bf16.mxu0 %v9782_v15  ;;  %v9869_v14 = vld [vmem:[%s11555_s22 + $0x698] ss:$136 sps:$4 sm:$0xff]  }
 0x13d   : > { %5400 = vmatmul.mubr.bf16.gmra.mrb[4].mxu1 %v9775_v16  ;;  %v9870_v15 = vld [vmem:[#allocation6 + $0x8c0] ss:$8 sps:$4 sm:$0xff]   ;;  %v9875_v16 = vld [vmem:[#allocation6 + $0x1d4] ss:$8 sps:$4 sm:$0xff]  }
 0x13e   : > { %6191 = vmatmul.mubr.bf16.gmra.mrb[4].mxu0 %v9779_v18  ;;  %5475 = vmatpush1.bf16.msra.mxu1 %v9776_v17  ;;  %v9878_v17 = vld [vmem:[#allocation6 + $0x8d4] ss:$8 sps:$4 sm:$0xff]  }
 0x13f   : > { %6266 = vmatpush1.bf16.msra.mxu0 %v9780_v19  ;;  %5476 = vmatprep.subr.bf16.mxu1 %v9785_v20  ;;  %v9879_v18 = vld [vmem:[%s11555_s22 + $0x774] ss:$136 sps:$4 sm:$0xff]   ;;  %v9873_v20 = vld [vmem:[#allocation6 + $0x1d0] ss:$8 sps:$4 sm:$0xff]  }
 0x140   : > { %6267 = vmatprep.subr.bf16.mxu0 %v9788_v21  ;;  %5409 = vmatprep.mubr.bf16.mxu1 %v9789_v22  ;;  %v9881_v19 = vld [vmem:[%s11555_s22 + $0x7ac] ss:$136 sps:$4 sm:$0xff]   ;;  %v9876_v21 = vld [vmem:[#allocation6 + $0x8d0] ss:$8 sps:$4 sm:$0xff]  }
 0x141   : > { %6200 = vmatprep.mubr.bf16.mxu0 %v9791_v23  ;;  %v9886_v22 = vld [vmem:[#allocation6 + $0x1e4] ss:$8 sps:$4 sm:$0xff]  }
 0x142   : > { %5477 = vmatpush1.bf16.msra.mxu1 %v9783_v24  ;;  %v9890_v23 = vld [vmem:[#allocation6 + $0x8e4] ss:$8 sps:$4 sm:$0xff]   ;;  %v9883_v24 = vld [vmem:[%s11555_s22 + $0x770] ss:$136 sps:$4 sm:$0xff]  }
 0x143   : > { %6268 = vmatpush1.bf16.msra.mxu0 %v9786_v25  ;;  %5478 = vmatprep.subr.bf16.mxu1 %v9796_v26  ;;  %v9884_v25 = vld [vmem:[#allocation6 + $0x1e0] ss:$8 sps:$4 sm:$0xff]  }
 0x144   : > { %6269 = vmatprep.subr.bf16.mxu0 %v9800_v27  ;;  %v9887_v26 = vld [vmem:[%s11555_s22 + $0x7a8] ss:$136 sps:$4 sm:$0xff]  }
 0x145   : > { %5410 = vmatmul.mubr.bf16.gmra.mrb[8].mxu1 %v9793_v28  ;;  %v9888_v27 = vld [vmem:[#allocation6 + $0x8e0] ss:$8 sps:$4 sm:$0xff]   ;;  %v9893_v28 = vld [vmem:[#allocation6 + $0x1f4] ss:$8 sps:$4 sm:$0xff]  }
 0x146   : > { %6201 = vmatmul.mubr.bf16.gmra.mrb[8].mxu0 %v9797_v30  ;;  %5479 = vmatpush1.bf16.msra.mxu1 %v9794_v29  ;;  %v9896_v29 = vld [vmem:[#allocation6 + $0x8f4] ss:$8 sps:$4 sm:$0xff]  }
 0x147   : > { %6270 = vmatpush1.bf16.msra.mxu0 %v9798_v31  ;;  %5480 = vmatprep.subr.bf16.mxu1 %v9803_v32  ;;  %v9899_v30 = vld [vmem:[%s11555_s22 + $0xc] ss:$136 sps:$4 sm:$0xff]   ;;  %v9891_v32 = vld [vmem:[#allocation6 + $0x1f0] ss:$8 sps:$4 sm:$0xff]  }
 0x148   : > { %6271 = vmatprep.subr.bf16.mxu0 %v9806_v33  ;;  %5419 = vmatprep.mubr.bf16.mxu1 %v9807_v34  ;;  %v9902_v31 = vld [vmem:[%s11555_s22 + $0x44] ss:$136 sps:$4 sm:$0xff]   ;;  %v9894_v33 = vld [vmem:[#allocation6 + $0x8f0] ss:$8 sps:$4 sm:$0xff]  }
 0x149   : > { %6210 = vmatprep.mubr.bf16.mxu0 %v9809_v35  ;;  %v9905_v34 = vld [vmem:[#allocation6 + $0x204] ss:$8 sps:$4 sm:$0xff]  }
 0x14a   : > { %5481 = vmatpush1.bf16.msra.mxu1 %v9801_v36  ;;  %v9908_v35 = vld [vmem:[#allocation6 + $0x904] ss:$8 sps:$4 sm:$0xff]   ;;  %v9897_v36 = vld [vmem:[%s11555_s22 + $0x8] ss:$136 sps:$4 sm:$0xff]  }
 0x14b   : > { %6272 = vmatpush1.bf16.msra.mxu0 %v9804_v37  ;;  %5482 = vmatprep.subr.bf16.mxu1 %v9814_v38  ;;  %v9900_v37 = vld [vmem:[%s11555_s22 + $0x40] ss:$136 sps:$4 sm:$0xff]  }
 0x14c   : > { %6273 = vmatprep.subr.bf16.mxu0 %v9818_v39  ;;  %v9903_v38 = vld [vmem:[#allocation6 + $0x200] ss:$8 sps:$4 sm:$0xff]  }
 0x14d   : > { %5420 = vmatmul.mubr.bf16.gmra.mrb[12].mxu1 %v9811_v40  ;;  %v9906_v39 = vld [vmem:[#allocation6 + $0x900] ss:$8 sps:$4 sm:$0xff]   ;;  %v9911_v40 = vld [vmem:[#allocation6 + $0x214] ss:$8 sps:$4 sm:$0xff]  }
 0x14e   : > { %6211 = vmatmul.mubr.bf16.gmra.mrb[12].mxu0 %v9815_v42  ;;  %5483 = vmatpush1.bf16.msra.mxu1 %v9812_v41  ;;  %v9914_v41 = vld [vmem:[#allocation6 + $0x914] ss:$8 sps:$4 sm:$0xff]  }
 0x14f   : > { %6274 = vmatpush1.bf16.msra.mxu0 %v9816_v43  ;;  %5484 = vmatprep.subr.bf16.mxu1 %v9821_v44  ;;  %v9915_v42 = vld [vmem:[%s11555_s22 + $0x11c] ss:$136 sps:$4 sm:$0xff]   ;;  %v9909_v44 = vld [vmem:[#allocation6 + $0x210] ss:$8 sps:$4 sm:$0xff]  }
 0x150   : > { %6275 = vmatprep.subr.bf16.mxu0 %v9824_v45  ;;  %5429 = vmatprep.mubr.bf16.mxu1 %v9825_v46  ;;  %v9917_v43 = vld [vmem:[%s11555_s22 + $0x154] ss:$136 sps:$4 sm:$0xff]   ;;  %v9912_v45 = vld [vmem:[#allocation6 + $0x910] ss:$8 sps:$4 sm:$0xff]   ;;  %v9922_v46 = vld [vmem:[#allocation6 + $0x224] ss:$8 sps:$4 sm:$0xff]  }
 0x151   : > { %6220 = vmatprep.mubr.bf16.mxu0 %v9827_v47  ;;  %v9926_v47 = vld [vmem:[#allocation6 + $0x924] ss:$8 sps:$4 sm:$0xff]  }
 0x152   : > { %5485 = vmatpush1.bf16.msra.mxu1 %v9819_v48  ;;  %v9919_v48 = vld [vmem:[%s11555_s22 + $0x118] ss:$136 sps:$4 sm:$0xff]  }
 0x153   : > { %6276 = vmatpush1.bf16.msra.mxu0 %v9822_v49  ;;  %5486 = vmatprep.subr.bf16.mxu1 %v9832_v50  ;;  %v9920_v49 = vld [vmem:[#allocation6 + $0x220] ss:$8 sps:$4 sm:$0xff]   ;;  %v9923_v50 = vld [vmem:[%s11555_s22 + $0x150] ss:$136 sps:$4 sm:$0xff]  }
 0x154   : > { %6277 = vmatprep.subr.bf16.mxu0 %v9836_v51  ;;  %v9924_v51 = vld [vmem:[#allocation6 + $0x920] ss:$8 sps:$4 sm:$0xff]  }
 0x155   : > { %5430 = vmatmul.mubr.bf16.gmra.mrb[16].mxu1 %v9829_v52  ;;  %v9929_v52 = vld [vmem:[#allocation6 + $0x234] ss:$8 sps:$4 sm:$0xff]  }
 0x156   : > { %6221 = vmatmul.mubr.bf16.gmra.mrb[16].mxu0 %v9833_v54  ;;  %5487 = vmatpush1.bf16.msra.mxu1 %v9830_v53  ;;  %v9932_v53 = vld [vmem:[#allocation6 + $0x934] ss:$8 sps:$4 sm:$0xff]  }
 0x157   : > { %6278 = vmatpush1.bf16.msra.mxu0 %v9834_v55  ;;  %5488 = vmatprep.subr.bf16.mxu1 %v9839_v56  ;;  %v9933_v54 = vld [vmem:[%s11555_s22 + $0x22c] ss:$136 sps:$4 sm:$0xff]   ;;  %v9927_v56 = vld [vmem:[#allocation6 + $0x230] ss:$8 sps:$4 sm:$0xff]  }
 0x158   : > { %6279 = vmatprep.subr.bf16.mxu0 %v9842_v57  ;;  %5439 = vmatprep.mubr.bf16.mxu1 %v9843_v58  ;;  %v9935_v55 = vld [vmem:[%s11555_s22 + $0x264] ss:$136 sps:$4 sm:$0xff]   ;;  %v9930_v57 = vld [vmem:[#allocation6 + $0x930] ss:$8 sps:$4 sm:$0xff]  }
 0x159   : > { %6230 = vmatprep.mubr.bf16.mxu0 %v9845_v59  ;;  %v9940_v58 = vld [vmem:[#allocation6 + $0x244] ss:$8 sps:$4 sm:$0xff]  }
 0x15a   : > { %5489 = vmatpush1.bf16.msra.mxu1 %v9837_v60  ;;  %v9944_v59 = vld [vmem:[#allocation6 + $0x944] ss:$8 sps:$4 sm:$0xff]   ;;  %v9937_v60 = vld [vmem:[%s11555_s22 + $0x228] ss:$136 sps:$4 sm:$0xff]  }
 0x15b   : > { %6280 = vmatpush1.bf16.msra.mxu0 %v9840_v61  ;;  %5490 = vmatprep.subr.bf16.mxu1 %v9850_v62  ;;  %v9938_v61 = vld [vmem:[#allocation6 + $0x240] ss:$8 sps:$4 sm:$0xff]  }
 0x15c   : > { %6281 = vmatprep.subr.bf16.mxu0 %v9854_v63  ;;  %v9941_v62 = vld [vmem:[%s11555_s22 + $0x260] ss:$136 sps:$4 sm:$0xff]  }
 0x15d   : > { %5440 = vmatmul.mubr.bf16.gmra.mrb[20].mxu1 %v9847_v0  ;;  %v9942_v63 = vld [vmem:[#allocation6 + $0x940] ss:$8 sps:$4 sm:$0xff]   ;;  %v9947_v0 = vld [vmem:[#allocation6 + $0x254] ss:$8 sps:$4 sm:$0xff]  }
 0x15e   : > { %6231 = vmatmul.mubr.bf16.gmra.mrb[20].mxu0 %v9851_v2  ;;  %5491 = vmatpush1.bf16.msra.mxu1 %v9848_v1  ;;  %v9950_v1 = vld [vmem:[#allocation6 + $0x954] ss:$8 sps:$4 sm:$0xff]  }
 0x15f   : > { %6282 = vmatpush1.bf16.msra.mxu0 %v9852_v3  ;;  %5492 = vmatprep.subr.bf16.mxu1 %v9857_v4  ;;  %v9951_v2 = vld [vmem:[%s11555_s22 + $0x33c] ss:$136 sps:$4 sm:$0xff]   ;;  %v9945_v4 = vld [vmem:[#allocation6 + $0x250] ss:$8 sps:$4 sm:$0xff]  }
 0x160   : > { %6283 = vmatprep.subr.bf16.mxu0 %v9860_v5  ;;  %5449 = vmatprep.mubr.bf16.mxu1 %v9861_v6  ;;  %v9953_v3 = vld [vmem:[%s11555_s22 + $0x374] ss:$136 sps:$4 sm:$0xff]   ;;  %v9948_v5 = vld [vmem:[#allocation6 + $0x950] ss:$8 sps:$4 sm:$0xff]   ;;  %v9958_v6 = vld [vmem:[#allocation6 + $0x264] ss:$8 sps:$4 sm:$0xff]  }
 0x161   : > { %6240 = vmatprep.mubr.bf16.mxu0 %v9863_v7  ;;  %v9962_v7 = vld [vmem:[#allocation6 + $0x964] ss:$8 sps:$4 sm:$0xff]  }
 0x162   : > { %5493 = vmatpush1.bf16.msra.mxu1 %v9855_v8  ;;  %v9955_v8 = vld [vmem:[%s11555_s22 + $0x338] ss:$136 sps:$4 sm:$0xff]  }
 0x163   : > { %6284 = vmatpush1.bf16.msra.mxu0 %v9858_v9  ;;  %5494 = vmatprep.subr.bf16.mxu1 %v9868_v10  ;;  %v9956_v9 = vld [vmem:[#allocation6 + $0x260] ss:$8 sps:$4 sm:$0xff]   ;;  %v9959_v10 = vld [vmem:[%s11555_s22 + $0x370] ss:$136 sps:$4 sm:$0xff]  }
 0x164   : > { %6285 = vmatprep.subr.bf16.mxu0 %v9872_v11  ;;  %v9960_v11 = vld [vmem:[#allocation6 + $0x960] ss:$8 sps:$4 sm:$0xff]  }
 0x165   : > { %5450 = vmatmul.mubr.bf16.gmra.mrb[24].mxu1 %v9865_v12  ;;  %v9965_v12 = vld [vmem:[#allocation6 + $0x274] ss:$8 sps:$4 sm:$0xff]  }
 0x166   : > { %6241 = vmatmul.mubr.bf16.gmra.mrb[24].mxu0 %v9869_v14  ;;  %5495 = vmatpush1.bf16.msra.mxu1 %v9866_v13  ;;  %v9968_v13 = vld [vmem:[#allocation6 + $0x974] ss:$8 sps:$4 sm:$0xff]  }
 0x167   : > { %6286 = vmatpush1.bf16.msra.mxu0 %v9870_v15  ;;  %5496 = vmatprep.subr.bf16.mxu1 %v9875_v16  ;;  %v9969_v14 = vld [vmem:[%s11555_s22 + $0x44c] ss:$136 sps:$4 sm:$0xff]   ;;  %v9963_v16 = vld [vmem:[#allocation6 + $0x270] ss:$8 sps:$4 sm:$0xff]  }
 0x168   : > { %6287 = vmatprep.subr.bf16.mxu0 %v9878_v17  ;;  %5459 = vmatprep.mubr.bf16.mxu1 %v9879_v18  ;;  %v9971_v15 = vld [vmem:[%s11555_s22 + $0x484] ss:$136 sps:$4 sm:$0xff]   ;;  %v9966_v17 = vld [vmem:[#allocation6 + $0x970] ss:$8 sps:$4 sm:$0xff]  }
 0x169   : > { %6250 = vmatprep.mubr.bf16.mxu0 %v9881_v19  ;;  %v9976_v18 = vld [vmem:[#allocation6 + $0x284] ss:$8 sps:$4 sm:$0xff]  }
 0x16a   : > { %5497 = vmatpush1.bf16.msra.mxu1 %v9873_v20  ;;  %v9980_v19 = vld [vmem:[#allocation6 + $0x984] ss:$8 sps:$4 sm:$0xff]   ;;  %v9973_v20 = vld [vmem:[%s11555_s22 + $0x448] ss:$136 sps:$4 sm:$0xff]  }
 0x16b   : > { %6288 = vmatpush1.bf16.msra.mxu0 %v9876_v21  ;;  %5498 = vmatprep.subr.bf16.mxu1 %v9886_v22  ;;  %v9974_v21 = vld [vmem:[#allocation6 + $0x280] ss:$8 sps:$4 sm:$0xff]  }
 0x16c   : > { %6289 = vmatprep.subr.bf16.mxu0 %v9890_v23  ;;  %v9977_v22 = vld [vmem:[%s11555_s22 + $0x480] ss:$136 sps:$4 sm:$0xff]  }
 0x16d   : > { %5460 = vmatmul.mubr.bf16.gmra.mrb[28].mxu1 %v9883_v24  ;;  %v9978_v23 = vld [vmem:[#allocation6 + $0x980] ss:$8 sps:$4 sm:$0xff]   ;;  %v9983_v24 = vld [vmem:[#allocation6 + $0x294] ss:$8 sps:$4 sm:$0xff]  }
 0x16e   : > { %6251 = vmatmul.mubr.bf16.gmra.mrb[28].mxu0 %v9887_v26  ;;  %5499 = vmatpush1.bf16.msra.mxu1 %v9884_v25  ;;  %v9986_v25 = vld [vmem:[#allocation6 + $0x994] ss:$8 sps:$4 sm:$0xff]  }
 0x16f   : > { %6290 = vmatpush1.bf16.msra.mxu0 %v9888_v27  ;;  %5500 = vmatprep.subr.bf16.mxu1 %v9893_v28  ;;  %v9987_v26 = vld [vmem:[%s11555_s22 + $0x55c] ss:$136 sps:$4 sm:$0xff]   ;;  %v9981_v28 = vld [vmem:[#allocation6 + $0x290] ss:$8 sps:$4 sm:$0xff]  }
 0x170   : > { %6291 = vmatprep.subr.bf16.mxu0 %v9896_v29  ;;  %5502 = vmatprep.mubr.bf16.mxu1 %v9899_v30  ;;  %v9989_v27 = vld [vmem:[%s11555_s22 + $0x594] ss:$136 sps:$4 sm:$0xff]   ;;  %v9984_v29 = vld [vmem:[#allocation6 + $0x990] ss:$8 sps:$4 sm:$0xff]   ;;  %v9994_v30 = vld [vmem:[#allocation6 + $0x2a4] ss:$8 sps:$4 sm:$0xff]  }
 0x171   : > { %6293 = vmatprep.mubr.bf16.mxu0 %v9902_v31  ;;  %v9998_v31 = vld [vmem:[#allocation6 + $0x9a4] ss:$8 sps:$4 sm:$0xff]  }
 0x172   : > { %5501 = vmatpush1.bf16.msra.mxu1 %v9891_v32  ;;  %v9991_v32 = vld [vmem:[%s11555_s22 + $0x558] ss:$136 sps:$4 sm:$0xff]  }
 0x173   : > { %6292 = vmatpush1.bf16.msra.mxu0 %v9894_v33  ;;  %5583 = vmatprep.subr.bf16.mxu1 %v9905_v34  ;;  %v9992_v33 = vld [vmem:[#allocation6 + $0x2a0] ss:$8 sps:$4 sm:$0xff]   ;;  %v9995_v34 = vld [vmem:[%s11555_s22 + $0x590] ss:$136 sps:$4 sm:$0xff]  }
 0x174   : > { %6374 = vmatprep.subr.bf16.mxu0 %v9908_v35  ;;  %v9996_v35 = vld [vmem:[#allocation6 + $0x9a0] ss:$8 sps:$4 sm:$0xff]  }
 0x175   : > { %5503 = vmatmul.mubr.bf16.vlgmr.msra.gmra.mrb[0].mxu1 %v9897_v36  ;;  %v10001_v36 = vld [vmem:[#allocation6 + $0x2b4] ss:$8 sps:$4 sm:$0xff]  }
 0x176   : > { %6294 = vmatmul.mubr.bf16.vlgmr.msra.gmra.mrb[0].mxu0 %v9900_v37  ;;  %5584 = vmatpush1.bf16.msra.mxu1 %v9903_v38  ;;  %v10004_v37 = vld [vmem:[#allocation6 + $0x9b4] ss:$8 sps:$4 sm:$0xff]  }
 0x177   : > { %6375 = vmatpush1.bf16.msra.mxu0 %v9906_v39  ;;  %5585 = vmatprep.subr.bf16.mxu1 %v9911_v40  ;;  %v10005_v38 = vld [vmem:[%s11555_s22 + $0x66c] ss:$136 sps:$4 sm:$0xff]   ;;  %v9999_v40 = vld [vmem:[#allocation6 + $0x2b0] ss:$8 sps:$4 sm:$0xff]  }
 0x178   : > { %6376 = vmatprep.subr.bf16.mxu0 %v9914_v41  ;;  %5512 = vmatprep.mubr.bf16.mxu1 %v9915_v42  ;;  %v10007_v39 = vld [vmem:[%s11555_s22 + $0x6a4] ss:$136 sps:$4 sm:$0xff]   ;;  %v10002_v41 = vld [vmem:[#allocation6 + $0x9b0] ss:$8 sps:$4 sm:$0xff]  }
 0x179   : > { %6303 = vmatprep.mubr.bf16.mxu0 %v9917_v43  ;;  %v10012_v42 = vld [vmem:[#allocation6 + $0x2c4] ss:$8 sps:$4 sm:$0xff]  }
 0x17a   : > { %5586 = vmatpush1.bf16.msra.mxu1 %v9909_v44  ;;  %v10016_v43 = vld [vmem:[#allocation6 + $0x9c4] ss:$8 sps:$4 sm:$0xff]   ;;  %v10009_v44 = vld [vmem:[%s11555_s22 + $0x668] ss:$136 sps:$4 sm:$0xff]  }
 0x17b   : > { %6377 = vmatpush1.bf16.msra.mxu0 %v9912_v45  ;;  %5587 = vmatprep.subr.bf16.mxu1 %v9922_v46  ;;  %v10010_v45 = vld [vmem:[#allocation6 + $0x2c0] ss:$8 sps:$4 sm:$0xff]  }
 0x17c   : > { %6378 = vmatprep.subr.bf16.mxu0 %v9926_v47  ;;  %v10013_v46 = vld [vmem:[%s11555_s22 + $0x6a0] ss:$136 sps:$4 sm:$0xff]  }
 0x17d   : > { %5513 = vmatmul.mubr.bf16.gmra.mrb[4].mxu1 %v9919_v48  ;;  %v10014_v47 = vld [vmem:[#allocation6 + $0x9c0] ss:$8 sps:$4 sm:$0xff]   ;;  %v10019_v48 = vld [vmem:[#allocation6 + $0x2d4] ss:$8 sps:$4 sm:$0xff]  }
 0x17e   : > { %6304 = vmatmul.mubr.bf16.gmra.mrb[4].mxu0 %v9923_v50  ;;  %5588 = vmatpush1.bf16.msra.mxu1 %v9920_v49  ;;  %v10022_v49 = vld [vmem:[#allocation6 + $0x9d4] ss:$8 sps:$4 sm:$0xff]  }
 0x17f   : > { %6379 = vmatpush1.bf16.msra.mxu0 %v9924_v51  ;;  %5589 = vmatprep.subr.bf16.mxu1 %v9929_v52  ;;  %v10023_v50 = vld [vmem:[%s11555_s22 + $0x77c] ss:$136 sps:$4 sm:$0xff]   ;;  %v10017_v52 = vld [vmem:[#allocation6 + $0x2d0] ss:$8 sps:$4 sm:$0xff]  }
 0x180   : > { %6380 = vmatprep.subr.bf16.mxu0 %v9932_v53  ;;  %5522 = vmatprep.mubr.bf16.mxu1 %v9933_v54  ;;  %v10025_v51 = vld [vmem:[%s11555_s22 + $0x7b4] ss:$136 sps:$4 sm:$0xff]   ;;  %v10020_v53 = vld [vmem:[#allocation6 + $0x9d0] ss:$8 sps:$4 sm:$0xff]   ;;  %v10030_v54 = vld [vmem:[#allocation6 + $0x2e4] ss:$8 sps:$4 sm:$0xff]  }
 0x181   : > { %6313 = vmatprep.mubr.bf16.mxu0 %v9935_v55  ;;  %v10034_v55 = vld [vmem:[#allocation6 + $0x9e4] ss:$8 sps:$4 sm:$0xff]  }
 0x182   : > { %5590 = vmatpush1.bf16.msra.mxu1 %v9927_v56  ;;  %v10027_v56 = vld [vmem:[%s11555_s22 + $0x778] ss:$136 sps:$4 sm:$0xff]  }
 0x183   : > { %6381 = vmatpush1.bf16.msra.mxu0 %v9930_v57  ;;  %5591 = vmatprep.subr.bf16.mxu1 %v9940_v58  ;;  %v10028_v57 = vld [vmem:[#allocation6 + $0x2e0] ss:$8 sps:$4 sm:$0xff]   ;;  %v10031_v58 = vld [vmem:[%s11555_s22 + $0x7b0] ss:$136 sps:$4 sm:$0xff]  }
 0x184   : > { %6382 = vmatprep.subr.bf16.mxu0 %v9944_v59  ;;  %v10032_v59 = vld [vmem:[#allocation6 + $0x9e0] ss:$8 sps:$4 sm:$0xff]  }
 0x185   : > { %5523 = vmatmul.mubr.bf16.gmra.mrb[8].mxu1 %v9937_v60  ;;  %v10037_v60 = vld [vmem:[#allocation6 + $0x2f4] ss:$8 sps:$4 sm:$0xff]  }
 0x186   : > { %6314 = vmatmul.mubr.bf16.gmra.mrb[8].mxu0 %v9941_v62  ;;  %5592 = vmatpush1.bf16.msra.mxu1 %v9938_v61  ;;  %v10040_v61 = vld [vmem:[#allocation6 + $0x9f4] ss:$8 sps:$4 sm:$0xff]  }
 0x187   : > { %6383 = vmatpush1.bf16.msra.mxu0 %v9942_v63  ;;  %5593 = vmatprep.subr.bf16.mxu1 %v9947_v0  ;;  %v10043_v62 = vld [vmem:[%s11555_s22 + $0x14] ss:$136 sps:$4 sm:$0xff]   ;;  %v10035_v0 = vld [vmem:[#allocation6 + $0x2f0] ss:$8 sps:$4 sm:$0xff]  }
 0x188   : > { %6384 = vmatprep.subr.bf16.mxu0 %v9950_v1  ;;  %5532 = vmatprep.mubr.bf16.mxu1 %v9951_v2  ;;  %v10046_v63 = vld [vmem:[%s11555_s22 + $0x4c] ss:$136 sps:$4 sm:$0xff]   ;;  %v10038_v1 = vld [vmem:[#allocation6 + $0x9f0] ss:$8 sps:$4 sm:$0xff]  }
 0x189   : > { %6323 = vmatprep.mubr.bf16.mxu0 %v9953_v3  ;;  %v10049_v2 = vld [vmem:[#allocation6 + $0x304] ss:$8 sps:$4 sm:$0xff]  }
 0x18a   : > { %5594 = vmatpush1.bf16.msra.mxu1 %v9945_v4  ;;  %v10052_v3 = vld [vmem:[#allocation6 + $0xa04] ss:$8 sps:$4 sm:$0xff]   ;;  %v10041_v4 = vld [vmem:[%s11555_s22 + $0x10] ss:$136 sps:$4 sm:$0xff]  }
 0x18b   : > { %6385 = vmatpush1.bf16.msra.mxu0 %v9948_v5  ;;  %5595 = vmatprep.subr.bf16.mxu1 %v9958_v6  ;;  %v10044_v5 = vld [vmem:[%s11555_s22 + $0x48] ss:$136 sps:$4 sm:$0xff]  }
 0x18c   : > { %6386 = vmatprep.subr.bf16.mxu0 %v9962_v7  ;;  %v10047_v6 = vld [vmem:[#allocation6 + $0x300] ss:$8 sps:$4 sm:$0xff]  }
 0x18d   : > { %5533 = vmatmul.mubr.bf16.gmra.mrb[12].mxu1 %v9955_v8  ;;  %v10050_v7 = vld [vmem:[#allocation6 + $0xa00] ss:$8 sps:$4 sm:$0xff]   ;;  %v10055_v8 = vld [vmem:[#allocation6 + $0x314] ss:$8 sps:$4 sm:$0xff]  }
 0x18e   : > { %6324 = vmatmul.mubr.bf16.gmra.mrb[12].mxu0 %v9959_v10  ;;  %5596 = vmatpush1.bf16.msra.mxu1 %v9956_v9  ;;  %v10058_v9 = vld [vmem:[#allocation6 + $0xa14] ss:$8 sps:$4 sm:$0xff]   ;;  %v10059_v10 = vld [vmem:[%s11555_s22 + $0x124] ss:$136 sps:$4 sm:$0xff]  }
 0x18f   : > { %6387 = vmatpush1.bf16.msra.mxu0 %v9960_v11  ;;  %5597 = vmatprep.subr.bf16.mxu1 %v9965_v12  ;;  %v10061_v11 = vld [vmem:[%s11555_s22 + $0x15c] ss:$136 sps:$4 sm:$0xff]   ;;  %v10053_v12 = vld [vmem:[#allocation6 + $0x310] ss:$8 sps:$4 sm:$0xff]  }
 0x190   : > { %6388 = vmatprep.subr.bf16.mxu0 %v9968_v13  ;;  %5542 = vmatprep.mubr.bf16.mxu1 %v9969_v14  ;;  %v10056_v13 = vld [vmem:[#allocation6 + $0xa10] ss:$8 sps:$4 sm:$0xff]   ;;  %v10066_v14 = vld [vmem:[#allocation6 + $0x324] ss:$8 sps:$4 sm:$0xff]  }
 0x191   : > { %6333 = vmatprep.mubr.bf16.mxu0 %v9971_v15  ;;  %v10070_v15 = vld [vmem:[#allocation6 + $0xa24] ss:$8 sps:$4 sm:$0xff]  }
 0x192   : > { %5598 = vmatpush1.bf16.msra.mxu1 %v9963_v16  ;;  %v10063_v16 = vld [vmem:[%s11555_s22 + $0x120] ss:$136 sps:$4 sm:$0xff]  }
 0x193   : > { %6389 = vmatpush1.bf16.msra.mxu0 %v9966_v17  ;;  %5599 = vmatprep.subr.bf16.mxu1 %v9976_v18  ;;  %v10064_v17 = vld [vmem:[#allocation6 + $0x320] ss:$8 sps:$4 sm:$0xff]  }
 0x194   : > { %6390 = vmatprep.subr.bf16.mxu0 %v9980_v19  ;;  %v10067_v18 = vld [vmem:[%s11555_s22 + $0x158] ss:$136 sps:$4 sm:$0xff]  }
 0x195   : > { %5543 = vmatmul.mubr.bf16.gmra.mrb[16].mxu1 %v9973_v20  ;;  %v10068_v19 = vld [vmem:[#allocation6 + $0xa20] ss:$8 sps:$4 sm:$0xff]   ;;  %v10073_v20 = vld [vmem:[#allocation6 + $0x334] ss:$8 sps:$4 sm:$0xff]  }
 0x196   : > { %6334 = vmatmul.mubr.bf16.gmra.mrb[16].mxu0 %v9977_v22  ;;  %5600 = vmatpush1.bf16.msra.mxu1 %v9974_v21  ;;  %v10076_v21 = vld [vmem:[#allocation6 + $0xa34] ss:$8 sps:$4 sm:$0xff]  }
 0x197   : > { %6391 = vmatpush1.bf16.msra.mxu0 %v9978_v23  ;;  %5601 = vmatprep.subr.bf16.mxu1 %v9983_v24  ;;  %v10077_v22 = vld [vmem:[%s11555_s22 + $0x234] ss:$136 sps:$4 sm:$0xff]   ;;  %v10071_v24 = vld [vmem:[#allocation6 + $0x330] ss:$8 sps:$4 sm:$0xff]  }
 0x198   : > { %6392 = vmatprep.subr.bf16.mxu0 %v9986_v25  ;;  %5552 = vmatprep.mubr.bf16.mxu1 %v9987_v26  ;;  %v10079_v23 = vld [vmem:[%s11555_s22 + $0x26c] ss:$136 sps:$4 sm:$0xff]   ;;  %v10074_v25 = vld [vmem:[#allocation6 + $0xa30] ss:$8 sps:$4 sm:$0xff]  }
 0x199   : > { %6343 = vmatprep.mubr.bf16.mxu0 %v9989_v27  ;;  %v10084_v26 = vld [vmem:[#allocation6 + $0x344] ss:$8 sps:$4 sm:$0xff]  }
 0x19a   : > { %5602 = vmatpush1.bf16.msra.mxu1 %v9981_v28  ;;  %v10088_v27 = vld [vmem:[#allocation6 + $0xa44] ss:$8 sps:$4 sm:$0xff]   ;;  %v10081_v28 = vld [vmem:[%s11555_s22 + $0x230] ss:$136 sps:$4 sm:$0xff]  }
 0x19b   : > { %6393 = vmatpush1.bf16.msra.mxu0 %v9984_v29  ;;  %5603 = vmatprep.subr.bf16.mxu1 %v9994_v30  ;;  %v10082_v29 = vld [vmem:[#allocation6 + $0x340] ss:$8 sps:$4 sm:$0xff]  }
 0x19c   : > { %6394 = vmatprep.subr.bf16.mxu0 %v9998_v31  ;;  %v10085_v30 = vld [vmem:[%s11555_s22 + $0x268] ss:$136 sps:$4 sm:$0xff]  }
 0x19d   : > { %5553 = vmatmul.mubr.bf16.gmra.mrb[20].mxu1 %v9991_v32  ;;  %v10086_v31 = vld [vmem:[#allocation6 + $0xa40] ss:$8 sps:$4 sm:$0xff]   ;;  %v10091_v32 = vld [vmem:[#allocation6 + $0x354] ss:$8 sps:$4 sm:$0xff]  }
 0x19e   : > { %6344 = vmatmul.mubr.bf16.gmra.mrb[20].mxu0 %v9995_v34  ;;  %5604 = vmatpush1.bf16.msra.mxu1 %v9992_v33  ;;  %v10094_v33 = vld [vmem:[#allocation6 + $0xa54] ss:$8 sps:$4 sm:$0xff]   ;;  %v10095_v34 = vld [vmem:[%s11555_s22 + $0x344] ss:$136 sps:$4 sm:$0xff]  }
 0x19f   : > { %6395 = vmatpush1.bf16.msra.mxu0 %v9996_v35  ;;  %5605 = vmatprep.subr.bf16.mxu1 %v10001_v36  ;;  %v10097_v35 = vld [vmem:[%s11555_s22 + $0x37c] ss:$136 sps:$4 sm:$0xff]   ;;  %v10089_v36 = vld [vmem:[#allocation6 + $0x350] ss:$8 sps:$4 sm:$0xff]  }
 0x1a0   : > { %6396 = vmatprep.subr.bf16.mxu0 %v10004_v37  ;;  %5562 = vmatprep.mubr.bf16.mxu1 %v10005_v38  ;;  %v10092_v37 = vld [vmem:[#allocation6 + $0xa50] ss:$8 sps:$4 sm:$0xff]   ;;  %v10102_v38 = vld [vmem:[#allocation6 + $0x364] ss:$8 sps:$4 sm:$0xff]  }
 0x1a1   : > { %6353 = vmatprep.mubr.bf16.mxu0 %v10007_v39  ;;  %v10106_v39 = vld [vmem:[#allocation6 + $0xa64] ss:$8 sps:$4 sm:$0xff]  }
 0x1a2   : > { %5606 = vmatpush1.bf16.msra.mxu1 %v9999_v40  ;;  %v10099_v40 = vld [vmem:[%s11555_s22 + $0x340] ss:$136 sps:$4 sm:$0xff]  }
 0x1a3   : > { %6397 = vmatpush1.bf16.msra.mxu0 %v10002_v41  ;;  %5607 = vmatprep.subr.bf16.mxu1 %v10012_v42  ;;  %v10100_v41 = vld [vmem:[#allocation6 + $0x360] ss:$8 sps:$4 sm:$0xff]  }
 0x1a4   : > { %6398 = vmatprep.subr.bf16.mxu0 %v10016_v43  ;;  %v10103_v42 = vld [vmem:[%s11555_s22 + $0x378] ss:$136 sps:$4 sm:$0xff]  }
 0x1a5   : > { %5563 = vmatmul.mubr.bf16.gmra.mrb[24].mxu1 %v10009_v44  ;;  %v10104_v43 = vld [vmem:[#allocation6 + $0xa60] ss:$8 sps:$4 sm:$0xff]   ;;  %v10109_v44 = vld [vmem:[#allocation6 + $0x374] ss:$8 sps:$4 sm:$0xff]  }
 0x1a6   : > { %6354 = vmatmul.mubr.bf16.gmra.mrb[24].mxu0 %v10013_v46  ;;  %5608 = vmatpush1.bf16.msra.mxu1 %v10010_v45  ;;  %v10112_v45 = vld [vmem:[#allocation6 + $0xa74] ss:$8 sps:$4 sm:$0xff]  }
 0x1a7   : > { %6399 = vmatpush1.bf16.msra.mxu0 %v10014_v47  ;;  %5609 = vmatprep.subr.bf16.mxu1 %v10019_v48  ;;  %v10113_v46 = vld [vmem:[%s11555_s22 + $0x454] ss:$136 sps:$4 sm:$0xff]   ;;  %v10107_v48 = vld [vmem:[#allocation6 + $0x370] ss:$8 sps:$4 sm:$0xff]  }
 0x1a8   : > { %6400 = vmatprep.subr.bf16.mxu0 %v10022_v49  ;;  %5572 = vmatprep.mubr.bf16.mxu1 %v10023_v50  ;;  %v10115_v47 = vld [vmem:[%s11555_s22 + $0x48c] ss:$136 sps:$4 sm:$0xff]   ;;  %v10110_v49 = vld [vmem:[#allocation6 + $0xa70] ss:$8 sps:$4 sm:$0xff]  }
 0x1a9   : > { %6363 = vmatprep.mubr.bf16.mxu0 %v10025_v51  ;;  %v10120_v50 = vld [vmem:[#allocation6 + $0x384] ss:$8 sps:$4 sm:$0xff]  }
 0x1aa   : > { %5610 = vmatpush1.bf16.msra.mxu1 %v10017_v52  ;;  %v10124_v51 = vld [vmem:[#allocation6 + $0xa84] ss:$8 sps:$4 sm:$0xff]   ;;  %v10117_v52 = vld [vmem:[%s11555_s22 + $0x450] ss:$136 sps:$4 sm:$0xff]  }
 0x1ab   : > { %6401 = vmatpush1.bf16.msra.mxu0 %v10020_v53  ;;  %5611 = vmatprep.subr.bf16.mxu1 %v10030_v54  ;;  %v10118_v53 = vld [vmem:[#allocation6 + $0x380] ss:$8 sps:$4 sm:$0xff]  }
 0x1ac   : > { %6402 = vmatprep.subr.bf16.mxu0 %v10034_v55  ;;  %v10121_v54 = vld [vmem:[%s11555_s22 + $0x488] ss:$136 sps:$4 sm:$0xff]  }
 0x1ad   : > { %5573 = vmatmul.mubr.bf16.gmra.mrb[28].mxu1 %v10027_v56  ;;  %v10122_v55 = vld [vmem:[#allocation6 + $0xa80] ss:$8 sps:$4 sm:$0xff]   ;;  %v10127_v56 = vld [vmem:[#allocation6 + $0x394] ss:$8 sps:$4 sm:$0xff]  }
 0x1ae   : > { %6364 = vmatmul.mubr.bf16.gmra.mrb[28].mxu0 %v10031_v58  ;;  %5612 = vmatpush1.bf16.msra.mxu1 %v10028_v57  ;;  %v10130_v57 = vld [vmem:[#allocation6 + $0xa94] ss:$8 sps:$4 sm:$0xff]   ;;  %v10131_v58 = vld [vmem:[%s11555_s22 + $0x564] ss:$136 sps:$4 sm:$0xff]  }
 0x1af   : > { %6403 = vmatpush1.bf16.msra.mxu0 %v10032_v59  ;;  %5613 = vmatprep.subr.bf16.mxu1 %v10037_v60  ;;  %v10133_v59 = vld [vmem:[%s11555_s22 + $0x59c] ss:$136 sps:$4 sm:$0xff]   ;;  %v10125_v60 = vld [vmem:[#allocation6 + $0x390] ss:$8 sps:$4 sm:$0xff]  }
 0x1b0   : > { %6404 = vmatprep.subr.bf16.mxu0 %v10040_v61  ;;  %5615 = vmatprep.mubr.bf16.mxu1 %v10043_v62  ;;  %v10128_v61 = vld [vmem:[#allocation6 + $0xa90] ss:$8 sps:$4 sm:$0xff]   ;;  %v10138_v62 = vld [vmem:[#allocation6 + $0x3a4] ss:$8 sps:$4 sm:$0xff]  }
 0x1b1   : > { %6406 = vmatprep.mubr.bf16.mxu0 %v10046_v63  ;;  %v10142_v63 = vld [vmem:[#allocation6 + $0xaa4] ss:$8 sps:$4 sm:$0xff]  }
 0x1b2   : > { %5614 = vmatpush1.bf16.msra.mxu1 %v10035_v0  ;;  %v10135_v0 = vld [vmem:[%s11555_s22 + $0x560] ss:$136 sps:$4 sm:$0xff]  }
 0x1b3   : > { %6405 = vmatpush1.bf16.msra.mxu0 %v10038_v1  ;;  %5696 = vmatprep.subr.bf16.mxu1 %v10049_v2  ;;  %v10136_v1 = vld [vmem:[#allocation6 + $0x3a0] ss:$8 sps:$4 sm:$0xff]  }
 0x1b4   : > { %6487 = vmatprep.subr.bf16.mxu0 %v10052_v3  ;;  %v10139_v2 = vld [vmem:[%s11555_s22 + $0x598] ss:$136 sps:$4 sm:$0xff]  }
 0x1b5   : > { %5616 = vmatmul.mubr.bf16.vlgmr.msra.gmra.mrb[0].mxu1 %v10041_v4  ;;  %v10140_v3 = vld [vmem:[#allocation6 + $0xaa0] ss:$8 sps:$4 sm:$0xff]   ;;  %v10145_v4 = vld [vmem:[#allocation6 + $0x3b4] ss:$8 sps:$4 sm:$0xff]  }
 0x1b6   : > { %6407 = vmatmul.mubr.bf16.vlgmr.msra.gmra.mrb[0].mxu0 %v10044_v5  ;;  %5697 = vmatpush1.bf16.msra.mxu1 %v10047_v6  ;;  %v10148_v5 = vld [vmem:[#allocation6 + $0xab4] ss:$8 sps:$4 sm:$0xff]  }
 0x1b7   : > { %6488 = vmatpush1.bf16.msra.mxu0 %v10050_v7  ;;  %5698 = vmatprep.subr.bf16.mxu1 %v10055_v8  ;;  %v10149_v6 = vld [vmem:[%s11555_s22 + $0x674] ss:$136 sps:$4 sm:$0xff]   ;;  %v10143_v8 = vld [vmem:[#allocation6 + $0x3b0] ss:$8 sps:$4 sm:$0xff]  }
 0x1b8   : > { %6489 = vmatprep.subr.bf16.mxu0 %v10058_v9  ;;  %5625 = vmatprep.mubr.bf16.mxu1 %v10059_v10  ;;  %v10151_v7 = vld [vmem:[%s11555_s22 + $0x6ac] ss:$136 sps:$4 sm:$0xff]   ;;  %v10146_v9 = vld [vmem:[#allocation6 + $0xab0] ss:$8 sps:$4 sm:$0xff]  }
 0x1b9   : > { %6416 = vmatprep.mubr.bf16.mxu0 %v10061_v11  ;;  %v10156_v10 = vld [vmem:[#allocation6 + $0x3c4] ss:$8 sps:$4 sm:$0xff]  }
 0x1ba   : > { %5699 = vmatpush1.bf16.msra.mxu1 %v10053_v12  ;;  %v10160_v11 = vld [vmem:[#allocation6 + $0xac4] ss:$8 sps:$4 sm:$0xff]   ;;  %v10153_v12 = vld [vmem:[%s11555_s22 + $0x670] ss:$136 sps:$4 sm:$0xff]  }
 0x1bb   : > { %6490 = vmatpush1.bf16.msra.mxu0 %v10056_v13  ;;  %5700 = vmatprep.subr.bf16.mxu1 %v10066_v14  ;;  %v10154_v13 = vld [vmem:[#allocation6 + $0x3c0] ss:$8 sps:$4 sm:$0xff]  }
 0x1bc   : > { %6491 = vmatprep.subr.bf16.mxu0 %v10070_v15  ;;  %v10157_v14 = vld [vmem:[%s11555_s22 + $0x6a8] ss:$136 sps:$4 sm:$0xff]  }
 0x1bd   : > { %5626 = vmatmul.mubr.bf16.gmra.mrb[4].mxu1 %v10063_v16  ;;  %v10158_v15 = vld [vmem:[#allocation6 + $0xac0] ss:$8 sps:$4 sm:$0xff]   ;;  %v10163_v16 = vld [vmem:[#allocation6 + $0x3d4] ss:$8 sps:$4 sm:$0xff]  }
 0x1be   : > { %6417 = vmatmul.mubr.bf16.gmra.mrb[4].mxu0 %v10067_v18  ;;  %5701 = vmatpush1.bf16.msra.mxu1 %v10064_v17  ;;  %v10166_v17 = vld [vmem:[#allocation6 + $0xad4] ss:$8 sps:$4 sm:$0xff]   ;;  %v10167_v18 = vld [vmem:[%s11555_s22 + $0x784] ss:$136 sps:$4 sm:$0xff]  }
 0x1bf   : > { %6492 = vmatpush1.bf16.msra.mxu0 %v10068_v19  ;;  %5702 = vmatprep.subr.bf16.mxu1 %v10073_v20  ;;  %v10169_v19 = vld [vmem:[%s11555_s22 + $0x7bc] ss:$136 sps:$4 sm:$0xff]   ;;  %v10161_v20 = vld [vmem:[#allocation6 + $0x3d0] ss:$8 sps:$4 sm:$0xff]  }
 0x1c0   : > { %6493 = vmatprep.subr.bf16.mxu0 %v10076_v21  ;;  %5635 = vmatprep.mubr.bf16.mxu1 %v10077_v22  ;;  %v10164_v21 = vld [vmem:[#allocation6 + $0xad0] ss:$8 sps:$4 sm:$0xff]   ;;  %v10174_v22 = vld [vmem:[#allocation6 + $0x3e4] ss:$8 sps:$4 sm:$0xff]  }
 0x1c1   : > { %6426 = vmatprep.mubr.bf16.mxu0 %v10079_v23  ;;  %v10178_v23 = vld [vmem:[#allocation6 + $0xae4] ss:$8 sps:$4 sm:$0xff]  }
 0x1c2   : > { %5703 = vmatpush1.bf16.msra.mxu1 %v10071_v24  ;;  %v10171_v24 = vld [vmem:[%s11555_s22 + $0x780] ss:$136 sps:$4 sm:$0xff]  }
 0x1c3   : > { %6494 = vmatpush1.bf16.msra.mxu0 %v10074_v25  ;;  %5704 = vmatprep.subr.bf16.mxu1 %v10084_v26  ;;  %v10172_v25 = vld [vmem:[#allocation6 + $0x3e0] ss:$8 sps:$4 sm:$0xff]  }
 0x1c4   : > { %6495 = vmatprep.subr.bf16.mxu0 %v10088_v27  ;;  %v10175_v26 = vld [vmem:[%s11555_s22 + $0x7b8] ss:$136 sps:$4 sm:$0xff]  }
 0x1c5   : > { %5636 = vmatmul.mubr.bf16.gmra.mrb[8].mxu1 %v10081_v28  ;;  %v10176_v27 = vld [vmem:[#allocation6 + $0xae0] ss:$8 sps:$4 sm:$0xff]   ;;  %v10181_v28 = vld [vmem:[#allocation6 + $0x3f4] ss:$8 sps:$4 sm:$0xff]  }
 0x1c6   : > { %6427 = vmatmul.mubr.bf16.gmra.mrb[8].mxu0 %v10085_v30  ;;  %5705 = vmatpush1.bf16.msra.mxu1 %v10082_v29  ;;  %v10184_v29 = vld [vmem:[#allocation6 + $0xaf4] ss:$8 sps:$4 sm:$0xff]  }
 0x1c7   : > { %6496 = vmatpush1.bf16.msra.mxu0 %v10086_v31  ;;  %5706 = vmatprep.subr.bf16.mxu1 %v10091_v32  ;;  %v10187_v30 = vld [vmem:[%s11555_s22 + $0x1c] ss:$136 sps:$4 sm:$0xff]   ;;  %v10179_v32 = vld [vmem:[#allocation6 + $0x3f0] ss:$8 sps:$4 sm:$0xff]  }
 0x1c8   : > { %6497 = vmatprep.subr.bf16.mxu0 %v10094_v33  ;;  %5645 = vmatprep.mubr.bf16.mxu1 %v10095_v34  ;;  %v10190_v31 = vld [vmem:[%s11555_s22 + $0x54] ss:$136 sps:$4 sm:$0xff]   ;;  %v10182_v33 = vld [vmem:[#allocation6 + $0xaf0] ss:$8 sps:$4 sm:$0xff]   ;;  %v10193_v34 = vld [vmem:[#allocation6 + $0x404] ss:$8 sps:$4 sm:$0xff]  }
 0x1c9   : > { %6436 = vmatprep.mubr.bf16.mxu0 %v10097_v35  ;;  %v10196_v35 = vld [vmem:[#allocation6 + $0xb04] ss:$8 sps:$4 sm:$0xff]  }
 0x1ca   : > { %5707 = vmatpush1.bf16.msra.mxu1 %v10089_v36  ;;  %v10185_v36 = vld [vmem:[%s11555_s22 + $0x18] ss:$136 sps:$4 sm:$0xff]  }
 0x1cb   : > { %6498 = vmatpush1.bf16.msra.mxu0 %v10092_v37  ;;  %5708 = vmatprep.subr.bf16.mxu1 %v10102_v38  ;;  %v10188_v37 = vld [vmem:[%s11555_s22 + $0x50] ss:$136 sps:$4 sm:$0xff]   ;;  %v10191_v38 = vld [vmem:[#allocation6 + $0x400] ss:$8 sps:$4 sm:$0xff]  }
 0x1cc   : > { %6499 = vmatprep.subr.bf16.mxu0 %v10106_v39  ;;  %v10194_v39 = vld [vmem:[#allocation6 + $0xb00] ss:$8 sps:$4 sm:$0xff]  }
 0x1cd   : > { %5646 = vmatmul.mubr.bf16.gmra.mrb[12].mxu1 %v10099_v40  ;;  %v10199_v40 = vld [vmem:[#allocation6 + $0x414] ss:$8 sps:$4 sm:$0xff]  }
 0x1ce   : > { %6437 = vmatmul.mubr.bf16.gmra.mrb[12].mxu0 %v10103_v42  ;;  %5709 = vmatpush1.bf16.msra.mxu1 %v10100_v41  ;;  %v10202_v41 = vld [vmem:[#allocation6 + $0xb14] ss:$8 sps:$4 sm:$0xff]  }
 0x1cf   : > { %6500 = vmatpush1.bf16.msra.mxu0 %v10104_v43  ;;  %5710 = vmatprep.subr.bf16.mxu1 %v10109_v44  ;;  %v10203_v42 = vld [vmem:[%s11555_s22 + $0x12c] ss:$136 sps:$4 sm:$0xff]   ;;  %v10197_v44 = vld [vmem:[#allocation6 + $0x410] ss:$8 sps:$4 sm:$0xff]  }
 0x1d0   : > { %6501 = vmatprep.subr.bf16.mxu0 %v10112_v45  ;;  %5655 = vmatprep.mubr.bf16.mxu1 %v10113_v46  ;;  %v10205_v43 = vld [vmem:[%s11555_s22 + $0x164] ss:$136 sps:$4 sm:$0xff]   ;;  %v10200_v45 = vld [vmem:[#allocation6 + $0xb10] ss:$8 sps:$4 sm:$0xff]  }
 0x1d1   : > { %6446 = vmatprep.mubr.bf16.mxu0 %v10115_v47  ;;  %v10210_v46 = vld [vmem:[#allocation6 + $0x424] ss:$8 sps:$4 sm:$0xff]  }
 0x1d2   : > { %5711 = vmatpush1.bf16.msra.mxu1 %v10107_v48  ;;  %v10214_v47 = vld [vmem:[#allocation6 + $0xb24] ss:$8 sps:$4 sm:$0xff]   ;;  %v10207_v48 = vld [vmem:[%s11555_s22 + $0x128] ss:$136 sps:$4 sm:$0xff]  }
 0x1d3   : > { %6502 = vmatpush1.bf16.msra.mxu0 %v10110_v49  ;;  %5712 = vmatprep.subr.bf16.mxu1 %v10120_v50  ;;  %v10208_v49 = vld [vmem:[#allocation6 + $0x420] ss:$8 sps:$4 sm:$0xff]  }
 0x1d4   : > { %6503 = vmatprep.subr.bf16.mxu0 %v10124_v51  ;;  %v10211_v50 = vld [vmem:[%s11555_s22 + $0x160] ss:$136 sps:$4 sm:$0xff]  }
 0x1d5   : > { %5656 = vmatmul.mubr.bf16.gmra.mrb[16].mxu1 %v10117_v52  ;;  %v10212_v51 = vld [vmem:[#allocation6 + $0xb20] ss:$8 sps:$4 sm:$0xff]   ;;  %v10217_v52 = vld [vmem:[#allocation6 + $0x434] ss:$8 sps:$4 sm:$0xff]  }
 0x1d6   : > { %6447 = vmatmul.mubr.bf16.gmra.mrb[16].mxu0 %v10121_v54  ;;  %5713 = vmatpush1.bf16.msra.mxu1 %v10118_v53  ;;  %v10220_v53 = vld [vmem:[#allocation6 + $0xb34] ss:$8 sps:$4 sm:$0xff]  }
 0x1d7   : > { %6504 = vmatpush1.bf16.msra.mxu0 %v10122_v55  ;;  %5714 = vmatprep.subr.bf16.mxu1 %v10127_v56  ;;  %v10221_v54 = vld [vmem:[%s11555_s22 + $0x23c] ss:$136 sps:$4 sm:$0xff]   ;;  %v10215_v56 = vld [vmem:[#allocation6 + $0x430] ss:$8 sps:$4 sm:$0xff]  }
 0x1d8   : > { %6505 = vmatprep.subr.bf16.mxu0 %v10130_v57  ;;  %5665 = vmatprep.mubr.bf16.mxu1 %v10131_v58  ;;  %v10223_v55 = vld [vmem:[%s11555_s22 + $0x274] ss:$136 sps:$4 sm:$0xff]   ;;  %v10218_v57 = vld [vmem:[#allocation6 + $0xb30] ss:$8 sps:$4 sm:$0xff]   ;;  %v10228_v58 = vld [vmem:[#allocation6 + $0x444] ss:$8 sps:$4 sm:$0xff]  }
 0x1d9   : > { %6456 = vmatprep.mubr.bf16.mxu0 %v10133_v59  ;;  %v10232_v59 = vld [vmem:[#allocation6 + $0xb44] ss:$8 sps:$4 sm:$0xff]  }
 0x1da   : > { %5715 = vmatpush1.bf16.msra.mxu1 %v10125_v60  ;;  %v10225_v60 = vld [vmem:[%s11555_s22 + $0x238] ss:$136 sps:$4 sm:$0xff]  }
 0x1db   : > { %6506 = vmatpush1.bf16.msra.mxu0 %v10128_v61  ;;  %5716 = vmatprep.subr.bf16.mxu1 %v10138_v62  ;;  %v10226_v61 = vld [vmem:[#allocation6 + $0x440] ss:$8 sps:$4 sm:$0xff]   ;;  %v10229_v62 = vld [vmem:[%s11555_s22 + $0x270] ss:$136 sps:$4 sm:$0xff]  }
 0x1dc   : > { %6507 = vmatprep.subr.bf16.mxu0 %v10142_v63  ;;  %v10230_v63 = vld [vmem:[#allocation6 + $0xb40] ss:$8 sps:$4 sm:$0xff]  }
 0x1dd   : > { %5666 = vmatmul.mubr.bf16.gmra.mrb[20].mxu1 %v10135_v0  ;;  %v10235_v0 = vld [vmem:[#allocation6 + $0x454] ss:$8 sps:$4 sm:$0xff]  }
 0x1de   : > { %6457 = vmatmul.mubr.bf16.gmra.mrb[20].mxu0 %v10139_v2  ;;  %5717 = vmatpush1.bf16.msra.mxu1 %v10136_v1  ;;  %v10238_v1 = vld [vmem:[#allocation6 + $0xb54] ss:$8 sps:$4 sm:$0xff]  }
 0x1df   : > { %6508 = vmatpush1.bf16.msra.mxu0 %v10140_v3  ;;  %5718 = vmatprep.subr.bf16.mxu1 %v10145_v4  ;;  %v10239_v2 = vld [vmem:[%s11555_s22 + $0x34c] ss:$136 sps:$4 sm:$0xff]   ;;  %v10233_v4 = vld [vmem:[#allocation6 + $0x450] ss:$8 sps:$4 sm:$0xff]  }
 0x1e0   : > { %6509 = vmatprep.subr.bf16.mxu0 %v10148_v5  ;;  %5675 = vmatprep.mubr.bf16.mxu1 %v10149_v6  ;;  %v10241_v3 = vld [vmem:[%s11555_s22 + $0x384] ss:$136 sps:$4 sm:$0xff]   ;;  %v10236_v5 = vld [vmem:[#allocation6 + $0xb50] ss:$8 sps:$4 sm:$0xff]  }
 0x1e1   : > { %6466 = vmatprep.mubr.bf16.mxu0 %v10151_v7  ;;  %v10246_v6 = vld [vmem:[#allocation6 + $0x464] ss:$8 sps:$4 sm:$0xff]  }
 0x1e2   : > { %5719 = vmatpush1.bf16.msra.mxu1 %v10143_v8  ;;  %v10250_v7 = vld [vmem:[#allocation6 + $0xb64] ss:$8 sps:$4 sm:$0xff]   ;;  %v10243_v8 = vld [vmem:[%s11555_s22 + $0x348] ss:$136 sps:$4 sm:$0xff]  }
 0x1e3   : > { %6510 = vmatpush1.bf16.msra.mxu0 %v10146_v9  ;;  %5720 = vmatprep.subr.bf16.mxu1 %v10156_v10  ;;  %v10244_v9 = vld [vmem:[#allocation6 + $0x460] ss:$8 sps:$4 sm:$0xff]  }
 0x1e4   : > { %6511 = vmatprep.subr.bf16.mxu0 %v10160_v11  ;;  %v10247_v10 = vld [vmem:[%s11555_s22 + $0x380] ss:$136 sps:$4 sm:$0xff]  }
 0x1e5   : > { %5676 = vmatmul.mubr.bf16.gmra.mrb[24].mxu1 %v10153_v12  ;;  %v10248_v11 = vld [vmem:[#allocation6 + $0xb60] ss:$8 sps:$4 sm:$0xff]   ;;  %v10253_v12 = vld [vmem:[#allocation6 + $0x474] ss:$8 sps:$4 sm:$0xff]  }
 0x1e6   : > { %6467 = vmatmul.mubr.bf16.gmra.mrb[24].mxu0 %v10157_v14  ;;  %5721 = vmatpush1.bf16.msra.mxu1 %v10154_v13  ;;  %v10256_v13 = vld [vmem:[#allocation6 + $0xb74] ss:$8 sps:$4 sm:$0xff]  }
 0x1e7   : > { %6512 = vmatpush1.bf16.msra.mxu0 %v10158_v15  ;;  %5722 = vmatprep.subr.bf16.mxu1 %v10163_v16  ;;  %v10257_v14 = vld [vmem:[%s11555_s22 + $0x45c] ss:$136 sps:$4 sm:$0xff]   ;;  %v10251_v16 = vld [vmem:[#allocation6 + $0x470] ss:$8 sps:$4 sm:$0xff]  }
 0x1e8   : > { %6513 = vmatprep.subr.bf16.mxu0 %v10166_v17  ;;  %5685 = vmatprep.mubr.bf16.mxu1 %v10167_v18  ;;  %v10259_v15 = vld [vmem:[%s11555_s22 + $0x494] ss:$136 sps:$4 sm:$0xff]   ;;  %v10254_v17 = vld [vmem:[#allocation6 + $0xb70] ss:$8 sps:$4 sm:$0xff]   ;;  %v10264_v18 = vld [vmem:[#allocation6 + $0x484] ss:$8 sps:$4 sm:$0xff]  }
 0x1e9   : > { %6476 = vmatprep.mubr.bf16.mxu0 %v10169_v19  ;;  %v10268_v19 = vld [vmem:[#allocation6 + $0xb84] ss:$8 sps:$4 sm:$0xff]  }
 0x1ea   : > { %5723 = vmatpush1.bf16.msra.mxu1 %v10161_v20  ;;  %v10261_v20 = vld [vmem:[%s11555_s22 + $0x458] ss:$136 sps:$4 sm:$0xff]  }
 0x1eb   : > { %6514 = vmatpush1.bf16.msra.mxu0 %v10164_v21  ;;  %5724 = vmatprep.subr.bf16.mxu1 %v10174_v22  ;;  %v10262_v21 = vld [vmem:[#allocation6 + $0x480] ss:$8 sps:$4 sm:$0xff]   ;;  %v10265_v22 = vld [vmem:[%s11555_s22 + $0x490] ss:$136 sps:$4 sm:$0xff]  }
 0x1ec   : > { %6515 = vmatprep.subr.bf16.mxu0 %v10178_v23  ;;  %v10266_v23 = vld [vmem:[#allocation6 + $0xb80] ss:$8 sps:$4 sm:$0xff]  }
 0x1ed   : > { %5686 = vmatmul.mubr.bf16.gmra.mrb[28].mxu1 %v10171_v24  ;;  %v10271_v24 = vld [vmem:[#allocation6 + $0x494] ss:$8 sps:$4 sm:$0xff]  }
 0x1ee   : > { %6477 = vmatmul.mubr.bf16.gmra.mrb[28].mxu0 %v10175_v26  ;;  %5725 = vmatpush1.bf16.msra.mxu1 %v10172_v25  ;;  %v10274_v25 = vld [vmem:[#allocation6 + $0xb94] ss:$8 sps:$4 sm:$0xff]  }
 0x1ef   : > { %6516 = vmatpush1.bf16.msra.mxu0 %v10176_v27  ;;  %5726 = vmatprep.subr.bf16.mxu1 %v10181_v28  ;;  %v10275_v26 = vld [vmem:[%s11555_s22 + $0x56c] ss:$136 sps:$4 sm:$0xff]   ;;  %v10269_v28 = vld [vmem:[#allocation6 + $0x490] ss:$8 sps:$4 sm:$0xff]  }
 0x1f0   : > { %6517 = vmatprep.subr.bf16.mxu0 %v10184_v29  ;;  %5728 = vmatprep.mubr.bf16.mxu1 %v10187_v30  ;;  %v10277_v27 = vld [vmem:[%s11555_s22 + $0x5a4] ss:$136 sps:$4 sm:$0xff]   ;;  %v10272_v29 = vld [vmem:[#allocation6 + $0xb90] ss:$8 sps:$4 sm:$0xff]  }
 0x1f1   : > { %6519 = vmatprep.mubr.bf16.mxu0 %v10190_v31  ;;  %v10282_v30 = vld [vmem:[#allocation6 + $0x4a4] ss:$8 sps:$4 sm:$0xff]  }
 0x1f2   : > { %5727 = vmatpush1.bf16.msra.mxu1 %v10179_v32  ;;  %v10286_v31 = vld [vmem:[#allocation6 + $0xba4] ss:$8 sps:$4 sm:$0xff]   ;;  %v10279_v32 = vld [vmem:[%s11555_s22 + $0x568] ss:$136 sps:$4 sm:$0xff]  }
 0x1f3   : > { %6518 = vmatpush1.bf16.msra.mxu0 %v10182_v33  ;;  %5809 = vmatprep.subr.bf16.mxu1 %v10193_v34  ;;  %v10280_v33 = vld [vmem:[#allocation6 + $0x4a0] ss:$8 sps:$4 sm:$0xff]  }
 0x1f4   : > { %6600 = vmatprep.subr.bf16.mxu0 %v10196_v35  ;;  %v10283_v34 = vld [vmem:[%s11555_s22 + $0x5a0] ss:$136 sps:$4 sm:$0xff]  }
 0x1f5   : > { %5729 = vmatmul.mubr.bf16.vlgmr.msra.gmra.mrb[0].mxu1 %v10185_v36  ;;  %v10284_v35 = vld [vmem:[#allocation6 + $0xba0] ss:$8 sps:$4 sm:$0xff]   ;;  %v10289_v36 = vld [vmem:[#allocation6 + $0x4b4] ss:$8 sps:$4 sm:$0xff]  }
 0x1f6   : > { %6520 = vmatmul.mubr.bf16.vlgmr.msra.gmra.mrb[0].mxu0 %v10188_v37  ;;  %5810 = vmatpush1.bf16.msra.mxu1 %v10191_v38  ;;  %v10292_v37 = vld [vmem:[#allocation6 + $0xbb4] ss:$8 sps:$4 sm:$0xff]  }
 0x1f7   : > { %6601 = vmatpush1.bf16.msra.mxu0 %v10194_v39  ;;  %5811 = vmatprep.subr.bf16.mxu1 %v10199_v40  ;;  %v10293_v38 = vld [vmem:[%s11555_s22 + $0x67c] ss:$136 sps:$4 sm:$0xff]   ;;  %v10287_v40 = vld [vmem:[#allocation6 + $0x4b0] ss:$8 sps:$4 sm:$0xff]  }
 0x1f8   : > { %6602 = vmatprep.subr.bf16.mxu0 %v10202_v41  ;;  %5738 = vmatprep.mubr.bf16.mxu1 %v10203_v42  ;;  %v10295_v39 = vld [vmem:[%s11555_s22 + $0x6b4] ss:$136 sps:$4 sm:$0xff]   ;;  %v10290_v41 = vld [vmem:[#allocation6 + $0xbb0] ss:$8 sps:$4 sm:$0xff]   ;;  %v10300_v42 = vld [vmem:[#allocation6 + $0x4c4] ss:$8 sps:$4 sm:$0xff]  }
 0x1f9   : > { %6529 = vmatprep.mubr.bf16.mxu0 %v10205_v43  ;;  %v10304_v43 = vld [vmem:[#allocation6 + $0xbc4] ss:$8 sps:$4 sm:$0xff]  }
 0x1fa   : > { %5812 = vmatpush1.bf16.msra.mxu1 %v10197_v44  ;;  %v10297_v44 = vld [vmem:[%s11555_s22 + $0x678] ss:$136 sps:$4 sm:$0xff]  }
 0x1fb   : > { %6603 = vmatpush1.bf16.msra.mxu0 %v10200_v45  ;;  %5813 = vmatprep.subr.bf16.mxu1 %v10210_v46  ;;  %v10298_v45 = vld [vmem:[#allocation6 + $0x4c0] ss:$8 sps:$4 sm:$0xff]   ;;  %v10301_v46 = vld [vmem:[%s11555_s22 + $0x6b0] ss:$136 sps:$4 sm:$0xff]  }
 0x1fc   : > { %6604 = vmatprep.subr.bf16.mxu0 %v10214_v47  ;;  %v10302_v47 = vld [vmem:[#allocation6 + $0xbc0] ss:$8 sps:$4 sm:$0xff]  }
 0x1fd   : > { %5739 = vmatmul.mubr.bf16.gmra.mrb[4].mxu1 %v10207_v48  ;;  %v10307_v48 = vld [vmem:[#allocation6 + $0x4d4] ss:$8 sps:$4 sm:$0xff]  }
 0x1fe   : > { %6530 = vmatmul.mubr.bf16.gmra.mrb[4].mxu0 %v10211_v50  ;;  %5814 = vmatpush1.bf16.msra.mxu1 %v10208_v49  ;;  %v10310_v49 = vld [vmem:[#allocation6 + $0xbd4] ss:$8 sps:$4 sm:$0xff]  }
 0x1ff   : > { %6605 = vmatpush1.bf16.msra.mxu0 %v10212_v51  ;;  %5815 = vmatprep.subr.bf16.mxu1 %v10217_v52  ;;  %v10311_v50 = vld [vmem:[%s11555_s22 + $0x78c] ss:$136 sps:$4 sm:$0xff]   ;;  %v10305_v52 = vld [vmem:[#allocation6 + $0x4d0] ss:$8 sps:$4 sm:$0xff]  }
 0x200   : > { %6606 = vmatprep.subr.bf16.mxu0 %v10220_v53  ;;  %5748 = vmatprep.mubr.bf16.mxu1 %v10221_v54  ;;  %v10313_v51 = vld [vmem:[%s11555_s22 + $0x7c4] ss:$136 sps:$4 sm:$0xff]   ;;  %v10308_v53 = vld [vmem:[#allocation6 + $0xbd0] ss:$8 sps:$4 sm:$0xff]  }
 0x201   : > { %6539 = vmatprep.mubr.bf16.mxu0 %v10223_v55  ;;  %v10318_v54 = vld [vmem:[#allocation6 + $0x4e4] ss:$8 sps:$4 sm:$0xff]  }
 0x202   : > { %5816 = vmatpush1.bf16.msra.mxu1 %v10215_v56  ;;  %v10322_v55 = vld [vmem:[#allocation6 + $0xbe4] ss:$8 sps:$4 sm:$0xff]   ;;  %v10315_v56 = vld [vmem:[%s11555_s22 + $0x788] ss:$136 sps:$4 sm:$0xff]  }
 0x203   : > { %6607 = vmatpush1.bf16.msra.mxu0 %v10218_v57  ;;  %5817 = vmatprep.subr.bf16.mxu1 %v10228_v58  ;;  %v10316_v57 = vld [vmem:[#allocation6 + $0x4e0] ss:$8 sps:$4 sm:$0xff]  }
 0x204   : > { %6608 = vmatprep.subr.bf16.mxu0 %v10232_v59  ;;  %v10319_v58 = vld [vmem:[%s11555_s22 + $0x7c0] ss:$136 sps:$4 sm:$0xff]  }
 0x205   : > { %5749 = vmatmul.mubr.bf16.gmra.mrb[8].mxu1 %v10225_v60  ;;  %v10320_v59 = vld [vmem:[#allocation6 + $0xbe0] ss:$8 sps:$4 sm:$0xff]   ;;  %v10325_v60 = vld [vmem:[#allocation6 + $0x4f4] ss:$8 sps:$4 sm:$0xff]  }
 0x206   : > { %6540 = vmatmul.mubr.bf16.gmra.mrb[8].mxu0 %v10229_v62  ;;  %5818 = vmatpush1.bf16.msra.mxu1 %v10226_v61  ;;  %v10328_v61 = vld [vmem:[#allocation6 + $0xbf4] ss:$8 sps:$4 sm:$0xff]   ;;  %v10331_v62 = vld [vmem:[%s11555_s22 + $0x24] ss:$136 sps:$4 sm:$0xff]  }
 0x207   : > { %6609 = vmatpush1.bf16.msra.mxu0 %v10230_v63  ;;  %5819 = vmatprep.subr.bf16.mxu1 %v10235_v0  ;;  %v10334_v63 = vld [vmem:[%s11555_s22 + $0x5c] ss:$136 sps:$4 sm:$0xff]   ;;  %v10323_v0 = vld [vmem:[#allocation6 + $0x4f0] ss:$8 sps:$4 sm:$0xff]  }
 0x208   : > { %6610 = vmatprep.subr.bf16.mxu0 %v10238_v1  ;;  %5758 = vmatprep.mubr.bf16.mxu1 %v10239_v2  ;;  %v10326_v1 = vld [vmem:[#allocation6 + $0xbf0] ss:$8 sps:$4 sm:$0xff]   ;;  %v10337_v2 = vld [vmem:[#allocation6 + $0x504] ss:$8 sps:$4 sm:$0xff]  }
 0x209   : > { %6549 = vmatprep.mubr.bf16.mxu0 %v10241_v3  ;;  %v10340_v3 = vld [vmem:[#allocation6 + $0xc04] ss:$8 sps:$4 sm:$0xff]  }
 0x20a   : > { %5820 = vmatpush1.bf16.msra.mxu1 %v10233_v4  ;;  %v10329_v4 = vld [vmem:[%s11555_s22 + $0x20] ss:$136 sps:$4 sm:$0xff]  }
 0x20b   : > { %6611 = vmatpush1.bf16.msra.mxu0 %v10236_v5  ;;  %5821 = vmatprep.subr.bf16.mxu1 %v10246_v6  ;;  %v10332_v5 = vld [vmem:[%s11555_s22 + $0x58] ss:$136 sps:$4 sm:$0xff]  }
 0x20c   : > { %6612 = vmatprep.subr.bf16.mxu0 %v10250_v7  ;;  %v10335_v6 = vld [vmem:[#allocation6 + $0x500] ss:$8 sps:$4 sm:$0xff]  }
 0x20d   : > { %5759 = vmatmul.mubr.bf16.gmra.mrb[12].mxu1 %v10243_v8  ;;  %v10338_v7 = vld [vmem:[#allocation6 + $0xc00] ss:$8 sps:$4 sm:$0xff]   ;;  %v10343_v8 = vld [vmem:[#allocation6 + $0x514] ss:$8 sps:$4 sm:$0xff]  }
 0x20e   : > { %6550 = vmatmul.mubr.bf16.gmra.mrb[12].mxu0 %v10247_v10  ;;  %5822 = vmatpush1.bf16.msra.mxu1 %v10244_v9  ;;  %v10346_v9 = vld [vmem:[#allocation6 + $0xc14] ss:$8 sps:$4 sm:$0xff]  }
 0x20f   : > { %6613 = vmatpush1.bf16.msra.mxu0 %v10248_v11  ;;  %5823 = vmatprep.subr.bf16.mxu1 %v10253_v12  ;;  %v10347_v10 = vld [vmem:[%s11555_s22 + $0x134] ss:$136 sps:$4 sm:$0xff]   ;;  %v10341_v12 = vld [vmem:[#allocation6 + $0x510] ss:$8 sps:$4 sm:$0xff]  }
 0x210   : > { %6614 = vmatprep.subr.bf16.mxu0 %v10256_v13  ;;  %5768 = vmatprep.mubr.bf16.mxu1 %v10257_v14  ;;  %v10349_v11 = vld [vmem:[%s11555_s22 + $0x16c] ss:$136 sps:$4 sm:$0xff]   ;;  %v10344_v13 = vld [vmem:[#allocation6 + $0xc10] ss:$8 sps:$4 sm:$0xff]  }
 0x211   : > { %6559 = vmatprep.mubr.bf16.mxu0 %v10259_v15  ;;  %v10354_v14 = vld [vmem:[#allocation6 + $0x524] ss:$8 sps:$4 sm:$0xff]  }
 0x212   : > { %5824 = vmatpush1.bf16.msra.mxu1 %v10251_v16  ;;  %v10358_v15 = vld [vmem:[#allocation6 + $0xc24] ss:$8 sps:$4 sm:$0xff]   ;;  %v10351_v16 = vld [vmem:[%s11555_s22 + $0x130] ss:$136 sps:$4 sm:$0xff]  }
 0x213   : > { %6615 = vmatpush1.bf16.msra.mxu0 %v10254_v17  ;;  %5825 = vmatprep.subr.bf16.mxu1 %v10264_v18  ;;  %v10352_v17 = vld [vmem:[#allocation6 + $0x520] ss:$8 sps:$4 sm:$0xff]  }
 0x214   : > { %6616 = vmatprep.subr.bf16.mxu0 %v10268_v19  ;;  %v10355_v18 = vld [vmem:[%s11555_s22 + $0x168] ss:$136 sps:$4 sm:$0xff]  }
 0x215   : > { %5769 = vmatmul.mubr.bf16.gmra.mrb[16].mxu1 %v10261_v20  ;;  %v10356_v19 = vld [vmem:[#allocation6 + $0xc20] ss:$8 sps:$4 sm:$0xff]   ;;  %v10361_v20 = vld [vmem:[#allocation6 + $0x534] ss:$8 sps:$4 sm:$0xff]  }
 0x216   : > { %6560 = vmatmul.mubr.bf16.gmra.mrb[16].mxu0 %v10265_v22  ;;  %5826 = vmatpush1.bf16.msra.mxu1 %v10262_v21  ;;  %v10364_v21 = vld [vmem:[#allocation6 + $0xc34] ss:$8 sps:$4 sm:$0xff]   ;;  %v10365_v22 = vld [vmem:[%s11555_s22 + $0x244] ss:$136 sps:$4 sm:$0xff]  }
 0x217   : > { %6617 = vmatpush1.bf16.msra.mxu0 %v10266_v23  ;;  %5827 = vmatprep.subr.bf16.mxu1 %v10271_v24  ;;  %v10367_v23 = vld [vmem:[%s11555_s22 + $0x27c] ss:$136 sps:$4 sm:$0xff]   ;;  %v10359_v24 = vld [vmem:[#allocation6 + $0x530] ss:$8 sps:$4 sm:$0xff]  }
 0x218   : > { %6618 = vmatprep.subr.bf16.mxu0 %v10274_v25  ;;  %5778 = vmatprep.mubr.bf16.mxu1 %v10275_v26  ;;  %v10362_v25 = vld [vmem:[#allocation6 + $0xc30] ss:$8 sps:$4 sm:$0xff]   ;;  %v10372_v26 = vld [vmem:[#allocation6 + $0x544] ss:$8 sps:$4 sm:$0xff]  }
 0x219   : > { %6569 = vmatprep.mubr.bf16.mxu0 %v10277_v27  ;;  %v10376_v27 = vld [vmem:[#allocation6 + $0xc44] ss:$8 sps:$4 sm:$0xff]  }
 0x21a   : > { %5828 = vmatpush1.bf16.msra.mxu1 %v10269_v28  ;;  %v10369_v28 = vld [vmem:[%s11555_s22 + $0x240] ss:$136 sps:$4 sm:$0xff]  }
 0x21b   : > { %6619 = vmatpush1.bf16.msra.mxu0 %v10272_v29  ;;  %5829 = vmatprep.subr.bf16.mxu1 %v10282_v30  ;;  %v10370_v29 = vld [vmem:[#allocation6 + $0x540] ss:$8 sps:$4 sm:$0xff]  }
 0x21c   : > { %6620 = vmatprep.subr.bf16.mxu0 %v10286_v31  ;;  %v10373_v30 = vld [vmem:[%s11555_s22 + $0x278] ss:$136 sps:$4 sm:$0xff]  }
 0x21d   : > { %5779 = vmatmul.mubr.bf16.gmra.mrb[20].mxu1 %v10279_v32  ;;  %v10374_v31 = vld [vmem:[#allocation6 + $0xc40] ss:$8 sps:$4 sm:$0xff]   ;;  %v10379_v32 = vld [vmem:[#allocation6 + $0x554] ss:$8 sps:$4 sm:$0xff]  }
 0x21e   : > { %6570 = vmatmul.mubr.bf16.gmra.mrb[20].mxu0 %v10283_v34  ;;  %5830 = vmatpush1.bf16.msra.mxu1 %v10280_v33  ;;  %v10382_v33 = vld [vmem:[#allocation6 + $0xc54] ss:$8 sps:$4 sm:$0xff]  }
 0x21f   : > { %6621 = vmatpush1.bf16.msra.mxu0 %v10284_v35  ;;  %5831 = vmatprep.subr.bf16.mxu1 %v10289_v36  ;;  %v10383_v34 = vld [vmem:[%s11555_s22 + $0x354] ss:$136 sps:$4 sm:$0xff]   ;;  %v10377_v36 = vld [vmem:[#allocation6 + $0x550] ss:$8 sps:$4 sm:$0xff]  }
 0x220   : > { %6622 = vmatprep.subr.bf16.mxu0 %v10292_v37  ;;  %5788 = vmatprep.mubr.bf16.mxu1 %v10293_v38  ;;  %v10385_v35 = vld [vmem:[%s11555_s22 + $0x38c] ss:$136 sps:$4 sm:$0xff]   ;;  %v10380_v37 = vld [vmem:[#allocation6 + $0xc50] ss:$8 sps:$4 sm:$0xff]  }
 0x221   : > { %6579 = vmatprep.mubr.bf16.mxu0 %v10295_v39  ;;  %v10390_v38 = vld [vmem:[#allocation6 + $0x564] ss:$8 sps:$4 sm:$0xff]  }
 0x222   : > { %5832 = vmatpush1.bf16.msra.mxu1 %v10287_v40  ;;  %v10394_v39 = vld [vmem:[#allocation6 + $0xc64] ss:$8 sps:$4 sm:$0xff]   ;;  %v10387_v40 = vld [vmem:[%s11555_s22 + $0x350] ss:$136 sps:$4 sm:$0xff]  }
 0x223   : > { %6623 = vmatpush1.bf16.msra.mxu0 %v10290_v41  ;;  %5833 = vmatprep.subr.bf16.mxu1 %v10300_v42  ;;  %v10388_v41 = vld [vmem:[#allocation6 + $0x560] ss:$8 sps:$4 sm:$0xff]  }
 0x224   : > { %6624 = vmatprep.subr.bf16.mxu0 %v10304_v43  ;;  %v10391_v42 = vld [vmem:[%s11555_s22 + $0x388] ss:$136 sps:$4 sm:$0xff]  }
 0x225   : > { %5789 = vmatmul.mubr.bf16.gmra.mrb[24].mxu1 %v10297_v44  ;;  %v10392_v43 = vld [vmem:[#allocation6 + $0xc60] ss:$8 sps:$4 sm:$0xff]   ;;  %v10397_v44 = vld [vmem:[#allocation6 + $0x574] ss:$8 sps:$4 sm:$0xff]  }
 0x226   : > { %6580 = vmatmul.mubr.bf16.gmra.mrb[24].mxu0 %v10301_v46  ;;  %5834 = vmatpush1.bf16.msra.mxu1 %v10298_v45  ;;  %v10400_v45 = vld [vmem:[#allocation6 + $0xc74] ss:$8 sps:$4 sm:$0xff]   ;;  %v10401_v46 = vld [vmem:[%s11555_s22 + $0x464] ss:$136 sps:$4 sm:$0xff]  }
 0x227   : > { %6625 = vmatpush1.bf16.msra.mxu0 %v10302_v47  ;;  %5835 = vmatprep.subr.bf16.mxu1 %v10307_v48  ;;  %v10403_v47 = vld [vmem:[%s11555_s22 + $0x49c] ss:$136 sps:$4 sm:$0xff]   ;;  %v10395_v48 = vld [vmem:[#allocation6 + $0x570] ss:$8 sps:$4 sm:$0xff]  }
 0x228   : > { %6626 = vmatprep.subr.bf16.mxu0 %v10310_v49  ;;  %5798 = vmatprep.mubr.bf16.mxu1 %v10311_v50  ;;  %v10398_v49 = vld [vmem:[#allocation6 + $0xc70] ss:$8 sps:$4 sm:$0xff]   ;;  %v10408_v50 = vld [vmem:[#allocation6 + $0x584] ss:$8 sps:$4 sm:$0xff]  }
 0x229   : > { %6589 = vmatprep.mubr.bf16.mxu0 %v10313_v51  ;;  %v10412_v51 = vld [vmem:[#allocation6 + $0xc84] ss:$8 sps:$4 sm:$0xff]  }
 0x22a   : > { %5836 = vmatpush1.bf16.msra.mxu1 %v10305_v52  ;;  %v10405_v52 = vld [vmem:[%s11555_s22 + $0x460] ss:$136 sps:$4 sm:$0xff]  }
 0x22b   : > { %6627 = vmatpush1.bf16.msra.mxu0 %v10308_v53  ;;  %5837 = vmatprep.subr.bf16.mxu1 %v10318_v54  ;;  %v10406_v53 = vld [vmem:[#allocation6 + $0x580] ss:$8 sps:$4 sm:$0xff]  }
 0x22c   : > { %6628 = vmatprep.subr.bf16.mxu0 %v10322_v55  ;;  %v10409_v54 = vld [vmem:[%s11555_s22 + $0x498] ss:$136 sps:$4 sm:$0xff]  }
 0x22d   : > { %5799 = vmatmul.mubr.bf16.gmra.mrb[28].mxu1 %v10315_v56  ;;  %v10410_v55 = vld [vmem:[#allocation6 + $0xc80] ss:$8 sps:$4 sm:$0xff]   ;;  %v10415_v56 = vld [vmem:[#allocation6 + $0x594] ss:$8 sps:$4 sm:$0xff]  }
 0x22e   : > { %6590 = vmatmul.mubr.bf16.gmra.mrb[28].mxu0 %v10319_v58  ;;  %5838 = vmatpush1.bf16.msra.mxu1 %v10316_v57  ;;  %v10418_v57 = vld [vmem:[#allocation6 + $0xc94] ss:$8 sps:$4 sm:$0xff]  }
 0x22f   : > { %6629 = vmatpush1.bf16.msra.mxu0 %v10320_v59  ;;  %5839 = vmatprep.subr.bf16.mxu1 %v10325_v60  ;;  %v10419_v58 = vld [vmem:[%s11555_s22 + $0x574] ss:$136 sps:$4 sm:$0xff]   ;;  %v10413_v60 = vld [vmem:[#allocation6 + $0x590] ss:$8 sps:$4 sm:$0xff]  }
 0x230   : > { %6630 = vmatprep.subr.bf16.mxu0 %v10328_v61  ;;  %5841 = vmatprep.mubr.bf16.mxu1 %v10331_v62  ;;  %v10421_v59 = vld [vmem:[%s11555_s22 + $0x5ac] ss:$136 sps:$4 sm:$0xff]   ;;  %v10416_v61 = vld [vmem:[#allocation6 + $0xc90] ss:$8 sps:$4 sm:$0xff]  }
 0x231   : > { %6632 = vmatprep.mubr.bf16.mxu0 %v10334_v63  ;;  %v10426_v62 = vld [vmem:[#allocation6 + $0x5a4] ss:$8 sps:$4 sm:$0xff]  }
 0x232   : > { %5840 = vmatpush1.bf16.msra.mxu1 %v10323_v0  ;;  %v10430_v63 = vld [vmem:[#allocation6 + $0xca4] ss:$8 sps:$4 sm:$0xff]   ;;  %v10423_v0 = vld [vmem:[%s11555_s22 + $0x570] ss:$136 sps:$4 sm:$0xff]  }
 0x233   : > { %6631 = vmatpush1.bf16.msra.mxu0 %v10326_v1  ;;  %5922 = vmatprep.subr.bf16.mxu1 %v10337_v2  ;;  %v10424_v1 = vld [vmem:[#allocation6 + $0x5a0] ss:$8 sps:$4 sm:$0xff]  }
 0x234   : > { %6713 = vmatprep.subr.bf16.mxu0 %v10340_v3  ;;  %v10427_v2 = vld [vmem:[%s11555_s22 + $0x5a8] ss:$136 sps:$4 sm:$0xff]  }
 0x235   : > { %5842 = vmatmul.mubr.bf16.vlgmr.msra.gmra.mrb[0].mxu1 %v10329_v4  ;;  %v10428_v3 = vld [vmem:[#allocation6 + $0xca0] ss:$8 sps:$4 sm:$0xff]   ;;  %v10433_v4 = vld [vmem:[#allocation6 + $0x5b4] ss:$8 sps:$4 sm:$0xff]  }
 0x236   : > { %6633 = vmatmul.mubr.bf16.vlgmr.msra.gmra.mrb[0].mxu0 %v10332_v5  ;;  %5923 = vmatpush1.bf16.msra.mxu1 %v10335_v6  ;;  %v10436_v5 = vld [vmem:[#allocation6 + $0xcb4] ss:$8 sps:$4 sm:$0xff]   ;;  %v10437_v6 = vld [vmem:[%s11555_s22 + $0x684] ss:$136 sps:$4 sm:$0xff]  }
 0x237   : > { %6714 = vmatpush1.bf16.msra.mxu0 %v10338_v7  ;;  %5924 = vmatprep.subr.bf16.mxu1 %v10343_v8  ;;  %v10439_v7 = vld [vmem:[%s11555_s22 + $0x6bc] ss:$136 sps:$4 sm:$0xff]   ;;  %v10431_v8 = vld [vmem:[#allocation6 + $0x5b0] ss:$8 sps:$4 sm:$0xff]  }
 0x238   : > { %6715 = vmatprep.subr.bf16.mxu0 %v10346_v9  ;;  %5851 = vmatprep.mubr.bf16.mxu1 %v10347_v10  ;;  %v10434_v9 = vld [vmem:[#allocation6 + $0xcb0] ss:$8 sps:$4 sm:$0xff]   ;;  %v10444_v10 = vld [vmem:[#allocation6 + $0x5c4] ss:$8 sps:$4 sm:$0xff]  }
 0x239   : > { %6642 = vmatprep.mubr.bf16.mxu0 %v10349_v11  ;;  %v10448_v11 = vld [vmem:[#allocation6 + $0xcc4] ss:$8 sps:$4 sm:$0xff]  }
 0x23a   : > { %5925 = vmatpush1.bf16.msra.mxu1 %v10341_v12  ;;  %v10441_v12 = vld [vmem:[%s11555_s22 + $0x680] ss:$136 sps:$4 sm:$0xff]  }
 0x23b   : > { %6716 = vmatpush1.bf16.msra.mxu0 %v10344_v13  ;;  %5926 = vmatprep.subr.bf16.mxu1 %v10354_v14  ;;  %v10442_v13 = vld [vmem:[#allocation6 + $0x5c0] ss:$8 sps:$4 sm:$0xff]  }
 0x23c   : > { %6717 = vmatprep.subr.bf16.mxu0 %v10358_v15  ;;  %v10445_v14 = vld [vmem:[%s11555_s22 + $0x6b8] ss:$136 sps:$4 sm:$0xff]  }
 0x23d   : > { %5852 = vmatmul.mubr.bf16.gmra.mrb[4].mxu1 %v10351_v16  ;;  %v10446_v15 = vld [vmem:[#allocation6 + $0xcc0] ss:$8 sps:$4 sm:$0xff]   ;;  %v10451_v16 = vld [vmem:[#allocation6 + $0x5d4] ss:$8 sps:$4 sm:$0xff]  }
 0x23e   : > { %6643 = vmatmul.mubr.bf16.gmra.mrb[4].mxu0 %v10355_v18  ;;  %5927 = vmatpush1.bf16.msra.mxu1 %v10352_v17  ;;  %v10454_v17 = vld [vmem:[#allocation6 + $0xcd4] ss:$8 sps:$4 sm:$0xff]  }
 0x23f   : > { %6718 = vmatpush1.bf16.msra.mxu0 %v10356_v19  ;;  %5928 = vmatprep.subr.bf16.mxu1 %v10361_v20  ;;  %v10455_v18 = vld [vmem:[%s11555_s22 + $0x794] ss:$136 sps:$4 sm:$0xff]   ;;  %v10449_v20 = vld [vmem:[#allocation6 + $0x5d0] ss:$8 sps:$4 sm:$0xff]  }
 0x240   : > { %6719 = vmatprep.subr.bf16.mxu0 %v10364_v21  ;;  %5861 = vmatprep.mubr.bf16.mxu1 %v10365_v22  ;;  %v10457_v19 = vld [vmem:[%s11555_s22 + $0x7cc] ss:$136 sps:$4 sm:$0xff]   ;;  %v10452_v21 = vld [vmem:[#allocation6 + $0xcd0] ss:$8 sps:$4 sm:$0xff]  }
 0x241   : > { %6652 = vmatprep.mubr.bf16.mxu0 %v10367_v23  ;;  %v10462_v22 = vld [vmem:[#allocation6 + $0x5e4] ss:$8 sps:$4 sm:$0xff]  }
 0x242   : > { %5929 = vmatpush1.bf16.msra.mxu1 %v10359_v24  ;;  %v10466_v23 = vld [vmem:[#allocation6 + $0xce4] ss:$8 sps:$4 sm:$0xff]   ;;  %v10459_v24 = vld [vmem:[%s11555_s22 + $0x790] ss:$136 sps:$4 sm:$0xff]  }
 0x243   : > { %6720 = vmatpush1.bf16.msra.mxu0 %v10362_v25  ;;  %5930 = vmatprep.subr.bf16.mxu1 %v10372_v26  ;;  %v10460_v25 = vld [vmem:[#allocation6 + $0x5e0] ss:$8 sps:$4 sm:$0xff]  }
 0x244   : > { %6721 = vmatprep.subr.bf16.mxu0 %v10376_v27  ;;  %v10463_v26 = vld [vmem:[%s11555_s22 + $0x7c8] ss:$136 sps:$4 sm:$0xff]  }
 0x245   : > { %5862 = vmatmul.mubr.bf16.gmra.mrb[8].mxu1 %v10369_v28  ;;  %v10464_v27 = vld [vmem:[#allocation6 + $0xce0] ss:$8 sps:$4 sm:$0xff]   ;;  %v10469_v28 = vld [vmem:[#allocation6 + $0x5f4] ss:$8 sps:$4 sm:$0xff]  }
 0x246   : > { %6653 = vmatmul.mubr.bf16.gmra.mrb[8].mxu0 %v10373_v30  ;;  %5931 = vmatpush1.bf16.msra.mxu1 %v10370_v29  ;;  %v10472_v29 = vld [vmem:[#allocation6 + $0xcf4] ss:$8 sps:$4 sm:$0xff]  }
 0x247   : > { %6722 = vmatpush1.bf16.msra.mxu0 %v10374_v31  ;;  %5932 = vmatprep.subr.bf16.mxu1 %v10379_v32  ;;  %v10475_v30 = vld [vmem:[%s11555_s22 + $0x2c] ss:$136 sps:$4 sm:$0xff]   ;;  %v10467_v32 = vld [vmem:[#allocation6 + $0x5f0] ss:$8 sps:$4 sm:$0xff]  }
 0x248   : > { %6723 = vmatprep.subr.bf16.mxu0 %v10382_v33  ;;  %5871 = vmatprep.mubr.bf16.mxu1 %v10383_v34  ;;  %v10478_v31 = vld [vmem:[%s11555_s22 + $0x64] ss:$136 sps:$4 sm:$0xff]   ;;  %v10470_v33 = vld [vmem:[#allocation6 + $0xcf0] ss:$8 sps:$4 sm:$0xff]  }
 0x249   : > { %6662 = vmatprep.mubr.bf16.mxu0 %v10385_v35  ;;  %v10481_v34 = vld [vmem:[#allocation6 + $0x604] ss:$8 sps:$4 sm:$0xff]  }
 0x24a   : > { %5933 = vmatpush1.bf16.msra.mxu1 %v10377_v36  ;;  %v10484_v35 = vld [vmem:[#allocation6 + $0xd04] ss:$8 sps:$4 sm:$0xff]   ;;  %v10473_v36 = vld [vmem:[%s11555_s22 + $0x28] ss:$136 sps:$4 sm:$0xff]  }
 0x24b   : > { %6724 = vmatpush1.bf16.msra.mxu0 %v10380_v37  ;;  %5934 = vmatprep.subr.bf16.mxu1 %v10390_v38  ;;  %v10476_v37 = vld [vmem:[%s11555_s22 + $0x60] ss:$136 sps:$4 sm:$0xff]  }
 0x24c   : > { %6725 = vmatprep.subr.bf16.mxu0 %v10394_v39  ;;  %v10479_v38 = vld [vmem:[#allocation6 + $0x600] ss:$8 sps:$4 sm:$0xff]  }
 0x24d   : > { %5872 = vmatmul.mubr.bf16.gmra.mrb[12].mxu1 %v10387_v40  ;;  %v10482_v39 = vld [vmem:[#allocation6 + $0xd00] ss:$8 sps:$4 sm:$0xff]   ;;  %v10487_v40 = vld [vmem:[#allocation6 + $0x614] ss:$8 sps:$4 sm:$0xff]  }
 0x24e   : > { %6663 = vmatmul.mubr.bf16.gmra.mrb[12].mxu0 %v10391_v42  ;;  %5935 = vmatpush1.bf16.msra.mxu1 %v10388_v41  ;;  %v10490_v41 = vld [vmem:[#allocation6 + $0xd14] ss:$8 sps:$4 sm:$0xff]  }
 0x24f   : > { %6726 = vmatpush1.bf16.msra.mxu0 %v10392_v43  ;;  %5936 = vmatprep.subr.bf16.mxu1 %v10397_v44  ;;  %v10491_v42 = vld [vmem:[%s11555_s22 + $0x13c] ss:$136 sps:$4 sm:$0xff]   ;;  %v10485_v44 = vld [vmem:[#allocation6 + $0x610] ss:$8 sps:$4 sm:$0xff]  }
 0x250   : > { %6727 = vmatprep.subr.bf16.mxu0 %v10400_v45  ;;  %5881 = vmatprep.mubr.bf16.mxu1 %v10401_v46  ;;  %v10493_v43 = vld [vmem:[%s11555_s22 + $0x174] ss:$136 sps:$4 sm:$0xff]   ;;  %v10488_v45 = vld [vmem:[#allocation6 + $0xd10] ss:$8 sps:$4 sm:$0xff]   ;;  %v10498_v46 = vld [vmem:[#allocation6 + $0x624] ss:$8 sps:$4 sm:$0xff]  }
 0x251   : > { %6672 = vmatprep.mubr.bf16.mxu0 %v10403_v47  ;;  %v10502_v47 = vld [vmem:[#allocation6 + $0xd24] ss:$8 sps:$4 sm:$0xff]  }
 0x252   : > { %5937 = vmatpush1.bf16.msra.mxu1 %v10395_v48  ;;  %v10495_v48 = vld [vmem:[%s11555_s22 + $0x138] ss:$136 sps:$4 sm:$0xff]  }
 0x253   : > { %6728 = vmatpush1.bf16.msra.mxu0 %v10398_v49  ;;  %5938 = vmatprep.subr.bf16.mxu1 %v10408_v50  ;;  %v10496_v49 = vld [vmem:[#allocation6 + $0x620] ss:$8 sps:$4 sm:$0xff]   ;;  %v10499_v50 = vld [vmem:[%s11555_s22 + $0x170] ss:$136 sps:$4 sm:$0xff]  }
 0x254   : > { %6729 = vmatprep.subr.bf16.mxu0 %v10412_v51  ;;  %v10500_v51 = vld [vmem:[#allocation6 + $0xd20] ss:$8 sps:$4 sm:$0xff]  }
 0x255   : > { %5882 = vmatmul.mubr.bf16.gmra.mrb[16].mxu1 %v10405_v52  ;;  %v10505_v52 = vld [vmem:[#allocation6 + $0x634] ss:$8 sps:$4 sm:$0xff]  }
 0x256   : > { %6673 = vmatmul.mubr.bf16.gmra.mrb[16].mxu0 %v10409_v54  ;;  %5939 = vmatpush1.bf16.msra.mxu1 %v10406_v53  ;;  %v10508_v53 = vld [vmem:[#allocation6 + $0xd34] ss:$8 sps:$4 sm:$0xff]  }
 0x257   : > { %6730 = vmatpush1.bf16.msra.mxu0 %v10410_v55  ;;  %5940 = vmatprep.subr.bf16.mxu1 %v10415_v56  ;;  %v10509_v54 = vld [vmem:[%s11555_s22 + $0x24c] ss:$136 sps:$4 sm:$0xff]   ;;  %v10503_v56 = vld [vmem:[#allocation6 + $0x630] ss:$8 sps:$4 sm:$0xff]  }
 0x258   : > { %6731 = vmatprep.subr.bf16.mxu0 %v10418_v57  ;;  %5891 = vmatprep.mubr.bf16.mxu1 %v10419_v58  ;;  %v10511_v55 = vld [vmem:[%s11555_s22 + $0x284] ss:$136 sps:$4 sm:$0xff]   ;;  %v10506_v57 = vld [vmem:[#allocation6 + $0xd30] ss:$8 sps:$4 sm:$0xff]  }
 0x259   : > { %6682 = vmatprep.mubr.bf16.mxu0 %v10421_v59  ;;  %v10516_v58 = vld [vmem:[#allocation6 + $0x644] ss:$8 sps:$4 sm:$0xff]  }
 0x25a   : > { %5941 = vmatpush1.bf16.msra.mxu1 %v10413_v60  ;;  %v10520_v59 = vld [vmem:[#allocation6 + $0xd44] ss:$8 sps:$4 sm:$0xff]   ;;  %v10513_v60 = vld [vmem:[%s11555_s22 + $0x248] ss:$136 sps:$4 sm:$0xff]  }
 0x25b   : > { %6732 = vmatpush1.bf16.msra.mxu0 %v10416_v61  ;;  %5942 = vmatprep.subr.bf16.mxu1 %v10426_v62  ;;  %v10514_v61 = vld [vmem:[#allocation6 + $0x640] ss:$8 sps:$4 sm:$0xff]  }
 0x25c   : > { %6733 = vmatprep.subr.bf16.mxu0 %v10430_v63  ;;  %v10517_v62 = vld [vmem:[%s11555_s22 + $0x280] ss:$136 sps:$4 sm:$0xff]  }
 0x25d   : > { %5892 = vmatmul.mubr.bf16.gmra.mrb[20].mxu1 %v10423_v0  ;;  %v10518_v63 = vld [vmem:[#allocation6 + $0xd40] ss:$8 sps:$4 sm:$0xff]   ;;  %v10523_v0 = vld [vmem:[#allocation6 + $0x654] ss:$8 sps:$4 sm:$0xff]  }
 0x25e   : > { %6683 = vmatmul.mubr.bf16.gmra.mrb[20].mxu0 %v10427_v2  ;;  %5943 = vmatpush1.bf16.msra.mxu1 %v10424_v1  ;;  %v10526_v1 = vld [vmem:[#allocation6 + $0xd54] ss:$8 sps:$4 sm:$0xff]  }
 0x25f   : > { %6734 = vmatpush1.bf16.msra.mxu0 %v10428_v3  ;;  %5944 = vmatprep.subr.bf16.mxu1 %v10433_v4  ;;  %v10527_v2 = vld [vmem:[%s11555_s22 + $0x35c] ss:$136 sps:$4 sm:$0xff]   ;;  %v10521_v4 = vld [vmem:[#allocation6 + $0x650] ss:$8 sps:$4 sm:$0xff]  }
 0x260   : > { %6735 = vmatprep.subr.bf16.mxu0 %v10436_v5  ;;  %5901 = vmatprep.mubr.bf16.mxu1 %v10437_v6  ;;  %v10529_v3 = vld [vmem:[%s11555_s22 + $0x394] ss:$136 sps:$4 sm:$0xff]   ;;  %v10524_v5 = vld [vmem:[#allocation6 + $0xd50] ss:$8 sps:$4 sm:$0xff]   ;;  %v10534_v6 = vld [vmem:[#allocation6 + $0x664] ss:$8 sps:$4 sm:$0xff]  }
 0x261   : > { %6692 = vmatprep.mubr.bf16.mxu0 %v10439_v7  ;;  %v10538_v7 = vld [vmem:[#allocation6 + $0xd64] ss:$8 sps:$4 sm:$0xff]  }
 0x262   : > { %5945 = vmatpush1.bf16.msra.mxu1 %v10431_v8  ;;  %v10531_v8 = vld [vmem:[%s11555_s22 + $0x358] ss:$136 sps:$4 sm:$0xff]  }
 0x263   : > { %6736 = vmatpush1.bf16.msra.mxu0 %v10434_v9  ;;  %5946 = vmatprep.subr.bf16.mxu1 %v10444_v10  ;;  %v10532_v9 = vld [vmem:[#allocation6 + $0x660] ss:$8 sps:$4 sm:$0xff]   ;;  %v10535_v10 = vld [vmem:[%s11555_s22 + $0x390] ss:$136 sps:$4 sm:$0xff]  }
 0x264   : > { %6737 = vmatprep.subr.bf16.mxu0 %v10448_v11  ;;  %v10536_v11 = vld [vmem:[#allocation6 + $0xd60] ss:$8 sps:$4 sm:$0xff]  }
 0x265   : > { %5902 = vmatmul.mubr.bf16.gmra.mrb[24].mxu1 %v10441_v12  ;;  %v10541_v12 = vld [vmem:[#allocation6 + $0x674] ss:$8 sps:$4 sm:$0xff]  }
 0x266   : > { %6693 = vmatmul.mubr.bf16.gmra.mrb[24].mxu0 %v10445_v14  ;;  %5947 = vmatpush1.bf16.msra.mxu1 %v10442_v13  ;;  %v10544_v13 = vld [vmem:[#allocation6 + $0xd74] ss:$8 sps:$4 sm:$0xff]  }
 0x267   : > { %6738 = vmatpush1.bf16.msra.mxu0 %v10446_v15  ;;  %5948 = vmatprep.subr.bf16.mxu1 %v10451_v16  ;;  %v10545_v14 = vld [vmem:[%s11555_s22 + $0x46c] ss:$136 sps:$4 sm:$0xff]   ;;  %v10539_v16 = vld [vmem:[#allocation6 + $0x670] ss:$8 sps:$4 sm:$0xff]  }
 0x268   : > { %6739 = vmatprep.subr.bf16.mxu0 %v10454_v17  ;;  %5911 = vmatprep.mubr.bf16.mxu1 %v10455_v18  ;;  %v10547_v15 = vld [vmem:[%s11555_s22 + $0x4a4] ss:$136 sps:$4 sm:$0xff]   ;;  %v10542_v17 = vld [vmem:[#allocation6 + $0xd70] ss:$8 sps:$4 sm:$0xff]  }
 0x269   : > { %6702 = vmatprep.mubr.bf16.mxu0 %v10457_v19  ;;  %v10552_v18 = vld [vmem:[#allocation6 + $0x684] ss:$8 sps:$4 sm:$0xff]  }
 0x26a   : > { %5949 = vmatpush1.bf16.msra.mxu1 %v10449_v20  ;;  %v10556_v19 = vld [vmem:[#allocation6 + $0xd84] ss:$8 sps:$4 sm:$0xff]   ;;  %v10549_v20 = vld [vmem:[%s11555_s22 + $0x468] ss:$136 sps:$4 sm:$0xff]  }
 0x26b   : > { %6740 = vmatpush1.bf16.msra.mxu0 %v10452_v21  ;;  %5950 = vmatprep.subr.bf16.mxu1 %v10462_v22  ;;  %v10550_v21 = vld [vmem:[#allocation6 + $0x680] ss:$8 sps:$4 sm:$0xff]  }
 0x26c   : > { %6741 = vmatprep.subr.bf16.mxu0 %v10466_v23  ;;  %v10553_v22 = vld [vmem:[%s11555_s22 + $0x4a0] ss:$136 sps:$4 sm:$0xff]  }
 0x26d   : > { %5912 = vmatmul.mubr.bf16.gmra.mrb[28].mxu1 %v10459_v24  ;;  %v10554_v23 = vld [vmem:[#allocation6 + $0xd80] ss:$8 sps:$4 sm:$0xff]   ;;  %v10559_v24 = vld [vmem:[#allocation6 + $0x694] ss:$8 sps:$4 sm:$0xff]  }
 0x26e   : > { %6703 = vmatmul.mubr.bf16.gmra.mrb[28].mxu0 %v10463_v26  ;;  %5951 = vmatpush1.bf16.msra.mxu1 %v10460_v25  ;;  %v10562_v25 = vld [vmem:[#allocation6 + $0xd94] ss:$8 sps:$4 sm:$0xff]  }
 0x26f   : > { %6742 = vmatpush1.bf16.msra.mxu0 %v10464_v27  ;;  %5952 = vmatprep.subr.bf16.mxu1 %v10469_v28  ;;  %v10563_v26 = vld [vmem:[%s11555_s22 + $0x57c] ss:$136 sps:$4 sm:$0xff]   ;;  %v10557_v28 = vld [vmem:[#allocation6 + $0x690] ss:$8 sps:$4 sm:$0xff]  }
 0x270   : > { %6743 = vmatprep.subr.bf16.mxu0 %v10472_v29  ;;  %5954 = vmatprep.mubr.bf16.mxu1 %v10475_v30  ;;  %v10565_v27 = vld [vmem:[%s11555_s22 + $0x5b4] ss:$136 sps:$4 sm:$0xff]   ;;  %v10560_v29 = vld [vmem:[#allocation6 + $0xd90] ss:$8 sps:$4 sm:$0xff]   ;;  %v10570_v30 = vld [vmem:[#allocation6 + $0x6a4] ss:$8 sps:$4 sm:$0xff]  }
 0x271   : > { %6745 = vmatprep.mubr.bf16.mxu0 %v10478_v31  ;;  %v10574_v31 = vld [vmem:[#allocation6 + $0xda4] ss:$8 sps:$4 sm:$0xff]  }
 0x272   : > { %5953 = vmatpush1.bf16.msra.mxu1 %v10467_v32  ;;  %v10567_v32 = vld [vmem:[%s11555_s22 + $0x578] ss:$136 sps:$4 sm:$0xff]  }
 0x273   : > { %6744 = vmatpush1.bf16.msra.mxu0 %v10470_v33  ;;  %6035 = vmatprep.subr.bf16.mxu1 %v10481_v34  ;;  %v10568_v33 = vld [vmem:[#allocation6 + $0x6a0] ss:$8 sps:$4 sm:$0xff]   ;;  %v10571_v34 = vld [vmem:[%s11555_s22 + $0x5b0] ss:$136 sps:$4 sm:$0xff]  }
 0x274   : > { %6826 = vmatprep.subr.bf16.mxu0 %v10484_v35  ;;  %v10572_v35 = vld [vmem:[#allocation6 + $0xda0] ss:$8 sps:$4 sm:$0xff]  }
 0x275   : > { %5955 = vmatmul.mubr.bf16.vlgmr.msra.gmra.mrb[0].mxu1 %v10473_v36  ;;  %v10577_v36 = vld [vmem:[#allocation6 + $0x6b4] ss:$8 sps:$4 sm:$0xff]  }
 0x276   : > { %6746 = vmatmul.mubr.bf16.vlgmr.msra.gmra.mrb[0].mxu0 %v10476_v37  ;;  %6036 = vmatpush1.bf16.msra.mxu1 %v10479_v38  ;;  %v10580_v37 = vld [vmem:[#allocation6 + $0xdb4] ss:$8 sps:$4 sm:$0xff]  }
 0x277   : > { %6827 = vmatpush1.bf16.msra.mxu0 %v10482_v39  ;;  %6037 = vmatprep.subr.bf16.mxu1 %v10487_v40  ;;  %v10581_v38 = vld [vmem:[%s11555_s22 + $0x68c] ss:$136 sps:$4 sm:$0xff]   ;;  %v10575_v40 = vld [vmem:[#allocation6 + $0x6b0] ss:$8 sps:$4 sm:$0xff]  }
 0x278   : > { %6828 = vmatprep.subr.bf16.mxu0 %v10490_v41  ;;  %5964 = vmatprep.mubr.bf16.mxu1 %v10491_v42  ;;  %v10583_v39 = vld [vmem:[%s11555_s22 + $0x6c4] ss:$136 sps:$4 sm:$0xff]   ;;  %v10578_v41 = vld [vmem:[#allocation6 + $0xdb0] ss:$8 sps:$4 sm:$0xff]  }
 0x279   : > { %6755 = vmatprep.mubr.bf16.mxu0 %v10493_v43  ;;  %v10588_v42 = vld [vmem:[#allocation6 + $0x6c4] ss:$8 sps:$4 sm:$0xff]  }
 0x27a   : > { %6038 = vmatpush1.bf16.msra.mxu1 %v10485_v44  ;;  %v10592_v43 = vld [vmem:[#allocation6 + $0xdc4] ss:$8 sps:$4 sm:$0xff]   ;;  %v10585_v44 = vld [vmem:[%s11555_s22 + $0x688] ss:$136 sps:$4 sm:$0xff]  }
 0x27b   : > { %6829 = vmatpush1.bf16.msra.mxu0 %v10488_v45  ;;  %6039 = vmatprep.subr.bf16.mxu1 %v10498_v46  ;;  %v10586_v45 = vld [vmem:[#allocation6 + $0x6c0] ss:$8 sps:$4 sm:$0xff]  }
 0x27c   : > { %6830 = vmatprep.subr.bf16.mxu0 %v10502_v47  ;;  %v10589_v46 = vld [vmem:[%s11555_s22 + $0x6c0] ss:$136 sps:$4 sm:$0xff]  }
 0x27d   : > { %5965 = vmatmul.mubr.bf16.gmra.mrb[4].mxu1 %v10495_v48  ;;  %v10590_v47 = vld [vmem:[#allocation6 + $0xdc0] ss:$8 sps:$4 sm:$0xff]   ;;  %v10595_v48 = vld [vmem:[#allocation6 + $0x6d4] ss:$8 sps:$4 sm:$0xff]  }
 0x27e   : > { %6756 = vmatmul.mubr.bf16.gmra.mrb[4].mxu0 %v10499_v50  ;;  %6040 = vmatpush1.bf16.msra.mxu1 %v10496_v49  ;;  %v10598_v49 = vld [vmem:[#allocation6 + $0xdd4] ss:$8 sps:$4 sm:$0xff]  }
 0x27f   : > { %6831 = vmatpush1.bf16.msra.mxu0 %v10500_v51  ;;  %6041 = vmatprep.subr.bf16.mxu1 %v10505_v52  ;;  %v10599_v50 = vld [vmem:[%s11555_s22 + $0x79c] ss:$136 sps:$4 sm:$0xff]   ;;  %v10593_v52 = vld [vmem:[#allocation6 + $0x6d0] ss:$8 sps:$4 sm:$0xff]  }
 0x280   : > { %6832 = vmatprep.subr.bf16.mxu0 %v10508_v53  ;;  %5974 = vmatprep.mubr.bf16.mxu1 %v10509_v54  ;;  %v10601_v51 = vld [vmem:[%s11555_s22 + $0x7d4] ss:$136 sps:$4 sm:$0xff]   ;;  %v10596_v53 = vld [vmem:[#allocation6 + $0xdd0] ss:$8 sps:$4 sm:$0xff]   ;;  %v10606_v54 = vld [vmem:[#allocation6 + $0x6e4] ss:$8 sps:$4 sm:$0xff]  }
 0x281   : > { %6765 = vmatprep.mubr.bf16.mxu0 %v10511_v55  ;;  %v10610_v55 = vld [vmem:[#allocation6 + $0xde4] ss:$8 sps:$4 sm:$0xff]  }
 0x282   : > { %6042 = vmatpush1.bf16.msra.mxu1 %v10503_v56  ;;  %v10603_v56 = vld [vmem:[%s11555_s22 + $0x798] ss:$136 sps:$4 sm:$0xff]  }
 0x283   : > { %6833 = vmatpush1.bf16.msra.mxu0 %v10506_v57  ;;  %6043 = vmatprep.subr.bf16.mxu1 %v10516_v58  ;;  %v10604_v57 = vld [vmem:[#allocation6 + $0x6e0] ss:$8 sps:$4 sm:$0xff]   ;;  %v10607_v58 = vld [vmem:[%s11555_s22 + $0x7d0] ss:$136 sps:$4 sm:$0xff]  }
 0x284   : > { %6834 = vmatprep.subr.bf16.mxu0 %v10520_v59  ;;  %v10608_v59 = vld [vmem:[#allocation6 + $0xde0] ss:$8 sps:$4 sm:$0xff]  }
 0x285   : > { %5975 = vmatmul.mubr.bf16.gmra.mrb[8].mxu1 %v10513_v60  ;;  %v10613_v60 = vld [vmem:[#allocation6 + $0x6f4] ss:$8 sps:$4 sm:$0xff]  }
 0x286   : > { %6766 = vmatmul.mubr.bf16.gmra.mrb[8].mxu0 %v10517_v62  ;;  %6044 = vmatpush1.bf16.msra.mxu1 %v10514_v61  ;;  %v10616_v61 = vld [vmem:[#allocation6 + $0xdf4] ss:$8 sps:$4 sm:$0xff]  }
 0x287   : > { %6835 = vmatpush1.bf16.msra.mxu0 %v10518_v63  ;;  %6045 = vmatprep.subr.bf16.mxu1 %v10523_v0  ;;  %v10619_v62 = vld [vmem:[%s11555_s22 + $0x34] ss:$136 sps:$4 sm:$0xff]   ;;  %v10611_v0 = vld [vmem:[#allocation6 + $0x6f0] ss:$8 sps:$4 sm:$0xff]  }
 0x288   : > { %6836 = vmatprep.subr.bf16.mxu0 %v10526_v1  ;;  %5984 = vmatprep.mubr.bf16.mxu1 %v10527_v2  ;;  %v10622_v63 = vld [vmem:[%s11555_s22 + $0x6c] ss:$136 sps:$4 sm:$0xff]   ;;  %v10614_v1 = vld [vmem:[#allocation6 + $0xdf0] ss:$8 sps:$4 sm:$0xff]  }
 0x289   : > { %6775 = vmatprep.mubr.bf16.mxu0 %v10529_v3  ;;  %v10625_v2 = vld [vmem:[#allocation6 + $0xe04] ss:$8 sps:$4 sm:$0xff]   ;;  %v10617_v3 = vld [vmem:[%s11555_s22 + $0x30] ss:$136 sps:$4 sm:$0xff]  }
 0x28a   : > { %6046 = vmatpush1.bf16.msra.mxu1 %v10521_v4  ;;  %v10620_v4 = vld [vmem:[%s11555_s22 + $0x68] ss:$136 sps:$4 sm:$0xff]  }
 0x28b   : > { %6837 = vmatpush1.bf16.msra.mxu0 %v10524_v5  ;;  %6047 = vmatprep.subr.bf16.mxu1 %v10534_v6  ;;  %v10623_v5 = vld [vmem:[#allocation6 + $0xe00] ss:$8 sps:$4 sm:$0xff]   ;;  %v10628_v6 = vld [vmem:[#allocation6 + $0xe14] ss:$8 sps:$4 sm:$0xff]  }
 0x28c   : > { %6838 = vmatprep.subr.bf16.mxu0 %v10538_v7  ;;  %v10629_v7 = vld [vmem:[%s11555_s22 + $0x144] ss:$136 sps:$4 sm:$0xff]  }
 0x28d   : > { %5985 = vmatmul.mubr.bf16.gmra.mrb[12].mxu1 %v10531_v8  ;;  %v10631_v8 = vld [vmem:[%s11555_s22 + $0x17c] ss:$136 sps:$4 sm:$0xff]  }
 0x28e   : > { %6776 = vmatmul.mubr.bf16.gmra.mrb[12].mxu0 %v10535_v10  ;;  %6048 = vmatpush1.bf16.msra.mxu1 %v10532_v9  ;;  %v10626_v9 = vld [vmem:[#allocation6 + $0xe10] ss:$8 sps:$4 sm:$0xff]   ;;  %v10637_v10 = vld [vmem:[#allocation6 + $0xe24] ss:$8 sps:$4 sm:$0xff]  }
 0x28f   : > { %6839 = vmatpush1.bf16.msra.mxu0 %v10536_v11  ;;  %6049 = vmatprep.subr.bf16.mxu1 %v10541_v12  ;;  %v10633_v11 = vld [vmem:[%s11555_s22 + $0x140] ss:$136 sps:$4 sm:$0xff]  }
 0x290   : > { %6840 = vmatprep.subr.bf16.mxu0 %v10544_v13  ;;  %5994 = vmatprep.mubr.bf16.mxu1 %v10545_v14  ;;  %v10634_v12 = vld [vmem:[%s11555_s22 + $0x178] ss:$136 sps:$4 sm:$0xff]   ;;  %v10640_v14 = vld [vmem:[#allocation6 + $0xe34] ss:$8 sps:$4 sm:$0xff]  }
 0x291   : > { %6785 = vmatprep.mubr.bf16.mxu0 %v10547_v15  ;;  %v10635_v13 = vld [vmem:[#allocation6 + $0xe20] ss:$8 sps:$4 sm:$0xff]   ;;  %v10641_v15 = vld [vmem:[%s11555_s22 + $0x254] ss:$136 sps:$4 sm:$0xff]  }
 0x292   : > { %6050 = vmatpush1.bf16.msra.mxu1 %v10539_v16  ;;  %v10643_v16 = vld [vmem:[%s11555_s22 + $0x28c] ss:$136 sps:$4 sm:$0xff]  }
 0x293   : > { %6841 = vmatpush1.bf16.msra.mxu0 %v10542_v17  ;;  %6051 = vmatprep.subr.bf16.mxu1 %v10552_v18  ;;  %v10638_v17 = vld [vmem:[#allocation6 + $0xe30] ss:$8 sps:$4 sm:$0xff]   ;;  %v10649_v18 = vld [vmem:[#allocation6 + $0xe44] ss:$8 sps:$4 sm:$0xff]  }
 0x294   : > { %6842 = vmatprep.subr.bf16.mxu0 %v10556_v19  ;;  %v10645_v19 = vld [vmem:[%s11555_s22 + $0x250] ss:$136 sps:$4 sm:$0xff]  }
 0x295   : > { %5995 = vmatmul.mubr.bf16.gmra.mrb[16].mxu1 %v10549_v20  ;;  %v10646_v20 = vld [vmem:[%s11555_s22 + $0x288] ss:$136 sps:$4 sm:$0xff]  }
 0x296   : > { %6786 = vmatmul.mubr.bf16.gmra.mrb[16].mxu0 %v10553_v22  ;;  %6052 = vmatpush1.bf16.msra.mxu1 %v10550_v21  ;;  %v10647_v21 = vld [vmem:[#allocation6 + $0xe40] ss:$8 sps:$4 sm:$0xff]   ;;  %v10652_v22 = vld [vmem:[#allocation6 + $0xe54] ss:$8 sps:$4 sm:$0xff]  }
 0x297   : > { %6843 = vmatpush1.bf16.msra.mxu0 %v10554_v23  ;;  %6053 = vmatprep.subr.bf16.mxu1 %v10559_v24  ;;  %v10653_v23 = vld [vmem:[%s11555_s22 + $0x364] ss:$136 sps:$4 sm:$0xff]  }
 0x298   : > { %6844 = vmatprep.subr.bf16.mxu0 %v10562_v25  ;;  %6004 = vmatprep.mubr.bf16.mxu1 %v10563_v26  ;;  %v10655_v24 = vld [vmem:[%s11555_s22 + $0x39c] ss:$136 sps:$4 sm:$0xff]   ;;  %v10650_v25 = vld [vmem:[#allocation6 + $0xe50] ss:$8 sps:$4 sm:$0xff]  }
 0x299   : > { %6795 = vmatprep.mubr.bf16.mxu0 %v10565_v27  ;;  %v10661_v26 = vld [vmem:[#allocation6 + $0xe64] ss:$8 sps:$4 sm:$0xff]   ;;  %v10657_v27 = vld [vmem:[%s11555_s22 + $0x360] ss:$136 sps:$4 sm:$0xff]  }
 0x29a   : > { %6054 = vmatpush1.bf16.msra.mxu1 %v10557_v28  ;;  %v10658_v28 = vld [vmem:[%s11555_s22 + $0x398] ss:$136 sps:$4 sm:$0xff]  }
 0x29b   : > { %6845 = vmatpush1.bf16.msra.mxu0 %v10560_v29  ;;  %6055 = vmatprep.subr.bf16.mxu1 %v10570_v30  ;;  %v10659_v29 = vld [vmem:[#allocation6 + $0xe60] ss:$8 sps:$4 sm:$0xff]   ;;  %v10664_v30 = vld [vmem:[#allocation6 + $0xe74] ss:$8 sps:$4 sm:$0xff]  }
 0x29c   : > { %6846 = vmatprep.subr.bf16.mxu0 %v10574_v31  ;;  %v10665_v31 = vld [vmem:[%s11555_s22 + $0x474] ss:$136 sps:$4 sm:$0xff]  }
 0x29d   : > { %6005 = vmatmul.mubr.bf16.gmra.mrb[20].mxu1 %v10567_v32  ;;  %v10667_v32 = vld [vmem:[%s11555_s22 + $0x4ac] ss:$136 sps:$4 sm:$0xff]  }
 0x29e   : > { %6796 = vmatmul.mubr.bf16.gmra.mrb[20].mxu0 %v10571_v34  ;;  %6056 = vmatpush1.bf16.msra.mxu1 %v10568_v33  ;;  %v10662_v33 = vld [vmem:[#allocation6 + $0xe70] ss:$8 sps:$4 sm:$0xff]   ;;  %v10673_v34 = vld [vmem:[#allocation6 + $0xe84] ss:$8 sps:$4 sm:$0xff]  }
 0x29f   : > { %6847 = vmatpush1.bf16.msra.mxu0 %v10572_v35  ;;  %6057 = vmatprep.subr.bf16.mxu1 %v10577_v36  ;;  %v10669_v35 = vld [vmem:[%s11555_s22 + $0x470] ss:$136 sps:$4 sm:$0xff]  }
 0x2a0   : > { %6848 = vmatprep.subr.bf16.mxu0 %v10580_v37  ;;  %6014 = vmatprep.mubr.bf16.mxu1 %v10581_v38  ;;  %v10670_v36 = vld [vmem:[%s11555_s22 + $0x4a8] ss:$136 sps:$4 sm:$0xff]   ;;  %v10676_v38 = vld [vmem:[#allocation6 + $0xe94] ss:$8 sps:$4 sm:$0xff]  }
 0x2a1   : > { %6805 = vmatprep.mubr.bf16.mxu0 %v10583_v39  ;;  %v10671_v37 = vld [vmem:[#allocation6 + $0xe80] ss:$8 sps:$4 sm:$0xff]   ;;  %v10677_v39 = vld [vmem:[%s11555_s22 + $0x584] ss:$136 sps:$4 sm:$0xff]  }
 0x2a2   : > { %6058 = vmatpush1.bf16.msra.mxu1 %v10575_v40  ;;  %v10679_v40 = vld [vmem:[%s11555_s22 + $0x5bc] ss:$136 sps:$4 sm:$0xff]  }
 0x2a3   : > { %6849 = vmatpush1.bf16.msra.mxu0 %v10578_v41  ;;  %6059 = vmatprep.subr.bf16.mxu1 %v10588_v42  ;;  %v10674_v41 = vld [vmem:[#allocation6 + $0xe90] ss:$8 sps:$4 sm:$0xff]   ;;  %v10685_v42 = vld [vmem:[#allocation6 + $0xea4] ss:$8 sps:$4 sm:$0xff]  }
 0x2a4   : > { %6850 = vmatprep.subr.bf16.mxu0 %v10592_v43  ;;  %v10681_v43 = vld [vmem:[%s11555_s22 + $0x580] ss:$136 sps:$4 sm:$0xff]  }
 0x2a5   : > { %6015 = vmatmul.mubr.bf16.gmra.mrb[24].mxu1 %v10585_v44  ;;  %v10682_v44 = vld [vmem:[%s11555_s22 + $0x5b8] ss:$136 sps:$4 sm:$0xff]  }
 0x2a6   : > { %6806 = vmatmul.mubr.bf16.gmra.mrb[24].mxu0 %v10589_v46  ;;  %6060 = vmatpush1.bf16.msra.mxu1 %v10586_v45  ;;  %v10683_v45 = vld [vmem:[#allocation6 + $0xea0] ss:$8 sps:$4 sm:$0xff]   ;;  %v10688_v46 = vld [vmem:[#allocation6 + $0xeb4] ss:$8 sps:$4 sm:$0xff]  }
 0x2a7   : > { %6851 = vmatpush1.bf16.msra.mxu0 %v10590_v47  ;;  %6061 = vmatprep.subr.bf16.mxu1 %v10595_v48  ;;  %v10689_v47 = vld [vmem:[%s11555_s22 + $0x694] ss:$136 sps:$4 sm:$0xff]  }
 0x2a8   : > { %6852 = vmatprep.subr.bf16.mxu0 %v10598_v49  ;;  %6024 = vmatprep.mubr.bf16.mxu1 %v10599_v50  ;;  %v10691_v48 = vld [vmem:[%s11555_s22 + $0x6cc] ss:$136 sps:$4 sm:$0xff]   ;;  %v10686_v49 = vld [vmem:[#allocation6 + $0xeb0] ss:$8 sps:$4 sm:$0xff]  }
 0x2a9   : > { %6815 = vmatprep.mubr.bf16.mxu0 %v10601_v51  ;;  %v10697_v50 = vld [vmem:[#allocation6 + $0xec4] ss:$8 sps:$4 sm:$0xff]   ;;  %v10693_v51 = vld [vmem:[%s11555_s22 + $0x690] ss:$136 sps:$4 sm:$0xff]  }
 0x2aa   : > { %6062 = vmatpush1.bf16.msra.mxu1 %v10593_v52  ;;  %v10694_v52 = vld [vmem:[%s11555_s22 + $0x6c8] ss:$136 sps:$4 sm:$0xff]  }
 0x2ab   : > { %6853 = vmatpush1.bf16.msra.mxu0 %v10596_v53  ;;  %6063 = vmatprep.subr.bf16.mxu1 %v10606_v54  ;;  %v10695_v53 = vld [vmem:[#allocation6 + $0xec0] ss:$8 sps:$4 sm:$0xff]   ;;  %v10700_v54 = vld [vmem:[#allocation6 + $0xed4] ss:$8 sps:$4 sm:$0xff]  }
 0x2ac   : > { %6854 = vmatprep.subr.bf16.mxu0 %v10610_v55  ;;  %v10701_v55 = vld [vmem:[%s11555_s22 + $0x7a4] ss:$136 sps:$4 sm:$0xff]  }
 0x2ad   : > { %6025 = vmatmul.mubr.bf16.gmra.mrb[28].mxu1 %v10603_v56  ;;  %v10703_v56 = vld [vmem:[%s11555_s22 + $0x7dc] ss:$136 sps:$4 sm:$0xff]  }
 0x2ae   : > { %6816 = vmatmul.mubr.bf16.gmra.mrb[28].mxu0 %v10607_v58  ;;  %6064 = vmatpush1.bf16.msra.mxu1 %v10604_v57  ;;  %v10698_v57 = vld [vmem:[#allocation6 + $0xed0] ss:$8 sps:$4 sm:$0xff]   ;;  %v10709_v58 = vld [vmem:[#allocation6 + $0xee4] ss:$8 sps:$4 sm:$0xff]  }
 0x2af   : > { %6855 = vmatpush1.bf16.msra.mxu0 %v10608_v59  ;;  %6065 = vmatprep.subr.bf16.mxu1 %v10613_v60  ;;  %v10705_v59 = vld [vmem:[%s11555_s22 + $0x7a0] ss:$136 sps:$4 sm:$0xff]  }
 0x2b0   : > { %6856 = vmatprep.subr.bf16.mxu0 %v10616_v61  ;;  %6067 = vmatprep.mubr.bf16.mxu1 %v10619_v62  ;;  %v10706_v60 = vld [vmem:[%s11555_s22 + $0x7d8] ss:$136 sps:$4 sm:$0xff]   ;;  %v10715_v62 = vld [vmem:[%s11555_s22 + $0x74] ss:$136 sps:$4 sm:$0xff]  }
 0x2b1   : > { %6858 = vmatprep.mubr.bf16.mxu0 %v10622_v63  ;;  %v10707_v61 = vld [vmem:[#allocation6 + $0xee0] ss:$8 sps:$4 sm:$0xff]   ;;  %v10712_v63 = vld [vmem:[#allocation6 + $0xef4] ss:$8 sps:$4 sm:$0xff]  }
 0x2b2   : > { %6066 = vmatpush1.bf16.msra.mxu1 %v10611_v0  ;;  %v10710_v0 = vld [vmem:[#allocation6 + $0xef0] ss:$8 sps:$4 sm:$0xff]  }
 0x2b3   : > { %6857 = vmatpush1.bf16.msra.mxu0 %v10614_v1  ;;  %v10718_v1 = vld [vmem:[#allocation6 + $0xf04] ss:$8 sps:$4 sm:$0xff]  }
 0x2b4   : > { %6939 = vmatprep.subr.bf16.mxu0 %v10625_v2  ;;  %v10713_v2 = vld [vmem:[%s11555_s22 + $0x70] ss:$136 sps:$4 sm:$0xff]  }
 0x2b5   : > { %6068 = vmatmul.mubr.bf16.vlgmr.msra.gmra.mrb[0].mxu1 %v10617_v3  ;;  %v10716_v3 = vld [vmem:[#allocation6 + $0xf00] ss:$8 sps:$4 sm:$0xff]  }
 0x2b6   : > { %6859 = vmatmul.mubr.bf16.vlgmr.msra.gmra.mrb[0].mxu0 %v10620_v4  ;;  %6077 = vmatprep.mubr.bf16.mxu1 %v10629_v7  ;;  %v10722_v4 = vld [vmem:[%s11555_s22 + $0x184] ss:$136 sps:$4 sm:$0xff]  }
 0x2b7   : > { %6940 = vmatpush1.bf16.msra.mxu0 %v10623_v5  ;;  %6868 = vmatprep.mubr.bf16.mxu0 %v10631_v8  ;;  %v10721_v5 = vld [vmem:[#allocation6 + $0xf14] ss:$8 sps:$4 sm:$0xff]   ;;  %v10727_v7 = vld [vmem:[#allocation6 + $0xf24] ss:$8 sps:$4 sm:$0xff]   ;;  %v10724_v8 = vld [vmem:[%s11555_s22 + $0x180] ss:$136 sps:$4 sm:$0xff]  }
 0x2b8   : > { %6941 = vmatprep.subr.bf16.mxu0 %v10628_v6  ;;  %v10719_v6 = vld [vmem:[#allocation6 + $0xf10] ss:$8 sps:$4 sm:$0xff]  }
 0x2bb   : > { %6942 = vmatpush1.bf16.msra.mxu0 %v10626_v9  ;;  %v10725_v9 = vld [vmem:[#allocation6 + $0xf20] ss:$8 sps:$4 sm:$0xff]  }
 0x2bc   : > { %6943 = vmatprep.subr.bf16.mxu0 %v10637_v10  ;;  %v10731_v10 = vld [vmem:[%s11555_s22 + $0x294] ss:$136 sps:$4 sm:$0xff]  }
 0x2bd   : > { %6078 = vmatmul.mubr.bf16.gmra.mrb[4].mxu1 %v10633_v11  ;;  %v10730_v11 = vld [vmem:[#allocation6 + $0xf34] ss:$8 sps:$4 sm:$0xff]  }
 0x2be   : > { %6869 = vmatmul.mubr.bf16.gmra.mrb[4].mxu0 %v10634_v12  ;;  %6087 = vmatprep.mubr.bf16.mxu1 %v10641_v15  ;;  %v10728_v12 = vld [vmem:[#allocation6 + $0xf30] ss:$8 sps:$4 sm:$0xff]   ;;  %v10734_v15 = vld [vmem:[#allocation6 + $0xf40] ss:$8 sps:$4 sm:$0xff]  }
 0x2bf   : > { %6944 = vmatpush1.bf16.msra.mxu0 %v10635_v13  ;;  %6878 = vmatprep.mubr.bf16.mxu0 %v10643_v16  ;;  %v10736_v13 = vld [vmem:[#allocation6 + $0xf44] ss:$8 sps:$4 sm:$0xff]  }
 0x2c0   : > { %6945 = vmatprep.subr.bf16.mxu0 %v10640_v14  ;;  %v10733_v14 = vld [vmem:[%s11555_s22 + $0x290] ss:$136 sps:$4 sm:$0xff]   ;;  %v10740_v16 = vld [vmem:[%s11555_s22 + $0x3a4] ss:$136 sps:$4 sm:$0xff]  }
 0x2c3   : > { %6946 = vmatpush1.bf16.msra.mxu0 %v10638_v17  ;;  %v10739_v17 = vld [vmem:[#allocation6 + $0xf54] ss:$8 sps:$4 sm:$0xff]  }
 0x2c4   : > { %6947 = vmatprep.subr.bf16.mxu0 %v10649_v18  ;;  %v10737_v18 = vld [vmem:[#allocation6 + $0xf50] ss:$8 sps:$4 sm:$0xff]  }
 0x2c5   : > { %6088 = vmatmul.mubr.bf16.gmra.mrb[8].mxu1 %v10645_v19  ;;  %v10745_v19 = vld [vmem:[#allocation6 + $0xf64] ss:$8 sps:$4 sm:$0xff]  }
 0x2c6   : > { %6879 = vmatmul.mubr.bf16.gmra.mrb[8].mxu0 %v10646_v20  ;;  %6097 = vmatprep.mubr.bf16.mxu1 %v10653_v23  ;;  %v10742_v20 = vld [vmem:[%s11555_s22 + $0x3a0] ss:$136 sps:$4 sm:$0xff]   ;;  %v10748_v23 = vld [vmem:[#allocation6 + $0xf74] ss:$8 sps:$4 sm:$0xff]  }
 0x2c7   : > { %6948 = vmatpush1.bf16.msra.mxu0 %v10647_v21  ;;  %6888 = vmatprep.mubr.bf16.mxu0 %v10655_v24  ;;  %v10743_v21 = vld [vmem:[#allocation6 + $0xf60] ss:$8 sps:$4 sm:$0xff]   ;;  %v10746_v24 = vld [vmem:[#allocation6 + $0xf70] ss:$8 sps:$4 sm:$0xff]  }
 0x2c8   : > { %6949 = vmatprep.subr.bf16.mxu0 %v10652_v22  ;;  %v10749_v22 = vld [vmem:[%s11555_s22 + $0x4b4] ss:$136 sps:$4 sm:$0xff]  }
 0x2cb   : > { %6950 = vmatpush1.bf16.msra.mxu0 %v10650_v25  ;;  %v10754_v25 = vld [vmem:[#allocation6 + $0xf84] ss:$8 sps:$4 sm:$0xff]  }
 0x2cc   : > { %6951 = vmatprep.subr.bf16.mxu0 %v10661_v26  ;;  %v10751_v26 = vld [vmem:[%s11555_s22 + $0x4b0] ss:$136 sps:$4 sm:$0xff]  }
 0x2cd   : > { %6098 = vmatmul.mubr.bf16.gmra.mrb[12].mxu1 %v10657_v27  ;;  %v10752_v27 = vld [vmem:[#allocation6 + $0xf80] ss:$8 sps:$4 sm:$0xff]  }
 0x2ce   : > { %6889 = vmatmul.mubr.bf16.gmra.mrb[12].mxu0 %v10658_v28  ;;  %6107 = vmatprep.mubr.bf16.mxu1 %v10665_v31  ;;  %v10758_v28 = vld [vmem:[%s11555_s22 + $0x5c4] ss:$136 sps:$4 sm:$0xff]  }
 0x2cf   : > { %6952 = vmatpush1.bf16.msra.mxu0 %v10659_v29  ;;  %6898 = vmatprep.mubr.bf16.mxu0 %v10667_v32  ;;  %v10757_v29 = vld [vmem:[#allocation6 + $0xf94] ss:$8 sps:$4 sm:$0xff]   ;;  %v10763_v31 = vld [vmem:[#allocation6 + $0xfa4] ss:$8 sps:$4 sm:$0xff]   ;;  %v10760_v32 = vld [vmem:[%s11555_s22 + $0x5c0] ss:$136 sps:$4 sm:$0xff]  }
 0x2d0   : > { %6953 = vmatprep.subr.bf16.mxu0 %v10664_v30  ;;  %v10755_v30 = vld [vmem:[#allocation6 + $0xf90] ss:$8 sps:$4 sm:$0xff]  }
 0x2d3   : > { %6954 = vmatpush1.bf16.msra.mxu0 %v10662_v33  ;;  %v10761_v33 = vld [vmem:[#allocation6 + $0xfa0] ss:$8 sps:$4 sm:$0xff]  }
 0x2d4   : > { %6955 = vmatprep.subr.bf16.mxu0 %v10673_v34  ;;  %v10767_v34 = vld [vmem:[%s11555_s22 + $0x6d4] ss:$136 sps:$4 sm:$0xff]  }
 0x2d5   : > { %6108 = vmatmul.mubr.bf16.gmra.mrb[16].mxu1 %v10669_v35  ;;  %v10766_v35 = vld [vmem:[#allocation6 + $0xfb4] ss:$8 sps:$4 sm:$0xff]  }
 0x2d6   : > { %6899 = vmatmul.mubr.bf16.gmra.mrb[16].mxu0 %v10670_v36  ;;  %6117 = vmatprep.mubr.bf16.mxu1 %v10677_v39  ;;  %v10764_v36 = vld [vmem:[#allocation6 + $0xfb0] ss:$8 sps:$4 sm:$0xff]   ;;  %v10770_v39 = vld [vmem:[#allocation6 + $0xfc0] ss:$8 sps:$4 sm:$0xff]  }
 0x2d7   : > { %6956 = vmatpush1.bf16.msra.mxu0 %v10671_v37  ;;  %6908 = vmatprep.mubr.bf16.mxu0 %v10679_v40  ;;  %v10772_v37 = vld [vmem:[#allocation6 + $0xfc4] ss:$8 sps:$4 sm:$0xff]  }
 0x2d8   : > { %6957 = vmatprep.subr.bf16.mxu0 %v10676_v38  ;;  %v10769_v38 = vld [vmem:[%s11555_s22 + $0x6d0] ss:$136 sps:$4 sm:$0xff]   ;;  %v10776_v40 = vld [vmem:[%s11555_s22 + $0x7e4] ss:$136 sps:$4 sm:$0xff]  }
 0x2db   : > { %6958 = vmatpush1.bf16.msra.mxu0 %v10674_v41  ;;  %v10775_v41 = vld [vmem:[#allocation6 + $0xfd4] ss:$8 sps:$4 sm:$0xff]  }
 0x2dc   : > { %6959 = vmatprep.subr.bf16.mxu0 %v10685_v42  ;;  %v10773_v42 = vld [vmem:[#allocation6 + $0xfd0] ss:$8 sps:$4 sm:$0xff]  }
 0x2dd   : > { %6118 = vmatmul.mubr.bf16.gmra.mrb[20].mxu1 %v10681_v43  ;;  %v10781_v43 = vld [vmem:[#allocation6 + $0xfe4] ss:$8 sps:$4 sm:$0xff]  }
 0x2de   : > { %6909 = vmatmul.mubr.bf16.gmra.mrb[20].mxu0 %v10682_v44  ;;  %6127 = vmatprep.mubr.bf16.mxu1 %v10689_v47  ;;  %v10778_v44 = vld [vmem:[%s11555_s22 + $0x7e0] ss:$136 sps:$4 sm:$0xff]   ;;  %v10784_v47 = vld [vmem:[#allocation6 + $0xff4] ss:$8 sps:$4 sm:$0xff]  }
 0x2df   : > { %6960 = vmatpush1.bf16.msra.mxu0 %v10683_v45  ;;  %6918 = vmatprep.mubr.bf16.mxu0 %v10691_v48  ;;  %v10779_v45 = vld [vmem:[#allocation6 + $0xfe0] ss:$8 sps:$4 sm:$0xff]   ;;  %v10782_v48 = vld [vmem:[#allocation6 + $0xff0] ss:$8 sps:$4 sm:$0xff]  }
 0x2e0   : > { %6961 = vmatprep.subr.bf16.mxu0 %v10688_v46  ;;  %v10787_v46 = vld [vmem:[%s11555_s22 + $0x7c] ss:$136 sps:$4 sm:$0xff]  }
 0x2e3   : > { %6962 = vmatpush1.bf16.msra.mxu0 %v10686_v49  ;;  %v10790_v49 = vld [vmem:[#allocation6 + $0x1004] ss:$8 sps:$4 sm:$0xff]  }
 0x2e4   : > { %6963 = vmatprep.subr.bf16.mxu0 %v10697_v50  ;;  %v10785_v50 = vld [vmem:[%s11555_s22 + $0x78] ss:$136 sps:$4 sm:$0xff]  }
 0x2e5   : > { %6128 = vmatmul.mubr.bf16.gmra.mrb[24].mxu1 %v10693_v51  ;;  %v10788_v51 = vld [vmem:[#allocation6 + $0x1000] ss:$8 sps:$4 sm:$0xff]  }
 0x2e6   : > { %6919 = vmatmul.mubr.bf16.gmra.mrb[24].mxu0 %v10694_v52  ;;  %6137 = vmatprep.mubr.bf16.mxu1 %v10701_v55  ;;  %v10794_v52 = vld [vmem:[%s11555_s22 + $0x18c] ss:$136 sps:$4 sm:$0xff]  }
 0x2e7   : > { %6964 = vmatpush1.bf16.msra.mxu0 %v10695_v53  ;;  %6928 = vmatprep.mubr.bf16.mxu0 %v10703_v56  ;;  %v10793_v53 = vld [vmem:[#allocation6 + $0x1014] ss:$8 sps:$4 sm:$0xff]   ;;  %v10799_v55 = vld [vmem:[#allocation6 + $0x1024] ss:$8 sps:$4 sm:$0xff]   ;;  %v10796_v56 = vld [vmem:[%s11555_s22 + $0x188] ss:$136 sps:$4 sm:$0xff]  }
 0x2e8   : > { %6965 = vmatprep.subr.bf16.mxu0 %v10700_v54  ;;  %v10791_v54 = vld [vmem:[#allocation6 + $0x1010] ss:$8 sps:$4 sm:$0xff]  }
 0x2eb   : > { %6966 = vmatpush1.bf16.msra.mxu0 %v10698_v57  ;;  %v10797_v57 = vld [vmem:[#allocation6 + $0x1020] ss:$8 sps:$4 sm:$0xff]  }
 0x2ec   : > { %6967 = vmatprep.subr.bf16.mxu0 %v10709_v58  ;;  %v10803_v58 = vld [vmem:[%s11555_s22 + $0x29c] ss:$136 sps:$4 sm:$0xff]  }
 0x2ed   : > { %6138 = vmatmul.mubr.bf16.gmra.mrb[28].mxu1 %v10705_v59  ;;  %v10802_v59 = vld [vmem:[#allocation6 + $0x1034] ss:$8 sps:$4 sm:$0xff]  }
 0x2ee   : > { %6929 = vmatmul.mubr.bf16.gmra.mrb[28].mxu0 %v10706_v60  ;;  %v10800_v60 = vld [vmem:[#allocation6 + $0x1030] ss:$8 sps:$4 sm:$0xff]  }
 0x2ef   : > { %6968 = vmatpush1.bf16.msra.mxu0 %v10707_v61  ;;  %6971 = vmatprep.mubr.bf16.mxu0 %v10715_v62  ;;  %v10808_v61 = vld [vmem:[#allocation6 + $0x1044] ss:$8 sps:$4 sm:$0xff]   ;;  %v10805_v62 = vld [vmem:[%s11555_s22 + $0x298] ss:$136 sps:$4 sm:$0xff]  }
 0x2f0   : > { %6969 = vmatprep.subr.bf16.mxu0 %v10712_v63  ;;  %v10806_v63 = vld [vmem:[#allocation6 + $0x1040] ss:$8 sps:$4 sm:$0xff]  }
 0x2f3   : > { %6970 = vmatpush1.bf16.msra.mxu0 %v10710_v0  ;;  %v10812_v0 = vld [vmem:[%s11555_s22 + $0x3ac] ss:$136 sps:$4 sm:$0xff]  }
 0x2f4   : > { %7052 = vmatprep.subr.bf16.mxu0 %v10718_v1  ;;  %v10811_v1 = vld [vmem:[#allocation6 + $0x1054] ss:$8 sps:$4 sm:$0xff]  }
 0x2f6   : > { %6972 = vmatmul.mubr.bf16.vlgmr.msra.gmra.mrb[0].mxu0 %v10713_v2  ;;  %v10881_v2 = vld [vmem:[#allocation9 + $0x40] sm:$0xff]  }
 0x2f7   : > { %7053 = vmatpush1.bf16.msra.mxu0 %v10716_v3  ;;  %6981 = vmatprep.mubr.bf16.mxu0 %v10722_v4  ;;  %v10882_v3 = vld [vmem:[#allocation9] sm:$0xff]   ;;  %v10883_v4 = vld [vmem:[#allocation9 + $0x48] sm:$0xff]  }
 0x2f8   : > { %7054 = vmatprep.subr.bf16.mxu0 %v10721_v5  ;;  %v10809_v5 = vld [vmem:[#allocation6 + $0x1050] ss:$8 sps:$4 sm:$0xff]   ;;  %8844 = vmatprep.subr.bf16.mxu1 %v10881_v2 }
 0x2f9   : > { %8845 = vmatpush3.bf16.msra.mxu1 %v10882_v3  ;;  %v10874_v3 = vld [vmem:[%s11555_s22 + $0x5d0] ss:$136 sps:$4 sm:$0xff]  }
 0x2fa   : > { %8846 = vmatprep.subr.bf16.mxu1 %v10883_v4 }
 0x2fb   : > { %7055 = vmatpush1.bf16.msra.mxu0 %v10719_v6  ;;  %v10817_v6 = vld [vmem:[#allocation6 + $0x1064] ss:$8 sps:$4 sm:$0xff]  }
 0x2fc   : > { %7056 = vmatprep.subr.bf16.mxu0 %v10727_v7  ;;  %v10884_v7 = vld [vmem:[#allocation9 + $0x8] sm:$0xff]  }
 0x2fd   : > { %8847 = vmatpush3.bf16.msra.mxu1 %v10884_v7 }
 0x2fe   : > { %6982 = vmatmul.mubr.bf16.gmra.mrb[4].mxu0 %v10724_v8  ;;  %v10814_v8 = vld [vmem:[%s11555_s22 + $0x3a8] ss:$136 sps:$4 sm:$0xff]  }
 0x2ff   : > { %7057 = vmatpush1.bf16.msra.mxu0 %v10725_v9  ;;  %6991 = vmatprep.mubr.bf16.mxu0 %v10731_v10  ;;  %v10885_v9 = vld [vmem:[#allocation9 + $0x50] sm:$0xff]   ;;  %v10815_v10 = vld [vmem:[#allocation6 + $0x1060] ss:$8 sps:$4 sm:$0xff]  }
 0x300   : > { %7058 = vmatprep.subr.bf16.mxu0 %v10730_v11  ;;  %v10821_v11 = vld [vmem:[%s11555_s22 + $0x4bc] ss:$136 sps:$4 sm:$0xff]   ;;  %8848 = vmatprep.subr.bf16.mxu1 %v10885_v9  ;;  %v10877_v9 = vld [vmem:[%s11555_s22 + $0x6e0] ss:$136 sps:$4 sm:$0xff]  }
 0x303   : > { %7059 = vmatpush1.bf16.msra.mxu0 %v10728_v12  ;;  %v10820_v12 = vld [vmem:[#allocation6 + $0x1074] ss:$8 sps:$4 sm:$0xff]  }
 0x304   : > { %7060 = vmatprep.subr.bf16.mxu0 %v10736_v13  ;;  %v10886_v13 = vld [vmem:[#allocation9 + $0x10] sm:$0xff]  }
 0x305   : > { %8849 = vmatpush3.bf16.msra.mxu1 %v10886_v13 }
 0x306   : > { %6992 = vmatmul.mubr.bf16.gmra.mrb[8].mxu0 %v10733_v14  ;;  %v10887_v14 = vld [vmem:[#allocation9 + $0x58] sm:$0xff]  }
 0x307   : > { %7061 = vmatpush1.bf16.msra.mxu0 %v10734_v15  ;;  %7001 = vmatprep.mubr.bf16.mxu0 %v10740_v16  ;;  %v10818_v15 = vld [vmem:[#allocation6 + $0x1070] ss:$8 sps:$4 sm:$0xff]   ;;  %v10826_v16 = vld [vmem:[#allocation6 + $0x1084] ss:$8 sps:$4 sm:$0xff]  }
 0x308   : > { %7062 = vmatprep.subr.bf16.mxu0 %v10739_v17  ;;  %v10888_v17 = vld [vmem:[#allocation9 + $0x18] sm:$0xff]   ;;  %8850 = vmatprep.subr.bf16.mxu1 %v10887_v14 }
 0x309   : > { %8851 = vmatpush3.bf16.msra.mxu1 %v10888_v17 }
 0x30b   : > { %7063 = vmatpush1.bf16.msra.mxu0 %v10737_v18  ;;  %v10823_v18 = vld [vmem:[%s11555_s22 + $0x4b8] ss:$136 sps:$4 sm:$0xff]  }
 0x30c   : > { %7064 = vmatprep.subr.bf16.mxu0 %v10745_v19  ;;  %v10889_v19 = vld [vmem:[#allocation9 + $0x60] sm:$0xff]  }
 0x30d   : > { %8852 = vmatprep.subr.bf16.mxu1 %v10889_v19 }
 0x30e   : > { %7002 = vmatmul.mubr.bf16.gmra.mrb[12].mxu0 %v10742_v20  ;;  %v10824_v20 = vld [vmem:[#allocation6 + $0x1080] ss:$8 sps:$4 sm:$0xff]  }
 0x30f   : > { %7065 = vmatpush1.bf16.msra.mxu0 %v10743_v21  ;;  %7011 = vmatprep.mubr.bf16.mxu0 %v10749_v22  ;;  %v10830_v21 = vld [vmem:[%s11555_s22 + $0x5cc] ss:$136 sps:$4 sm:$0xff]  }
 0x310   : > { %7066 = vmatprep.subr.bf16.mxu0 %v10748_v23  ;;  %v10829_v22 = vld [vmem:[#allocation6 + $0x1094] ss:$8 sps:$4 sm:$0xff]   ;;  %v10890_v23 = vld [vmem:[#allocation9 + $0x20] sm:$0xff]  }
 0x311   : > { %8853 = vmatpush3.bf16.msra.mxu1 %v10890_v23 }
 0x313   : > { %7067 = vmatpush1.bf16.msra.mxu0 %v10746_v24  ;;  %v10891_v24 = vld [vmem:[#allocation9 + $0x68] sm:$0xff]  }
 0x314   : > { %7068 = vmatprep.subr.bf16.mxu0 %v10754_v25  ;;  %v10827_v25 = vld [vmem:[#allocation6 + $0x1090] ss:$8 sps:$4 sm:$0xff]   ;;  %8854 = vmatprep.subr.bf16.mxu1 %v10891_v24 }
 0x316   : > { %7012 = vmatmul.mubr.bf16.gmra.mrb[16].mxu0 %v10751_v26  ;;  %v10835_v26 = vld [vmem:[#allocation6 + $0x10a4] ss:$8 sps:$4 sm:$0xff]  }
 0x317   : > { %7069 = vmatpush1.bf16.msra.mxu0 %v10752_v27  ;;  %7021 = vmatprep.mubr.bf16.mxu0 %v10758_v28  ;;  %v10892_v27 = vld [vmem:[#allocation9 + $0x28] sm:$0xff]  }
 0x318   : > { %7070 = vmatprep.subr.bf16.mxu0 %v10757_v29  ;;  %v10832_v28 = vld [vmem:[%s11555_s22 + $0x5c8] ss:$136 sps:$4 sm:$0xff]   ;;  %8855 = vmatpush3.bf16.msra.mxu1 %v10892_v27 }
 0x319   : > { %v10893_v29 = vld [vmem:[#allocation9 + $0x70] sm:$0xff]  }
 0x31a   : > { %8856 = vmatprep.subr.bf16.mxu1 %v10893_v29 }
 0x31b   : > { %7071 = vmatpush1.bf16.msra.mxu0 %v10755_v30  ;;  %v10833_v30 = vld [vmem:[#allocation6 + $0x10a0] ss:$8 sps:$4 sm:$0xff]  }
 0x31c   : > { %7072 = vmatprep.subr.bf16.mxu0 %v10763_v31  ;;  %v10839_v31 = vld [vmem:[%s11555_s22 + $0x6dc] ss:$136 sps:$4 sm:$0xff]  }
 0x31e   : > { %7022 = vmatmul.mubr.bf16.gmra.mrb[20].mxu0 %v10760_v32  ;;  %v10838_v32 = vld [vmem:[#allocation6 + $0x10b4] ss:$8 sps:$4 sm:$0xff]  }
 0x31f   : > { %7073 = vmatpush1.bf16.msra.mxu0 %v10761_v33  ;;  %7031 = vmatprep.mubr.bf16.mxu0 %v10767_v34  ;;  %v10894_v33 = vld [vmem:[#allocation9 + $0x30] sm:$0xff]  }
 0x320   : > { %7074 = vmatprep.subr.bf16.mxu0 %v10766_v35  ;;  %v10836_v34 = vld [vmem:[#allocation6 + $0x10b0] ss:$8 sps:$4 sm:$0xff]   ;;  %v10844_v35 = vld [vmem:[#allocation6 + $0x10c4] ss:$8 sps:$4 sm:$0xff]   ;;  %8857 = vmatpush3.bf16.msra.mxu1 %v10894_v33  ;;  %v1267_v33 = vlaneseq }
 0x323   : > { %7075 = vmatpush1.bf16.msra.mxu0 %v10764_v36  ;;  %v10841_v36 = vld [vmem:[%s11555_s22 + $0x6d8] ss:$136 sps:$4 sm:$0xff]  }
 0x324   : > { %7076 = vmatprep.subr.bf16.mxu0 %v10772_v37  ;;  %v10842_v37 = vld [vmem:[#allocation6 + $0x10c0] ss:$8 sps:$4 sm:$0xff]  }
 0x326   : > { %7032 = vmatmul.mubr.bf16.gmra.mrb[24].mxu0 %v10769_v38  ;;  %v10848_v38 = vld [vmem:[%s11555_s22 + $0x7ec] ss:$136 sps:$4 sm:$0xff]  }
 0x327   : > { %7077 = vmatpush1.bf16.msra.mxu0 %v10770_v39  ;;  %7041 = vmatprep.mubr.bf16.mxu0 %v10776_v40  ;;  %v10847_v39 = vld [vmem:[#allocation6 + $0x10d4] ss:$8 sps:$4 sm:$0xff]   ;;  %v10845_v40 = vld [vmem:[#allocation6 + $0x10d0] ss:$8 sps:$4 sm:$0xff]  }
 0x328   : > { %7078 = vmatprep.subr.bf16.mxu0 %v10775_v41  ;;  %v10853_v41 = vld [vmem:[#allocation6 + $0x10e4] ss:$8 sps:$4 sm:$0xff]  }
 0x32b   : > { %7079 = vmatpush1.bf16.msra.mxu0 %v10773_v42  ;;  %v10850_v42 = vld [vmem:[%s11555_s22 + $0x7e8] ss:$136 sps:$4 sm:$0xff]  }
 0x32c   : > { %7080 = vmatprep.subr.bf16.mxu0 %v10781_v43  ;;  %v10851_v43 = vld [vmem:[#allocation6 + $0x10e0] ss:$8 sps:$4 sm:$0xff]  }
 0x32e   : > { %7042 = vmatmul.mubr.bf16.gmra.mrb[28].mxu0 %v10778_v44  ;;  %v10859_v44 = vld [vmem:[%s11555_s22 + $0x84] ss:$136 sps:$4 sm:$0xff]  }
 0x32f   : > { %7081 = vmatpush1.bf16.msra.mxu0 %v10779_v45  ;;  %7084 = vmatprep.mubr.bf16.mxu0 %v10787_v46  ;;  %v10856_v45 = vld [vmem:[#allocation6 + $0x10f4] ss:$8 sps:$4 sm:$0xff]   ;;  %v10854_v46 = vld [vmem:[#allocation6 + $0x10f0] ss:$8 sps:$4 sm:$0xff]  }
 0x330   : > { %7082 = vmatprep.subr.bf16.mxu0 %v10784_v47  ;;  %v10857_v47 = vld [vmem:[%s11555_s22 + $0x80] ss:$136 sps:$4 sm:$0xff]  }
 0x333   : > { %7083 = vmatpush1.bf16.msra.mxu0 %v10782_v48  ;;  %v10860_v48 = vld [vmem:[%s11555_s22 + $0x194] ss:$136 sps:$4 sm:$0xff]  }
 0x334   : > { %7165 = vmatprep.subr.bf16.mxu0 %v10790_v49  ;;  %v10862_v49 = vld [vmem:[%s11555_s22 + $0x190] ss:$136 sps:$4 sm:$0xff]  }
 0x336   : > { %7085 = vmatmul.mubr.bf16.vlgmr.msra.gmra.mrb[0].mxu0 %v10785_v50  ;;  %v10863_v50 = vld [vmem:[%s11555_s22 + $0x2a4] ss:$136 sps:$4 sm:$0xff]  }
 0x337   : > { %7166 = vmatpush1.bf16.msra.mxu0 %v10788_v51  ;;  %7094 = vmatprep.mubr.bf16.mxu0 %v10794_v52  ;;  %v10865_v51 = vld [vmem:[%s11555_s22 + $0x2a0] ss:$136 sps:$4 sm:$0xff]   ;;  %v10866_v52 = vld [vmem:[%s11555_s22 + $0x3b4] ss:$136 sps:$4 sm:$0xff]  }
 0x338   : > { %7167 = vmatprep.subr.bf16.mxu0 %v10793_v53 }
 0x33b   : > { %7168 = vmatpush1.bf16.msra.mxu0 %v10791_v54 }
 0x33c   : > { %7169 = vmatprep.subr.bf16.mxu0 %v10799_v55  ;;  %v10868_v55 = vld [vmem:[%s11555_s22 + $0x3b0] ss:$136 sps:$4 sm:$0xff]  }
 0x33e   : > { %7095 = vmatmul.mubr.bf16.gmra.mrb[4].mxu0 %v10796_v56 }
 0x33f   : > { %7170 = vmatpush1.bf16.msra.mxu0 %v10797_v57  ;;  %7104 = vmatprep.mubr.bf16.mxu0 %v10803_v58  ;;  %v10869_v57 = vld [vmem:[%s11555_s22 + $0x4c4] ss:$136 sps:$4 sm:$0xff]  }
 0x340   : > { %7171 = vmatprep.subr.bf16.mxu0 %v10802_v59 }
 0x343   : > { %7172 = vmatpush1.bf16.msra.mxu0 %v10800_v60 }
 0x344   : > { %7173 = vmatprep.subr.bf16.mxu0 %v10808_v61  ;;  %v10871_v61 = vld [vmem:[%s11555_s22 + $0x4c0] ss:$136 sps:$4 sm:$0xff]  }
 0x346   : > { %7105 = vmatmul.mubr.bf16.gmra.mrb[8].mxu0 %v10805_v62 }
 0x347   : > { %7174 = vmatpush1.bf16.msra.mxu0 %v10806_v63  ;;  %7114 = vmatprep.mubr.bf16.mxu0 %v10812_v0  ;;  %v10872_v63 = vld [vmem:[%s11555_s22 + $0x5d4] ss:$136 sps:$4 sm:$0xff]  }
 0x348   : > { %7175 = vmatprep.subr.bf16.mxu0 %v10811_v1 }
 0x34b   : > { %7176 = vmatpush1.bf16.msra.mxu0 %v10809_v5  ;;  %v10875_v5 = vld [vmem:[%s11555_s22 + $0x6e4] ss:$136 sps:$4 sm:$0xff]  }
 0x34c   : > { %7177 = vmatprep.subr.bf16.mxu0 %v10817_v6 }
 0x34e   : > { %7115 = vmatmul.mubr.bf16.gmra.mrb[12].mxu0 %v10814_v8 }
 0x34f   : > { %7178 = vmatpush1.bf16.msra.mxu0 %v10815_v10  ;;  %7124 = vmatprep.mubr.bf16.mxu0 %v10821_v11  ;;  %v10878_v11 = vld [vmem:[%s11555_s22 + $0x7f4] ss:$136 sps:$4 sm:$0xff]  }
 0x350   : > { %7179 = vmatprep.subr.bf16.mxu0 %v10820_v12 }
 0x353   : > { %7180 = vmatpush1.bf16.msra.mxu0 %v10818_v15  ;;  %v10880_v15 = vld [vmem:[%s11555_s22 + $0x7f0] ss:$136 sps:$4 sm:$0xff]  }
 0x354   : > { %7181 = vmatprep.subr.bf16.mxu0 %v10826_v16 }
 0x356   : > { %7125 = vmatmul.mubr.bf16.gmra.mrb[16].mxu0 %v10823_v18 }
 0x357   : > { %7182 = vmatpush1.bf16.msra.mxu0 %v10824_v20  ;;  %7134 = vmatprep.mubr.bf16.mxu0 %v10830_v21 }
 0x358   : > { %7183 = vmatprep.subr.bf16.mxu0 %v10829_v22 }
 0x35b   : > { %7184 = vmatpush1.bf16.msra.mxu0 %v10827_v25 }
 0x35c   : > { %7185 = vmatprep.subr.bf16.mxu0 %v10835_v26 }
 0x35e   : > { %7135 = vmatmul.mubr.bf16.gmra.mrb[20].mxu0 %v10832_v28 }
 0x35f   : > { %7186 = vmatpush1.bf16.msra.mxu0 %v10833_v30  ;;  %7144 = vmatprep.mubr.bf16.mxu0 %v10839_v31  ;;  %v10895_v30 = vld [vmem:[#allocation9 + $0x78] sm:$0xff]  }
 0x360   : > { %7187 = vmatprep.subr.bf16.mxu0 %v10838_v32  ;;  %v10896_v31 = vld [vmem:[#allocation9 + $0x38] sm:$0xff]   ;;  %8858 = vmatprep.subr.bf16.mxu1 %v10895_v30  ;;  %v10897_v32 = vld [vmem:[#allocation12] sm:$0xff]  }
 0x361   : > { %8859 = vmatpush3.bf16.msra.mxu1 %v10896_v31 }
 0x362   : > { %8933 = vmatprep.subr.bf16.mxu1 %v10897_v32 }
 0x363   : > { %7188 = vmatpush1.bf16.msra.mxu0 %v10836_v34  ;;  %v1268_v34 = vshrl.u32 %v1267_v33, 7 }
 0x364   : > { %7189 = vmatprep.subr.bf16.mxu0 %v10844_v35 }
 0x365   : > { %v1269_v35 = vsub.s32 0, %v1268_v34 }
 0x366   : > { %7145 = vmatmul.mubr.bf16.gmra.mrb[24].mxu0 %v10841_v36  ;;  %v1265_v36 = vld [vmem:[#allocation8] sm:$0x3] }
 0x367   : > { %7190 = vmatpush1.bf16.msra.mxu0 %v10842_v37  ;;  %7154 = vmatprep.mubr.bf16.mxu0 %v10848_v38  ;;  %v1273_v37 = vsub.s32 1, %v1268_v34  ;;  %v11913_v38 = vrot.slane %v1265_v36, %v1269_v35 }
 0x368   : > { %7191 = vmatprep.subr.bf16.mxu0 %v10847_v39 }
 0x369   : > { %v11915_v39 = vrot.slane %v1265_v36, %v1273_v37  ;;  %v10899_v36 = vld [vmem:[#allocation12 + $0x10] sm:$0xff]  }
 0x36b   : > { %7192 = vmatpush1.bf16.msra.mxu0 %v10845_v40 }
 0x36c   : > { %7193 = vmatprep.subr.bf16.mxu0 %v10853_v41 }
 0x36e   : > { %7155 = vmatmul.mubr.bf16.gmra.mrb[28].mxu0 %v10850_v42 }
 0x36f   : > { %7194 = vmatpush1.bf16.msra.mxu0 %v10851_v43  ;;  %7197 = vmatprep.mubr.bf16.mxu0 %v10859_v44 }
 0x370   : > { %7195 = vmatprep.subr.bf16.mxu0 %v10856_v45 }
 0x373   : > { %7196 = vmatpush1.bf16.msra.mxu0 %v10854_v46 }
 0x376   : > { %7198 = vmatmul.mubr.bf16.vlgmr.msra.gmra.mrb[0].mxu0 %v10857_v47 }
 0x377   : > { %7207 = vmatprep.mubr.bf16.mxu0 %v10860_v48 }
 0x37e   : > { %7208 = vmatmul.mubr.bf16.gmra.mrb[4].mxu0 %v10862_v49 }
 0x37f   : > { %7217 = vmatprep.mubr.bf16.mxu0 %v10863_v50 }
 0x386   : > { %7218 = vmatmul.mubr.bf16.gmra.mrb[8].mxu0 %v10865_v51 }
 0x387   : > { %7227 = vmatprep.mubr.bf16.mxu0 %v10866_v52 }
 0x388   : > { %v11840_v53 = vpop.f32.mrb[0].mxu1 }
 0x389   : > { %v11842_v54 = vpop.f32.mrb[1].mxu1  ;;  %v8985_v40 = vadd.f32 %v11840_v53, %v11913_v38 }
 0x38a   : > { %v11845_v56 = vpop.f32.mrb[2].mxu1  ;;  %v8987_v41 = vadd.f32 %v11842_v54, %v11915_v39 }
 0x38b   : > { %v11848_v58 = vpop.f32.mrb[3].mxu1  ;;  %v8989_v43 = vadd.f32 %v11845_v56, %v11913_v38 }
 0x38c   : > { %v8991_v46 = vadd.f32 %v11848_v58, %v11915_v39 }
 0x38e   : > { %7228 = vmatmul.mubr.bf16.gmra.mrb[12].mxu0 %v10868_v55 }
 0x38f   : > { %7237 = vmatprep.mubr.bf16.mxu0 %v10869_v57 }
 0x390   : > { %v11850_v59 = vpop.f32.mrb[4].mxu1 }
 0x391   : > { %v11852_v60 = vpop.f32.mrb[5].mxu1  ;;  %v8993_v54 = vadd.f32 %v11850_v59, %v11913_v38 }
 0x392   : > { %v11855_v62 = vpop.f32.mrb[6].mxu1  ;;  %v8995_v56 = vadd.f32 %v11852_v60, %v11915_v39 }
 0x393   : > { %v11858_v0 = vpop.f32.mrb[7].mxu1  ;;  %v8997_v58 = vadd.f32 %v11855_v62, %v11913_v38 }
 0x396   : > { %7238 = vmatmul.mubr.bf16.gmra.mrb[16].mxu0 %v10871_v61 }
 0x397   : > { %7247 = vmatprep.mubr.bf16.mxu0 %v10872_v63 }
 0x398   : > { %v11860_v1 = vpop.f32.mrb[8].mxu1 }
 0x399   : > { %v11862_v2 = vpop.f32.mrb[9].mxu1 }
 0x39a   : > { %v11865_v4 = vpop.f32.mrb[10].mxu1 }
 0x39b   : > { %v11868_v6 = vpop.f32.mrb[11].mxu1 }
 0x39e   : > { %7248 = vmatmul.mubr.bf16.gmra.mrb[20].mxu0 %v10874_v3 }
 0x39f   : > { %7257 = vmatprep.mubr.bf16.mxu0 %v10875_v5 }
 0x3a0   : > { %v11870_v7 = vpop.f32.mrb[12].mxu1 }
 0x3a1   : > { %v11872_v8 = vpop.f32.mrb[13].mxu1 }
 0x3a2   : > { %v11875_v10 = vpop.f32.mrb[14].mxu1 }
 0x3a3   : > { %v11878_v12 = vpop.f32.mrb[15].mxu1 }
 0x3a6   : > { %7258 = vmatmul.mubr.bf16.gmra.mrb[24].mxu0 %v10877_v9 }
 0x3a7   : > { %7267 = vmatprep.mubr.bf16.mxu0 %v10878_v11  ;;  %v10898_v11 = vld [vmem:[#allocation12 + $0x8] sm:$0xff]  }
 0x3a8   : > { %v11880_v13 = vpop.f32.mrb[16].mxu1 }
 0x3a9   : > { %v11882_v14 = vpop.f32.mrb[17].mxu1 }
 0x3aa   : > { %v11885_v16 = vpop.f32.mrb[18].mxu1 }
 0x3ab   : > { %v11887_v17 = vpop.f32.mrb[19].mxu1 }
 0x3ae   : > { %7268 = vmatmul.mubr.bf16.gmra.mrb[28].mxu0 %v10880_v15  ;;  %v8999_v15 = vadd.f32 %v11858_v0, %v11915_v39  ;;  %v9003_v0 = vadd.f32 %v11862_v2, %v11915_v39 }
 0x3b0   : > { %v11889_v18 = vpop.f32.mrb[20].mxu1 }
 0x3b1   : > { %v11891_v19 = vpop.f32.mrb[21].mxu1 }
 0x3b2   : > { %v11893_v20 = vpop.f32.mrb[22].mxu1 }
 0x3b3   : > { %v11895_v21 = vpop.f32.mrb[23].mxu1 }
 0x3b8   : > { %v11897_v22 = vpop.f32.mrb[24].mxu1 }
 0x3b9   : > { %v11899_v23 = vpop.f32.mrb[25].mxu1 }
 0x3ba   : > { %v11901_v24 = vpop.f32.mrb[26].mxu1 }
 0x3bb   : > { %v11903_v25 = vpop.f32.mrb[27].mxu1 }
 0x3c0   : > { %v11905_v26 = vpop.f32.mrb[28].mxu1 }
 0x3c1   : > { %v11907_v27 = vpop.f32.mrb[29].mxu1 }
 0x3c2   : > { %v11909_v28 = vpop.f32.mrb[30].mxu1 }
 0x3c3   : > { %v11911_v29 = vpop.f32.mrb[31].mxu1 }
 0x449   : > { %v7199_v42 = vpop.f32.mrb[0].mxu0 }
 0x44a   : > { %v8986_v44 = vadd.f32 %v8985_v40, %v7199_v42  ;;  %v7201_v45 = vpop.f32.mrb[1].mxu0  ;;  %v9001_v40 = vadd.f32 %v11860_v1, %v11913_v38 }
 0x44b   : > { %v8988_v47 = vadd.f32 %v8987_v41, %v7201_v45  ;;  %v7203_v48 = vpop.f32.mrb[2].mxu0 }
 0x44c   : > { %v8990_v49 = vadd.f32 %v8989_v43, %v7203_v48  ;;  %v7205_v50 = vpop.f32.mrb[3].mxu0  ;;  %v7278_v52 = vmax.f32 %v8986_v44, 0.0  ;;  %v9005_v44 = vadd.f32 %v11865_v4, %v11913_v38 }
 0x44d   : > { %v8992_v51 = vadd.f32 %v8991_v46, %v7205_v50  ;;  %v7279_v53 = vmax.f32 %v8988_v47, 0.0  ;;  %v10900_v46 = vld [vmem:[#allocation12 + $0x18] sm:$0xff]   ;;  %v9007_v47 = vadd.f32 %v11868_v6, %v11915_v39  ;;  %v9011_v6 = vadd.f32 %v11872_v8, %v11915_v39 }
 0x44e   : > { %v7280_v55 = vmax.f32 %v8990_v49, 0.0 }
 0x44f   : > { %v7281_v57 = vmax.f32 %v8992_v51, 0.0 }
 0x450   : > { %v7310_v61 = vpack.c.bf16 %v7280_v55, %v7278_v52  ;;  %v10901_v55 = vld [vmem:[#allocation12 + $0x20] sm:$0xff]  }
 0x451   : > { %v7311_v63 = vpack.c.bf16 %v7281_v57, %v7279_v53  ;;  %v7209_v3 = vpop.f32.mrb[4].mxu0  ;;  %v9009_v57 = vadd.f32 %v11870_v7, %v11913_v38 }
 0x452   : > { %v8994_v5 = vadd.f32 %v8993_v54, %v7209_v3  ;;  %v7211_v9 = vpop.f32.mrb[5].mxu0 }
 0x453   : > { %v8996_v30 = vadd.f32 %v8995_v56, %v7211_v9  ;;  %v7213_v31 = vpop.f32.mrb[6].mxu0  ;;  %7493 = vmatprep.mubr.bf16.mxu1 %v7311_v63  ;;  %v9013_v63 = vadd.f32 %v11875_v10, %v11913_v38  ;;  %v9015_v9 = vadd.f32 %v11878_v12, %v11915_v39  ;;  %v9019_v12 = vadd.f32 %v11882_v14, %v11915_v39 }
 0x454   : > { %v8998_v33 = vadd.f32 %v8997_v58, %v7213_v31  ;;  %v7215_v59 = vpop.f32.mrb[7].mxu0  ;;  %7494 = vmatmul.mubr.bf16.vlgmr.msra.gmra.mrb[32].mxu1 %v7310_v61  ;;  %v7282_v60 = vmax.f32 %v8994_v5, 0.0  ;;  %v10902_v5 = vld [vmem:[#allocation12 + $0x28] sm:$0xff]  }
 0x455   : > { %v9000_v34 = vadd.f32 %v8999_v15, %v7215_v59  ;;  %8934 = vmatpush3.bf16.msra.mxu1 %v10897_v32  ;;  %v7283_v37 = vmax.f32 %v8996_v30, 0.0 }
 0x456   : > { %v7284_v35 = vmax.f32 %v8998_v33, 0.0  ;;  %8935 = vmatprep.subr.bf16.mxu1 %v10898_v11 }
 0x457   : > { %v7285_v62 = vmax.f32 %v9000_v34, 0.0  ;;  %v9017_v34 = vadd.f32 %v11880_v13, %v11913_v38 }
 0x458   : > { %v7312_v41 = vpack.c.bf16 %v7284_v35, %v7282_v60 }
 0x459   : > { %v7313_v42 = vpack.c.bf16 %v7285_v62, %v7283_v37  ;;  %v7219_v43 = vpop.f32.mrb[8].mxu0  ;;  %8936 = vmatpush3.bf16.msra.mxu1 %v10898_v11  ;;  %v9021_v37 = vadd.f32 %v11885_v16, %v11913_v38 }
 0x45a   : > { %v9002_v32 = vadd.f32 %v9001_v40, %v7219_v43  ;;  %v7221_v45 = vpop.f32.mrb[9].mxu0  ;;  %8937 = vmatprep.subr.bf16.mxu1 %v10899_v36 }
 0x45b   : > { %v9004_v48 = vadd.f32 %v9003_v0, %v7221_v45  ;;  %v7223_v49 = vpop.f32.mrb[10].mxu0  ;;  %7501 = vmatprep.mubr.bf16.mxu1 %v7313_v42 }
 0x45c   : > { %v9006_v1 = vadd.f32 %v9005_v44, %v7223_v49  ;;  %v7225_v50 = vpop.f32.mrb[11].mxu0  ;;  %7502 = vmatmul.mubr.bf16.gmra.mrb[36].mxu1 %v7312_v41  ;;  %v7286_v51 = vmax.f32 %v9002_v32, 0.0  ;;  %v9023_v41 = vadd.f32 %v11887_v17, %v11915_v39 }
 0x45d   : > { %v9008_v2 = vadd.f32 %v9007_v47, %v7225_v50  ;;  %8938 = vmatpush3.bf16.msra.mxu1 %v10899_v36  ;;  %v7287_v4 = vmax.f32 %v9004_v48, 0.0  ;;  %v9025_v47 = vadd.f32 %v11889_v18, %v11913_v38  ;;  %v9027_v48 = vadd.f32 %v11891_v19, %v11915_v39 }
 0x45e   : > { %v7288_v52 = vmax.f32 %v9006_v1, 0.0  ;;  %8939 = vmatprep.subr.bf16.mxu1 %v10900_v46  ;;  %v9029_v1 = vadd.f32 %v11893_v20, %v11913_v38 }
 0x45f   : > { %v7289_v53 = vmax.f32 %v9008_v2, 0.0 }
 0x460   : > { %v7314_v54 = vpack.c.bf16 %v7288_v52, %v7286_v51  ;;  %v9031_v51 = vadd.f32 %v11895_v21, %v11915_v39 }
 0x461   : > { %v7315_v61 = vpack.c.bf16 %v7289_v53, %v7287_v4  ;;  %v7229_v56 = vpop.f32.mrb[12].mxu0  ;;  %8940 = vmatpush3.bf16.msra.mxu1 %v10900_v46 }
 0x462   : > { %v9010_v3 = vadd.f32 %v9009_v57, %v7229_v56  ;;  %v7231_v58 = vpop.f32.mrb[13].mxu0  ;;  %8941 = vmatprep.subr.bf16.mxu1 %v10901_v55  ;;  %v9035_v56 = vadd.f32 %v11899_v23, %v11915_v39 }
 0x463   : > { %v9012_v11 = vadd.f32 %v9011_v6, %v7231_v58  ;;  %v7233_v15 = vpop.f32.mrb[14].mxu0  ;;  %7509 = vmatprep.mubr.bf16.mxu1 %v7315_v61  ;;  %v9033_v61 = vadd.f32 %v11897_v22, %v11913_v38 }
 0x464   : > { %v9014_v7 = vadd.f32 %v9013_v63, %v7233_v15  ;;  %v7235_v30 = vpop.f32.mrb[15].mxu0  ;;  %7510 = vmatmul.mubr.bf16.gmra.mrb[40].mxu1 %v7314_v54  ;;  %v7290_v31 = vmax.f32 %v9010_v3, 0.0  ;;  %v9037_v3 = vadd.f32 %v11901_v24, %v11913_v38 }
 0x465   : > { %v9016_v8 = vadd.f32 %v9015_v9, %v7235_v30  ;;  %8942 = vmatpush3.bf16.msra.mxu1 %v10901_v55  ;;  %v7291_v59 = vmax.f32 %v9012_v11, 0.0  ;;  %v9039_v9 = vadd.f32 %v11903_v25, %v11915_v39 }
 0x466   : > { %v7292_v33 = vmax.f32 %v9014_v7, 0.0  ;;  %8943 = vmatprep.subr.bf16.mxu1 %v10902_v5 }
 0x467   : > { %v7293_v10 = vmax.f32 %v9016_v8, 0.0 }
 0x468   : > { %v7316_v60 = vpack.c.bf16 %v7292_v33, %v7290_v31 }
 0x469   : > { %v7317_v35 = vpack.c.bf16 %v7293_v10, %v7291_v59  ;;  %v7239_v36 = vpop.f32.mrb[16].mxu0  ;;  %8944 = vmatpush3.bf16.msra.mxu1 %v10902_v5  ;;  %v9041_v59 = vadd.f32 %v11905_v26, %v11913_v38  ;;  %v9043_v10 = vadd.f32 %v11907_v27, %v11915_v39 }
 0x46a   : > { %v9018_v62 = vadd.f32 %v9017_v34, %v7239_v36  ;;  %v7241_v40 = vpop.f32.mrb[17].mxu0  ;;  %v9047_v36 = vadd.f32 %v11911_v29, %v11915_v39  ;;  %v11981_v39 = vld [vmem:[#allocation11] ss:$0 sm:$0xff] }
 0x46b   : > { %v9020_v0 = vadd.f32 %v9019_v12, %v7241_v40  ;;  %v7243_v42 = vpop.f32.mrb[18].mxu0  ;;  %7517 = vmatprep.mubr.bf16.mxu1 %v7317_v35 }
 0x46c   : > { %v9022_v43 = vadd.f32 %v9021_v37, %v7243_v42  ;;  %v7245_v13 = vpop.f32.mrb[19].mxu0  ;;  %7518 = vmatmul.mubr.bf16.gmra.mrb[44].mxu1 %v7316_v60  ;;  %v7294_v32 = vmax.f32 %v9018_v62, 0.0  ;;  %v9045_v60 = vadd.f32 %v11909_v28, %v11913_v38  ;;  %v10903_v28 = vld [vmem:[#allocation12 + $0x30] sm:$0xff]   ;;  %v10904_v38 = vld [vmem:[#allocation12 + $0x38] sm:$0xff]  }
 0x46d   : > { %v9024_v44 = vadd.f32 %v9023_v41, %v7245_v13  ;;  %v7295_v45 = vmax.f32 %v9020_v0, 0.0  ;;  %8945 = vmatprep.subr.bf16.mxu1 %v10903_v28 }
 0x46e   : > { %v7296_v14 = vmax.f32 %v9022_v43, 0.0  ;;  %8946 = vmatpush3.bf16.msra.mxu1 %v10903_v28 }
 0x46f   : > { %v7297_v46 = vmax.f32 %v9024_v44, 0.0  ;;  %8947 = vmatprep.subr.bf16.mxu1 %v10904_v38 }
 0x470   : > { %v7318_v16 = vpack.c.bf16 %v7296_v14, %v7294_v32 }
 0x471   : > { %v7319_v49 = vpack.c.bf16 %v7297_v46, %v7295_v45  ;;  %v7249_v17 = vpop.f32.mrb[20].mxu0 }
 0x472   : > { %v9026_v50 = vadd.f32 %v9025_v47, %v7249_v17  ;;  %v7251_v2 = vpop.f32.mrb[21].mxu0  ;;  %8948 = vmatpush3.bf16.msra.mxu1 %v10904_v38 }
 0x473   : > { %v9028_v52 = vadd.f32 %v9027_v48, %v7251_v2  ;;  %v7253_v55 = vpop.f32.mrb[22].mxu0  ;;  %7525 = vmatprep.mubr.bf16.mxu1 %v7319_v49 }
 0x474   : > { %v9030_v4 = vadd.f32 %v9029_v1, %v7253_v55  ;;  %v7255_v53 = vpop.f32.mrb[23].mxu0  ;;  %7526 = vmatmul.mubr.bf16.gmra.mrb[48].mxu1 %v7318_v16  ;;  %v7298_v57 = vmax.f32 %v9026_v50, 0.0 }
 0x475   : > { %v9032_v18 = vadd.f32 %v9031_v51, %v7255_v53  ;;  %v7299_v19 = vmax.f32 %v9028_v52, 0.0 }
 0x476   : > { %v7300_v54 = vmax.f32 %v9030_v4, 0.0 }
 0x477   : > { %v7301_v6 = vmax.f32 %v9032_v18, 0.0 }
 0x478   : > { %v7320_v20 = vpack.c.bf16 %v7300_v54, %v7298_v57 }
 0x479   : > { %v7321_v63 = vpack.c.bf16 %v7301_v6, %v7299_v19  ;;  %v7259_v21 = vpop.f32.mrb[24].mxu0 }
 0x47a   : > { %v9034_v58 = vadd.f32 %v9033_v61, %v7259_v21  ;;  %v7261_v5 = vpop.f32.mrb[25].mxu0 }
 0x47b   : > { %v9036_v11 = vadd.f32 %v9035_v56, %v7261_v5  ;;  %v7263_v15 = vpop.f32.mrb[26].mxu0  ;;  %7533 = vmatprep.mubr.bf16.mxu1 %v7321_v63 }
 0x47c   : > { %v9038_v7 = vadd.f32 %v9037_v3, %v7263_v15  ;;  %v7265_v30 = vpop.f32.mrb[27].mxu0  ;;  %7534 = vmatmul.mubr.bf16.gmra.mrb[52].mxu1 %v7320_v20  ;;  %v7302_v8 = vmax.f32 %v9034_v58, 0.0 }
 0x47d   : > { %v9040_v22 = vadd.f32 %v9039_v9, %v7265_v30  ;;  %v7303_v23 = vmax.f32 %v9036_v11, 0.0 }
 0x47e   : > { %v7304_v31 = vmax.f32 %v9038_v7, 0.0 }
 0x47f   : > { %v7305_v33 = vmax.f32 %v9040_v22, 0.0 }
 0x480   : > { %v7322_v24 = vpack.c.bf16 %v7304_v31, %v7302_v8 }
 0x481   : > { %v7323_v34 = vpack.c.bf16 %v7305_v33, %v7303_v23  ;;  %v7269_v25 = vpop.f32.mrb[28].mxu0 }
 0x482   : > { %v9042_v12 = vadd.f32 %v9041_v59, %v7269_v25  ;;  %v7271_v35 = vpop.f32.mrb[29].mxu0 }
 0x483   : > { %v9044_v37 = vadd.f32 %v9043_v10, %v7271_v35  ;;  %v7273_v62 = vpop.f32.mrb[30].mxu0  ;;  %7541 = vmatprep.mubr.bf16.mxu1 %v7323_v34 }
 0x484   : > { %v9046_v40 = vadd.f32 %v9045_v60, %v7273_v62  ;;  %v7275_v41 = vpop.f32.mrb[31].mxu0  ;;  %7542 = vmatmul.mubr.bf16.gmra.mrb[56].mxu1 %v7322_v24  ;;  %v7306_v0 = vmax.f32 %v9042_v12, 0.0 }
 0x485   : > { %v9048_v26 = vadd.f32 %v9047_v36, %v7275_v41  ;;  %v7307_v27 = vmax.f32 %v9044_v37, 0.0 }
 0x486   : > { %v7308_v42 = vmax.f32 %v9046_v40, 0.0 }
 0x487   : > { %v7309_v43 = vmax.f32 %v9048_v26, 0.0 }
 0x488   : > { %v7324_v13 = vpack.c.bf16 %v7308_v42, %v7306_v0 }
 0x489   : > { %v7325_v44 = vpack.c.bf16 %v7309_v43, %v7307_v27 }
 0x48b   : > { %7549 = vmatprep.mubr.bf16.mxu1 %v7325_v44 }
 0x48c   : > { %7550 = vmatmul.mubr.bf16.gmra.mrb[60].mxu1 %v7324_v13 }
 0x527   : > { %v8860_v29 = vpop.f32.mrb[32].mxu1 }
 0x528   : > { %v8861_v32 = vpop.f32.mrb[33].mxu1 }
 0x529   : > { %v8862_v14 = vadd.f32 %v8861_v32, %v8860_v29  ;;  %v8863_v45 = vpop.f32.mrb[34].mxu1 }
 0x52a   : > { %v8864_v46 = vpop.f32.mrb[35].mxu1 }
 0x52b   : > { %v7496_v47 = vadd.f32 %v8862_v14, %v11981_v39  ;;  %v8865_v16 = vadd.f32 %v8864_v46, %v8863_v45 }
 0x52d   : > { %v7499_v48 = vadd.f32 %v8865_v16, %v11981_v39  ;;  %v7558_v49 = vmax.f32 %v7496_v47, 0.0 }
 0x52f   : > { %v7559_v17 = vmax.f32 %v7499_v48, 0.0  ;;  %v8866_v1 = vpop.f32.mrb[36].mxu1 }
 0x530   : > { %v8867_v50 = vpop.f32.mrb[37].mxu1 }
 0x531   : > { %v8868_v2 = vadd.f32 %v8867_v50, %v8866_v1  ;;  %v8869_v51 = vpop.f32.mrb[38].mxu1  ;;  %v7574_v52 = vpack.c.bf16 %v7559_v17, %v7558_v49 }
 0x532   : > { %v8870_v55 = vpop.f32.mrb[39].mxu1 }
 0x533   : > { %v7504_v4 = vadd.f32 %v8868_v2, %v11981_v39  ;;  %v8871_v53 = vadd.f32 %v8870_v55, %v8869_v51  ;;  %8949 = vmatprep.mubr.bf16.mxu1 %v7574_v52 }
 0x535   : > { %v7507_v18 = vadd.f32 %v8871_v53, %v11981_v39  ;;  %v7560_v57 = vmax.f32 %v7504_v4, 0.0 }
 0x537   : > { %v7561_v54 = vmax.f32 %v7507_v18, 0.0  ;;  %v8872_v19 = vpop.f32.mrb[40].mxu1 }
 0x538   : > { %v8873_v6 = vpop.f32.mrb[41].mxu1 }
 0x539   : > { %v7575_v61 = vpack.c.bf16 %v7561_v54, %v7560_v57  ;;  %v8874_v20 = vadd.f32 %v8873_v6, %v8872_v19  ;;  %v8875_v56 = vpop.f32.mrb[42].mxu1 }
 0x53a   : > { %v8876_v63 = vpop.f32.mrb[43].mxu1 }
 0x53b   : > { %v7512_v21 = vadd.f32 %v8874_v20, %v11981_v39  ;;  %v8877_v3 = vadd.f32 %v8876_v63, %v8875_v56  ;;  %8950 = vmatmul.mubr.bf16.vlgmr.msra.gmra.mrb[64].mxu1 %v7575_v61  ;;  %v11233_v56 = vmov 0.0   ;;  %v8830_v63 = vld [vmem:[#allocation14] ss:$0 sm:$0xff] }
 0x53c   : > { %8965 = vmatprep.subr.bf16.mxu1 %v11233_v56 }
 0x53d   : > { %v7515_v58 = vadd.f32 %v8877_v3, %v11981_v39  ;;  %v7562_v5 = vmax.f32 %v7512_v21, 0.0 }
 0x53f   : > { %v7563_v9 = vmax.f32 %v7515_v58, 0.0  ;;  %v8878_v11 = vpop.f32.mrb[44].mxu1 }
 0x540   : > { %v8879_v15 = vpop.f32.mrb[45].mxu1 }
 0x541   : > { %v8880_v7 = vadd.f32 %v8879_v15, %v8878_v11  ;;  %v8881_v30 = vpop.f32.mrb[46].mxu1  ;;  %v7576_v22 = vpack.c.bf16 %v7563_v9, %v7562_v5 }
 0x542   : > { %v8882_v8 = vpop.f32.mrb[47].mxu1 }
 0x543   : > { %v7520_v31 = vadd.f32 %v8880_v7, %v11981_v39  ;;  %v8883_v23 = vadd.f32 %v8882_v8, %v8881_v30  ;;  %8953 = vmatprep.mubr.bf16.mxu1 %v7576_v22 }
 0x545   : > { %v7523_v33 = vadd.f32 %v8883_v23, %v11981_v39  ;;  %v7564_v59 = vmax.f32 %v7520_v31, 0.0 }
 0x547   : > { %v7565_v24 = vmax.f32 %v7523_v33, 0.0  ;;  %v8884_v10 = vpop.f32.mrb[48].mxu1 }
 0x548   : > { %v8885_v34 = vpop.f32.mrb[49].mxu1 }
 0x549   : > { %v8886_v25 = vadd.f32 %v8885_v34, %v8884_v10  ;;  %v8887_v60 = vpop.f32.mrb[50].mxu1  ;;  %v7577_v12 = vpack.c.bf16 %v7565_v24, %v7564_v59 }
 0x54a   : > { %v8888_v35 = vpop.f32.mrb[51].mxu1 }
 0x54b   : > { %v7528_v36 = vadd.f32 %v8886_v25, %v11981_v39  ;;  %v8889_v37 = vadd.f32 %v8888_v35, %v8887_v60  ;;  %8954 = vmatmul.mubr.bf16.gmra.mrb[68].mxu1 %v7577_v12 }
 0x54d   : > { %v7531_v62 = vadd.f32 %v8889_v37, %v11981_v39  ;;  %v7566_v40 = vmax.f32 %v7528_v36, 0.0 }
 0x54f   : > { %v7567_v41 = vmax.f32 %v7531_v62, 0.0  ;;  %v8890_v26 = vpop.f32.mrb[52].mxu1 }
 0x550   : > { %v8891_v0 = vpop.f32.mrb[53].mxu1 }
 0x551   : > { %v8892_v42 = vadd.f32 %v8891_v0, %v8890_v26  ;;  %v8893_v27 = vpop.f32.mrb[54].mxu1  ;;  %v7578_v43 = vpack.c.bf16 %v7567_v41, %v7566_v40 }
 0x552   : > { %v8894_v13 = vpop.f32.mrb[55].mxu1 }
 0x553   : > { %v7536_v44 = vadd.f32 %v8892_v42, %v11981_v39  ;;  %v8895_v28 = vadd.f32 %v8894_v13, %v8893_v27  ;;  %8957 = vmatprep.mubr.bf16.mxu1 %v7578_v43 }
 0x555   : > { %v7539_v38 = vadd.f32 %v8895_v28, %v11981_v39  ;;  %v7568_v29 = vmax.f32 %v7536_v44, 0.0 }
 0x557   : > { %v7569_v32 = vmax.f32 %v7539_v38, 0.0  ;;  %v8896_v14 = vpop.f32.mrb[56].mxu1 }
 0x558   : > { %v8897_v45 = vpop.f32.mrb[57].mxu1 }
 0x559   : > { %v8898_v46 = vadd.f32 %v8897_v45, %v8896_v14  ;;  %v8899_v47 = vpop.f32.mrb[58].mxu1  ;;  %v7579_v16 = vpack.c.bf16 %v7569_v32, %v7568_v29 }
 0x55a   : > { %v8900_v48 = vpop.f32.mrb[59].mxu1 }
 0x55b   : > { %v7544_v49 = vadd.f32 %v8898_v46, %v11981_v39  ;;  %v8901_v17 = vadd.f32 %v8900_v48, %v8899_v47  ;;  %8958 = vmatmul.mubr.bf16.gmra.mrb[72].mxu1 %v7579_v16 }
 0x55d   : > { %v7547_v1 = vadd.f32 %v8901_v17, %v11981_v39  ;;  %v7570_v50 = vmax.f32 %v7544_v49, 0.0 }
 0x55f   : > { %v7571_v2 = vmax.f32 %v7547_v1, 0.0  ;;  %v8902_v51 = vpop.f32.mrb[60].mxu1 }
 0x560   : > { %v8903_v52 = vpop.f32.mrb[61].mxu1 }
 0x561   : > { %v8904_v55 = vadd.f32 %v8903_v52, %v8902_v51  ;;  %v8905_v4 = vpop.f32.mrb[62].mxu1  ;;  %v7580_v53 = vpack.c.bf16 %v7571_v2, %v7570_v50 }
 0x562   : > { %v8906_v18 = vpop.f32.mrb[63].mxu1 }
 0x563   : > { %v7552_v57 = vadd.f32 %v8904_v55, %v11981_v39  ;;  %v8907_v54 = vadd.f32 %v8906_v18, %v8905_v4  ;;  %8961 = vmatprep.mubr.bf16.mxu1 %v7580_v53 }
 0x565   : > { %v7555_v19 = vadd.f32 %v8907_v54, %v11981_v39  ;;  %v7572_v6 = vmax.f32 %v7552_v57, 0.0  ;;  %v7766_v57 = vld [vmem:[#allocation15] sm:$0xf]  ;;  %v7776_v54 = vstv %s7775_s17 }
 0x567   : > { %v7573_v61 = vmax.f32 %v7555_v19, 0.0 }
 0x569   : > { %v7581_v20 = vpack.c.bf16 %v7573_v61, %v7572_v6 }
 0x56b   : > { %8962 = vmatmul.mubr.bf16.gmra.mrb[76].mxu1 %v7581_v20 }
 0x56c   : > { %8981 = vmatprep.mubr.msk.bf16.mxu1 %vm11234_vm0, %v11233_v56 }
 0x60e   : > { %v8951_v21 = vpop.f32.mrb[64].mxu1 }
 0x60f   : > { %v7696_v3 = vadd.f32 %v8951_v21, %v8830_v63  ;;  %v7687_v58 = vpop.f32.mrb[65].mxu1 }
 0x610   : > { %v7688_v5 = vadd.f32 %v8830_v63, %v7687_v58  ;;  %v8952_v9 = vpop.f32.mrb[66].mxu1 }
 0x611   : > { %v7699_v11 = vadd.f32 %v8952_v9, %v8830_v63  ;;  %v7690_v15 = vpop.f32.mrb[67].mxu1  ;;  %v7752_v39 = vmax.f32 %v7696_v3, 0.0 }
 0x612   : > { %v7691_v7 = vadd.f32 %v8830_v63, %v7690_v15  ;;  %v7750_v22 = vmax.f32 %v7688_v5, 0.0 }
 0x613   : > { %v7753_v30 = vmax.f32 %v7699_v11, 0.0 }
 0x614   : > { %v7751_v8 = vmax.f32 %v7691_v7, 0.0 }
 0x615   : > { %v7768_v31 = vpack.c.bf16 %v7753_v30, %v7752_v39 }
 0x616   : > { %v7767_v23 = vpack.c.bf16 %v7751_v8, %v7750_v22 }
 0x618   : > { %8966 = vmatpush3.bf16.xpose.msra.mxu1 %v7767_v23 }
 0x619   : > { %8967 = vmatprep.subr.bf16.mxu1 %v11233_v56 }
 0x61e   : > { %v8955_v33 = vpop.f32.mrb[68].mxu1 }
 0x61f   : > { %v7712_v59 = vadd.f32 %v8955_v33, %v8830_v63  ;;  %v7703_v24 = vpop.f32.mrb[69].mxu1 }
 0x620   : > { %v7704_v10 = vadd.f32 %v8830_v63, %v7703_v24  ;;  %v8956_v34 = vpop.f32.mrb[70].mxu1  ;;  %8968 = vmatpush3.bf16.xpose.msra.mxu1 %v7768_v31 }
 0x621   : > { %v7715_v25 = vadd.f32 %v8956_v34, %v8830_v63  ;;  %v7706_v60 = vpop.f32.mrb[71].mxu1  ;;  %8969 = vmatprep.subr.bf16.mxu1 %v11233_v56  ;;  %v7756_v35 = vmax.f32 %v7712_v59, 0.0 }
 0x622   : > { %v7707_v12 = vadd.f32 %v8830_v63, %v7706_v60  ;;  %v7754_v37 = vmax.f32 %v7704_v10, 0.0 }
 0x623   : > { %v7757_v36 = vmax.f32 %v7715_v25, 0.0 }
 0x624   : > { %v7755_v62 = vmax.f32 %v7707_v12, 0.0 }
 0x625   : > { %v7770_v40 = vpack.c.bf16 %v7757_v36, %v7756_v35 }
 0x626   : > { %v7769_v41 = vpack.c.bf16 %v7755_v62, %v7754_v37 }
 0x628   : > { %8970 = vmatpush3.bf16.xpose.msra.mxu1 %v7769_v41 }
 0x629   : > { %8971 = vmatprep.subr.bf16.mxu1 %v11233_v56 }
 0x62e   : > { %v8959_v26 = vpop.f32.mrb[72].mxu1 }
 0x62f   : > { %v7728_v0 = vadd.f32 %v8959_v26, %v8830_v63  ;;  %v7719_v42 = vpop.f32.mrb[73].mxu1 }
 0x630   : > { %v7720_v27 = vadd.f32 %v8830_v63, %v7719_v42  ;;  %v8960_v43 = vpop.f32.mrb[74].mxu1  ;;  %8972 = vmatpush3.bf16.xpose.msra.mxu1 %v7770_v40 }
 0x631   : > { %v7731_v13 = vadd.f32 %v8960_v43, %v8830_v63  ;;  %v7722_v44 = vpop.f32.mrb[75].mxu1  ;;  %8973 = vmatprep.subr.bf16.mxu1 %v11233_v56  ;;  %v7760_v38 = vmax.f32 %v7728_v0, 0.0 }
 0x632   : > { %v7723_v28 = vadd.f32 %v8830_v63, %v7722_v44  ;;  %v7758_v32 = vmax.f32 %v7720_v27, 0.0 }
 0x633   : > { %v7761_v29 = vmax.f32 %v7731_v13, 0.0 }
 0x634   : > { %v7759_v14 = vmax.f32 %v7723_v28, 0.0 }
 0x635   : > { %v7772_v45 = vpack.c.bf16 %v7761_v29, %v7760_v38 }
 0x636   : > { %v7771_v46 = vpack.c.bf16 %v7759_v14, %v7758_v32 }
 0x638   : > { %8974 = vmatpush3.bf16.xpose.msra.mxu1 %v7771_v46 }
 0x639   : > { %8975 = vmatprep.subr.bf16.mxu1 %v11233_v56 }
 0x63e   : > { %v8963_v47 = vpop.f32.mrb[76].mxu1 }
 0x63f   : > { %v7744_v16 = vadd.f32 %v8963_v47, %v8830_v63  ;;  %v7735_v48 = vpop.f32.mrb[77].mxu1 }
 0x640   : > { %v7736_v49 = vadd.f32 %v8830_v63, %v7735_v48  ;;  %v8964_v17 = vpop.f32.mrb[78].mxu1  ;;  %8976 = vmatpush3.bf16.xpose.msra.mxu1 %v7772_v45 }
 0x641   : > { %v7747_v1 = vadd.f32 %v8964_v17, %v8830_v63  ;;  %v7738_v50 = vpop.f32.mrb[79].mxu1  ;;  %8977 = vmatprep.subr.bf16.mxu1 %v11233_v56  ;;  %v7764_v51 = vmax.f32 %v7744_v16, 0.0 }
 0x642   : > { %v7739_v2 = vadd.f32 %v8830_v63, %v7738_v50  ;;  %v7762_v55 = vmax.f32 %v7736_v49, 0.0 }
 0x643   : > { %v7765_v52 = vmax.f32 %v7747_v1, 0.0 }
 0x644   : > { %v7763_v4 = vmax.f32 %v7739_v2, 0.0 }
 0x645   : > { %v7774_v53 = vpack.c.bf16 %v7765_v52, %v7764_v51 }
 0x646   : > { %v7773_v18 = vpack.c.bf16 %v7763_v4, %v7762_v55 }
 0x648   : > { %8978 = vmatpush3.bf16.xpose.msra.mxu1 %v7773_v18 }
 0x649   : > { %8979 = vmatprep.subr.bf16.mxu1 %v11233_v56 }
 0x650   : > { %8980 = vmatpush3.bf16.xpose.msra.mxu1 %v7774_v53 }
 0x657   : > { %8982 = vmatmul.mubr.bf16.vlgmr.msra.gmra.mrb[80].mxu1 %v7766_v57 }
 0x72a   : > { %v7811_v19 = vpop.f32.mrb[80].mxu1 }
 0x72b   : > { %v7812_v6 = vadd.f32 %v7811_v19, %v7776_v54  ;;  %v8983_v61 = vpop.f32.mrb[81].mxu1 }
 0x72c   : > { %v7814_v20 = vpop.f32.mrb[82].mxu1 }
 0x72d   : > { %v8839_v63 = vmul.f32 -1.442695, %v7812_v6  ;;  %v8984_v21 = vpop.f32.mrb[83].mxu1 }
 0x72f   : > { %10905 = vpow2.f32 %v8839_v63 }
 0x739   : > { %v10906_v3 = vpop.eup %10905 }
 0x73a   : > { %v7820_v58 = vadd.f32 1.0, %v10906_v3 }
 0x73c   : > { %10907 = vrcp.f32 %v7820_v58 }
 0x746   : > { %v10908_v56 = vpop.eup %10907 }
 0x747   : > { %7823 = vst [vmem:[%s446_s30] sm:$0xff] %v10908_v56 }
 0x748   : > { %11148 = shalt.err (!%p11145_p8)
}
 0x749   : > { %s11149_s25 = scalar_lea.hbm %s12013_s8, 128  ;;  %s11153_s17 = scalar_lea.hbm %s12065_s9, 384 }
 0x74a   : > { %p11150_p9 = scmp.ne.s32.totalorder %s12013_s8, %s11149_s25  ;;  %p11154_p4 = scmp.lt.u32.totalorder %s12013_s8, %s12065_s9 }
 0x74b   : > { %p11155_p2 = scmp.lt.u32.totalorder %s11153_s17, %s11149_s25  ;;  %p11157_p10 = scmp.lt.u32.totalorder %s11149_s25, %s12013_s8 }
 0x74c   : > { %p11151_p3 = pnand %p11150_p9, %p12090_p1 }
 0x74d   : > { %p11156_p6 = por %p11155_p2, %p11154_p4 }
 0x74e   : > { %p11152_p0 = pneg %p11151_p3 }
 0x74f   : > { %p11158_p11 = por %p11157_p10, %p11156_p6 }
 0x751   : > { %p11159_p12 = pnand %p11158_p11, %p11152_p0 }
 0x753   : > { %11162 = shalt.err (!%p11159_p12)
}
 0x754   : > { %9562 = dma.vmem_to_hbm [thread:$0]  (%p12090_p1), %s12015_s10, 128, %s12013_s8, %s7825_s2  }
 0x755 PF: > { %p9609_p13 = scmp.ge.s32.totalorder %s11217_s14, 2  ;;  %s7850_s30 = sand.u32 1, %s11205_s11  }
 0x756   : > { %p12091_p7 = scmp.ne.s32.totalorder %s12079_s18, 0  ;;  %s7851_s28 = scalar_lea.sflag [#allocation5], %s7850_s30 }
 0x758   : > { %p9591_p5 = pnand %p9609_p13, %p12091_p7 }
 0x75a   : > { %11200 = dma.done.wait (!%p9591_p5), %s7851_s28, 128  }
 0x75b   : > { %11202 = vsyncadd (!%p9591_p5), %s7851_s28, 4294967168  ;;  %p27_p8 = scmp.ge.s32.totalorder %s11478_s20, 5   ;;  %s12092_s11 = smov %s11209_s12 }
 0x75c   : > { %s12093_s12 = smov %s11213_s13  ;;  %s12094_s13 = smov %s11490_s15 }
 0x75d   : > { %s12095_s14 = smov %s11478_s20  ;;  %29 = sbr.rel (!%p27_p8) target bundleno = 13 (0xd), region = 129 }
 0x764   :  { %7856 = vsyncpa [#allocation4], 1 }
 0x765   :  { %7858 = vsyncpa [#allocation4 + $0x1], 1 }
 0x766   :  { %7859 = vsyncpa [#allocation7], 1 }
 0x767   :  { %7860 = vsyncpa [#allocation10], 1 }
 0x768   :  { %7861 = vsyncpa [#allocation13], 1 }
 0x769   :  { %7862 = vsyncpa [#allocation16], 1 }
 0x76a   :  { %7863 = vsyncpa [#allocation5], 1 }
 0x76b   :  { %7865 = vsyncpa [#allocation5 + $0x1], 1 }

</bundles_post_ra>
